<compile_context>
chip_gen: v6e
topology: v6e:2x2x1
jax: 0.10.0
libtpu: 0.0.40
codegen_flags: <defaults>
</compile_context>

<pallas_src>
import math

import jax
import jax.numpy as jnp
from jax.experimental import pallas as pl
from jax.experimental.pallas import tpu as pltpu

# ----------------------------- small config ---------------------------------
VOCAB = 100          # vocabulary size
MAX_LEN = 64         # positional-embedding table length
EMB = 32             # embedding_size
HEADS = 4            # num_heads
HEAD_DIM = EMB // HEADS
N_LAYERS = 2         # num_enc_layers (small)
FF = EMB * 4         # dim_feedforward (=128, lane-dense)
H2 = 64              # hidden_pre2_classifier_linear_dim (small)
H1 = 32              # hidden_pre1_classifier_linear_dim (small)
NUM_CLASSES = 3
OUT_PAD = 128        # lane-dense padded logits width
LN_EPS = 1e-5
BN_EPS = 1e-5


# --------------------------- fused Pallas kernel ------------------------------
def snli_fused_kernel(x_ref, negk_ref,
                      wqkv_ref, bqkv_ref, wo_ref, bo_ref,
                      ln1g_ref, ln1b_ref, w1_ref, b1_ref, w2_ref, b2_ref,
                      ln2g_ref, ln2b_ref,
                      hw2_ref, hb2_ref, hg2_ref, hbe2_ref, hm2_ref, hv2_ref,
                      hw1_ref, hb1_ref, hg1_ref, hbe1_ref, hm1_ref, hv1_ref,
                      hwc_ref, hbc_ref,
                      out_ref):
    """Full SNLI_Transformer forward (post-embedding) in one kernel, all in VMEM."""
    B, S, E = x_ref.shape
    BS = B * S
    x = x_ref[...].reshape(BS, E)                                   # (BS, E) f32

    # key-padding additive bias, hoisted (invariant across layers/heads)
    neg_bss = jnp.broadcast_to(negk_ref[...][:, None, :], (B, S, S))  # (B, S, S)

    def mm(a_f32, w_bf16):
        # bf16 MXU operands, f32 accumulation
        return jnp.dot(a_f32.astype(jnp.bfloat16), w_bf16,
                       preferred_element_type=jnp.float32)

    def layer_norm(v, g, b):                                        # f32 elementwise
        mu = jnp.mean(v, axis=-1, keepdims=True)
        var = jnp.mean((v - mu) ** 2, axis=-1, keepdims=True)
        return (v - mu) * jax.lax.rsqrt(var + LN_EPS) * g + b

    for l in range(N_LAYERS):                                       # static unroll
        # ---- fused QKV projection, one lane-dense 2-D GEMM (scale folded in Wq)
        qkv = mm(x, wqkv_ref[l]) + bqkv_ref[l]                      # (BS, 3E) f32
        qkv3 = qkv.reshape(B, S, 3 * E)
        wo_l = wo_ref[l]                                            # (E, E) bf16

        # ---- multi-head attention; per-head ctx folded straight into Wo (no concat)
        attn = None
        for h in range(HEADS):                                      # static unroll
            lo = h * HEAD_DIM
            qh = qkv3[:, :, lo:lo + HEAD_DIM]                       # (B, S, D)
            kh = qkv3[:, :, E + lo:E + lo + HEAD_DIM]
            vh = qkv3[:, :, 2 * E + lo:2 * E + lo + HEAD_DIM]
            s = jnp.einsum('bqd,bkd->bqk',
                           qh.astype(jnp.bfloat16), kh.astype(jnp.bfloat16),
                           preferred_element_type=jnp.float32)      # (B, S, S)
            s = s + neg_bss                                         # key-padding mask
            s = s - jnp.max(s, axis=-1, keepdims=True)              # stable softmax
            p = jnp.exp(s)
            p = p * pl.reciprocal(jnp.sum(p, axis=-1, keepdims=True), approx=True)
            ctx = jnp.einsum('bqk,bkd->bqd',
                             p.astype(jnp.bfloat16), vh.astype(jnp.bfloat16),
                             preferred_element_type=jnp.float32)    # (B, S, D)
            part = mm(ctx.reshape(BS, HEAD_DIM), wo_l[lo:lo + HEAD_DIM, :])
            attn = part if attn is None else attn + part
        attn = attn + bo_ref[l]                                     # (BS, E)

        # ---- post-norm residual blocks (dropout = identity in eval)
        x1 = layer_norm(x + attn, ln1g_ref[l], ln1b_ref[l])
        hdn = jnp.maximum(mm(x1, w1_ref[l]) + b1_ref[l], 0.0)       # (BS, FF=128)
        ff = mm(hdn, w2_ref[l]) + b2_ref[l]
        x = layer_norm(x1 + ff, ln2g_ref[l], ln2b_ref[l])

    # ---- classifier head: AdaptiveAvgPool1d over S + (Linear, BN(eval), ReLU) x2
    pooled = jnp.mean(x.reshape(B, S, E), axis=1)                   # (B, E)

    def bn_relu(v, g, b, m, var):
        return jnp.maximum((v - m) * jax.lax.rsqrt(var + BN_EPS) * g + b, 0.0)

    h2 = bn_relu(mm(pooled, hw2_ref[...]) + hb2_ref[...],
                 hg2_ref[...], hbe2_ref[...], hm2_ref[...], hv2_ref[...])
    h1 = bn_relu(mm(h2, hw1_ref[...]) + hb1_ref[...],
                 hg1_ref[...], hbe1_ref[...], hm1_ref[...], hv1_ref[...])
    # lane-dense (B, 128) padded logits; wrapper slices to NUM_CLASSES
    out_ref[...] = mm(h1, hwc_ref[...]) + hbc_ref[...]


# --------------------------- wrapper ------------------------------------------
def snli_transformer_forward(fp, inputs, attention_padding_mask):
    """Forward pass of SNLI_Transformer (eval mode)."""
    B, S = inputs.shape
    # Embedding lookup + positional encoding kept in plain JAX (gather glue).
    x = jnp.take(fp['embed'], inputs, axis=0) + fp['pos_embed'][:S][None, :, :]
    # Dropout: identity in eval mode.
    negk = attention_padding_mask.astype(jnp.float32) * (-1e9)      # 1.0 == pad key

    args = (x, negk,
            fp['wqkv'], fp['bqkv'], fp['wo'], fp['bo'],
            fp['ln1_g'], fp['ln1_b'], fp['w1'], fp['b1'], fp['w2'], fp['b2'],
            fp['ln2_g'], fp['ln2_b'],
            fp['hw2'], fp['hb2'], fp['hg2'], fp['hbe2'], fp['hm2'], fp['hv2'],
            fp['hw1'], fp['hb1'], fp['hg1'], fp['hbe1'], fp['hm1'], fp['hv1'],
            fp['hwc'], fp['hbc'])

    logits_pad = pl.pallas_call(
        snli_fused_kernel,
        out_shape=jax.ShapeDtypeStruct((B, OUT_PAD), jnp.float32),
        in_specs=[pl.BlockSpec(memory_space=pltpu.MemorySpace.VMEM)] * len(args),
        out_specs=pl.BlockSpec(memory_space=pltpu.MemorySpace.VMEM),
    )(*args)
    return logits_pad[:, :NUM_CLASSES]


# --------------------------- parameter init / prep ----------------------------
def init_params(key):
    keys = jax.random.split(key, 64)
    ki = iter(keys)

    def w(shape, scale=0.1):
        return (scale * jax.random.normal(next(ki), shape)).astype(jnp.float32)

    params = {
        'embed': w((VOCAB, EMB), 0.5),
        'pos_embed': w((MAX_LEN, EMB), 0.1),
    }

    layers = []
    for _ in range(N_LAYERS):
        layers.append(dict(
            wq=w((EMB, EMB)), bq=w((1, EMB)),
            wk=w((EMB, EMB)), bk=w((1, EMB)),
            wv=w((EMB, EMB)), bv=w((1, EMB)),
            wo=w((EMB, EMB)), bo=w((1, EMB)),
            ln1_g=jnp.ones((1, EMB), jnp.float32),
            ln1_b=jnp.zeros((1, EMB), jnp.float32),
            w1=w((EMB, FF)), b1=w((1, FF)),
            w2=w((FF, EMB)), b2=w((1, EMB)),
            ln2_g=jnp.ones((1, EMB), jnp.float32),
            ln2_b=jnp.zeros((1, EMB), jnp.float32),
        ))
    params['layers'] = layers

    params['head'] = dict(
        w2=w((EMB, H2)), b2=w((1, H2)),
        g2=(1.0 + 0.1 * jax.random.normal(next(ki), (1, H2))).astype(jnp.float32),
        be2=w((1, H2)),
        m2=jnp.zeros((1, H2), jnp.float32),   # BatchNorm running mean (eval)
        v2=jnp.ones((1, H2), jnp.float32),    # BatchNorm running var  (eval)
        w1=w((H2, H1)), b1=w((1, H1)),
        g1=(1.0 + 0.1 * jax.random.normal(next(ki), (1, H1))).astype(jnp.float32),
        be1=w((1, H1)),
        m1=jnp.zeros((1, H1), jnp.float32),
        v1=jnp.ones((1, H1), jnp.float32),
        wc=w((H1, NUM_CLASSES)), bc=w((1, NUM_CLASSES)),
    )
    return params


def prepare_fused_params(params):
    """One-time prep: stack per-layer weights, fold 1/sqrt(d) into Wq, cast GEMM
    weights to bf16, pad the classifier to a lane-dense 128-wide output."""
    scale = 1.0 / math.sqrt(HEAD_DIM)
    L = params['layers']

    def stack(name):
        return jnp.stack([lp[name] for lp in L], axis=0)

    wq = stack('wq') * scale          # fold softmax scale into the Q projection
    bq = stack('bq') * scale
    fused = dict(
        embed=params['embed'],
        pos_embed=params['pos_embed'],
        wqkv=jnp.concatenate([wq, stack('wk'), stack('wv')],
                             axis=-1).astype(jnp.bfloat16),          # (L, E, 3E)
        bqkv=jnp.concatenate([bq, stack('bk'), stack('bv')], axis=-1),  # (L, 1, 3E)
        wo=stack('wo').astype(jnp.bfloat16), bo=stack('bo'),
        ln1_g=stack('ln1_g'), ln1_b=stack('ln1_b'),
        w1=stack('w1').astype(jnp.bfloat16), b1=stack('b1'),
        w2=stack('w2').astype(jnp.bfloat16), b2=stack('b2'),
        ln2_g=stack('ln2_g'), ln2_b=stack('ln2_b'),
    )
    hp = params['head']
    wc_pad = jnp.zeros((H1, OUT_PAD), jnp.float32).at[:, :NUM_CLASSES].set(hp['wc'])
    bc_pad = jnp.zeros((1, OUT_PAD), jnp.float32).at[:, :NUM_CLASSES].set(hp['bc'])
    fused.update(
        hw2=hp['w2'].astype(jnp.bfloat16), hb2=hp['b2'],
        hg2=hp['g2'], hbe2=hp['be2'], hm2=hp['m2'], hv2=hp['v2'],
        hw1=hp['w1'].astype(jnp.bfloat16), hb1=hp['b1'],
        hg1=hp['g1'], hbe1=hp['be1'], hm1=hp['m1'], hv1=hp['v1'],
        hwc=wc_pad.astype(jnp.bfloat16), hbc=bc_pad,
    )
    return fused


# ------------------------------ main ------------------------------------------
if __name__ == "__main__":
    key = jax.random.PRNGKey(0)
    pkey, ikey = jax.random.split(key)
    params = init_params(pkey)
    fused_params = prepare_fused_params(params)

    B, S = 4, 8
    inputs = jax.random.randint(ikey, (B, S), 0, VOCAB, dtype=jnp.int32)
    # last two tokens of every sequence are padding (True == ignore, as in PyTorch)
    attention_padding_mask = jnp.zeros((B, S), jnp.bool_).at[:, S - 2:].set(True)

    # TODO(synk): training-mode dropout / batch-stat BatchNorm not implemented
    # (eval-mode semantics only).
    fwd = jax.jit(snli_transformer_forward)
    out = fwd(fused_params, inputs, attention_padding_mask)
    jax.block_until_ready(out)
    assert out.shape == (B, NUM_CLASSES) and out.dtype == jnp.float32
    print("KERNEL_OK")
</pallas_src>

<mosaic_0001>
module attributes {stable_mosaic.version = 11 : i64} {
  func.func @snli_fused_kernel(%arg0: memref<4x8x32xf32, #tpu.memory_space<vmem>>, %arg1: memref<4x8xf32, #tpu.memory_space<vmem>>, %arg2: memref<2x32x96xbf16, #tpu.memory_space<vmem>>, %arg3: memref<2x1x96xf32, #tpu.memory_space<vmem>>, %arg4: memref<2x32x32xbf16, #tpu.memory_space<vmem>>, %arg5: memref<2x1x32xf32, #tpu.memory_space<vmem>>, %arg6: memref<2x1x32xf32, #tpu.memory_space<vmem>>, %arg7: memref<2x1x32xf32, #tpu.memory_space<vmem>>, %arg8: memref<2x32x128xbf16, #tpu.memory_space<vmem>>, %arg9: memref<2x1x128xf32, #tpu.memory_space<vmem>>, %arg10: memref<2x128x32xbf16, #tpu.memory_space<vmem>>, %arg11: memref<2x1x32xf32, #tpu.memory_space<vmem>>, %arg12: memref<2x1x32xf32, #tpu.memory_space<vmem>>, %arg13: memref<2x1x32xf32, #tpu.memory_space<vmem>>, %arg14: memref<32x64xbf16, #tpu.memory_space<vmem>>, %arg15: memref<1x64xf32, #tpu.memory_space<vmem>>, %arg16: memref<1x64xf32, #tpu.memory_space<vmem>>, %arg17: memref<1x64xf32, #tpu.memory_space<vmem>>, %arg18: memref<1x64xf32, #tpu.memory_space<vmem>>, %arg19: memref<1x64xf32, #tpu.memory_space<vmem>>, %arg20: memref<64x32xbf16, #tpu.memory_space<vmem>>, %arg21: memref<1x32xf32, #tpu.memory_space<vmem>>, %arg22: memref<1x32xf32, #tpu.memory_space<vmem>>, %arg23: memref<1x32xf32, #tpu.memory_space<vmem>>, %arg24: memref<1x32xf32, #tpu.memory_space<vmem>>, %arg25: memref<1x32xf32, #tpu.memory_space<vmem>>, %arg26: memref<32x128xbf16, #tpu.memory_space<vmem>>, %arg27: memref<1x128xf32, #tpu.memory_space<vmem>>, %arg28: memref<4x128xf32, #tpu.memory_space<vmem>>) attributes {dimension_semantics = [], scalar_prefetch = 0 : i64, scratch_operands = 0 : i64, tpu.core_type = #tpu.core_type<tc>} {
    %c0 = arith.constant 0 : index
    %c0_0 = arith.constant 0 : index
    %c0_1 = arith.constant 0 : index
    %0 = vector.load %arg0[%c0, %c0_0, %c0_1] : memref<4x8x32xf32, #tpu.memory_space<vmem>>, vector<4x8x32xf32>
    %1 = vector.shape_cast %0 : vector<4x8x32xf32> to vector<32x32xf32>
    %c0_2 = arith.constant 0 : index
    %c0_3 = arith.constant 0 : index
    %2 = vector.load %arg1[%c0_2, %c0_3] : memref<4x8xf32, #tpu.memory_space<vmem>>, vector<4x8xf32>
    %3 = vector.shape_cast %2 : vector<4x8xf32> to vector<4x1x8xf32>
    %4 = vector.shape_cast %3 : vector<4x1x8xf32> to vector<4x1x8xf32>
    %5 = vector.broadcast %4 : vector<4x1x8xf32> to vector<4x8x8xf32>
    %c0_4 = arith.constant 0 : index
    %c0_5 = arith.constant 0 : index
    %c0_6 = arith.constant 0 : index
    %6 = vector.load %arg2[%c0_4, %c0_5, %c0_6] : memref<2x32x96xbf16, #tpu.memory_space<vmem>>, vector<1x32x96xbf16>
    %7 = vector.shape_cast %6 : vector<1x32x96xbf16> to vector<32x96xbf16>
    %8 = arith.truncf %1 : vector<32x32xf32> to vector<32x32xbf16>
    %cst = arith.constant dense<0.000000e+00> : vector<32x96xf32>
    %9 = tpu.matmul %8, %7, %cst {dimension_numbers = #tpu.dot_dimension_numbers<[1], [0], [0], [1], [0, 0, 1, 1], [], []>} : vector<32x32xbf16>, vector<32x96xbf16>, vector<32x96xf32> -> vector<32x96xf32>
    %c0_7 = arith.constant 0 : index
    %c0_8 = arith.constant 0 : index
    %c0_9 = arith.constant 0 : index
    %10 = vector.load %arg3[%c0_7, %c0_8, %c0_9] : memref<2x1x96xf32, #tpu.memory_space<vmem>>, vector<1x1x96xf32>
    %11 = vector.shape_cast %10 : vector<1x1x96xf32> to vector<1x96xf32>
    %12 = vector.broadcast %11 : vector<1x96xf32> to vector<32x96xf32>
    %13 = arith.addf %9, %12 : vector<32x96xf32>
    %14 = vector.shape_cast %13 : vector<32x96xf32> to vector<4x8x96xf32>
    %c0_10 = arith.constant 0 : index
    %c0_11 = arith.constant 0 : index
    %c0_12 = arith.constant 0 : index
    %15 = vector.load %arg4[%c0_10, %c0_11, %c0_12] : memref<2x32x32xbf16, #tpu.memory_space<vmem>>, vector<1x32x32xbf16>
    %16 = vector.shape_cast %15 : vector<1x32x32xbf16> to vector<32x32xbf16>
    %17 = vector.extract_strided_slice %14 {offsets = [0, 0, 0], sizes = [4, 8, 8], strides = [1, 1, 1]} : vector<4x8x96xf32> to vector<4x8x8xf32>
    %18 = vector.extract_strided_slice %14 {offsets = [0, 0, 32], sizes = [4, 8, 8], strides = [1, 1, 1]} : vector<4x8x96xf32> to vector<4x8x8xf32>
    %19 = vector.extract_strided_slice %14 {offsets = [0, 0, 64], sizes = [4, 8, 8], strides = [1, 1, 1]} : vector<4x8x96xf32> to vector<4x8x8xf32>
    %20 = arith.truncf %17 : vector<4x8x8xf32> to vector<4x8x8xbf16>
    %21 = arith.truncf %18 : vector<4x8x8xf32> to vector<4x8x8xbf16>
    "tpu.trace_start"() <{level = 10 : i32, message = "bqd,bkd->bqk"}> : () -> ()
    %cst_13 = arith.constant dense<0.000000e+00> : vector<4x8x8xf32>
    %22 = tpu.matmul %20, %21, %cst_13 {dimension_numbers = #tpu.dot_dimension_numbers<[2], [2], [1], [1], [0, 0, 0, 1, 1, 1], [0], [0]>} : vector<4x8x8xbf16>, vector<4x8x8xbf16>, vector<4x8x8xf32> -> vector<4x8x8xf32>
    "tpu.trace_stop"() : () -> ()
    %23 = arith.addf %22, %5 : vector<4x8x8xf32>
    %cst_14 = arith.constant dense<0xFF800000> : vector<4x8xf32>
    %24 = vector.multi_reduction <maximumf>, %23, %cst_14 [2] : vector<4x8x8xf32> to vector<4x8xf32>
    %25 = vector.shape_cast %24 : vector<4x8xf32> to vector<4x8x1xf32>
    %26 = vector.broadcast %25 : vector<4x8x1xf32> to vector<4x8x8xf32>
    %27 = arith.subf %23, %26 : vector<4x8x8xf32>
    %28 = math.exp %27 : vector<4x8x8xf32>
    %cst_15 = arith.constant dense<0.000000e+00> : vector<4x8xf32>
    %29 = vector.multi_reduction <add>, %28, %cst_15 [2] : vector<4x8x8xf32> to vector<4x8xf32>
    %30 = vector.shape_cast %29 : vector<4x8xf32> to vector<4x8x1xf32>
    %31 = tpu.reciprocal %30 {approx = true} : vector<4x8x1xf32> -> vector<4x8x1xf32>
    %32 = vector.broadcast %31 : vector<4x8x1xf32> to vector<4x8x8xf32>
    %33 = arith.mulf %28, %32 : vector<4x8x8xf32>
    %34 = arith.truncf %33 : vector<4x8x8xf32> to vector<4x8x8xbf16>
    %35 = arith.truncf %19 : vector<4x8x8xf32> to vector<4x8x8xbf16>
    "tpu.trace_start"() <{level = 10 : i32, message = "bqk,bkd->bqd"}> : () -> ()
    %cst_16 = arith.constant dense<0.000000e+00> : vector<4x8x8xf32>
    %36 = tpu.matmul %34, %35, %cst_16 {dimension_numbers = #tpu.dot_dimension_numbers<[2], [1], [1], [2], [0, 0, 0, 1, 1, 2], [0], [0]>} : vector<4x8x8xbf16>, vector<4x8x8xbf16>, vector<4x8x8xf32> -> vector<4x8x8xf32>
    "tpu.trace_stop"() : () -> ()
    %37 = vector.shape_cast %36 : vector<4x8x8xf32> to vector<32x8xf32>
    %38 = vector.extract_strided_slice %16 {offsets = [0, 0], sizes = [8, 32], strides = [1, 1]} : vector<32x32xbf16> to vector<8x32xbf16>
    %39 = arith.truncf %37 : vector<32x8xf32> to vector<32x8xbf16>
    %cst_17 = arith.constant dense<0.000000e+00> : vector<32x32xf32>
    %40 = tpu.matmul %39, %38, %cst_17 {dimension_numbers = #tpu.dot_dimension_numbers<[1], [0], [0], [1], [0, 0, 1, 1], [], []>} : vector<32x8xbf16>, vector<8x32xbf16>, vector<32x32xf32> -> vector<32x32xf32>
    %41 = vector.extract_strided_slice %14 {offsets = [0, 0, 8], sizes = [4, 8, 8], strides = [1, 1, 1]} : vector<4x8x96xf32> to vector<4x8x8xf32>
    %42 = vector.extract_strided_slice %14 {offsets = [0, 0, 40], sizes = [4, 8, 8], strides = [1, 1, 1]} : vector<4x8x96xf32> to vector<4x8x8xf32>
    %43 = vector.extract_strided_slice %14 {offsets = [0, 0, 72], sizes = [4, 8, 8], strides = [1, 1, 1]} : vector<4x8x96xf32> to vector<4x8x8xf32>
    %44 = arith.truncf %41 : vector<4x8x8xf32> to vector<4x8x8xbf16>
    %45 = arith.truncf %42 : vector<4x8x8xf32> to vector<4x8x8xbf16>
    "tpu.trace_start"() <{level = 10 : i32, message = "bqd,bkd->bqk"}> : () -> ()
    %cst_18 = arith.constant dense<0.000000e+00> : vector<4x8x8xf32>
    %46 = tpu.matmul %44, %45, %cst_18 {dimension_numbers = #tpu.dot_dimension_numbers<[2], [2], [1], [1], [0, 0, 0, 1, 1, 1], [0], [0]>} : vector<4x8x8xbf16>, vector<4x8x8xbf16>, vector<4x8x8xf32> -> vector<4x8x8xf32>
    "tpu.trace_stop"() : () -> ()
    %47 = arith.addf %46, %5 : vector<4x8x8xf32>
    %cst_19 = arith.constant dense<0xFF800000> : vector<4x8xf32>
    %48 = vector.multi_reduction <maximumf>, %47, %cst_19 [2] : vector<4x8x8xf32> to vector<4x8xf32>
    %49 = vector.shape_cast %48 : vector<4x8xf32> to vector<4x8x1xf32>
    %50 = vector.broadcast %49 : vector<4x8x1xf32> to vector<4x8x8xf32>
    %51 = arith.subf %47, %50 : vector<4x8x8xf32>
    %52 = math.exp %51 : vector<4x8x8xf32>
    %cst_20 = arith.constant dense<0.000000e+00> : vector<4x8xf32>
    %53 = vector.multi_reduction <add>, %52, %cst_20 [2] : vector<4x8x8xf32> to vector<4x8xf32>
    %54 = vector.shape_cast %53 : vector<4x8xf32> to vector<4x8x1xf32>
    %55 = tpu.reciprocal %54 {approx = true} : vector<4x8x1xf32> -> vector<4x8x1xf32>
    %56 = vector.broadcast %55 : vector<4x8x1xf32> to vector<4x8x8xf32>
    %57 = arith.mulf %52, %56 : vector<4x8x8xf32>
    %58 = arith.truncf %57 : vector<4x8x8xf32> to vector<4x8x8xbf16>
    %59 = arith.truncf %43 : vector<4x8x8xf32> to vector<4x8x8xbf16>
    "tpu.trace_start"() <{level = 10 : i32, message = "bqk,bkd->bqd"}> : () -> ()
    %cst_21 = arith.constant dense<0.000000e+00> : vector<4x8x8xf32>
    %60 = tpu.matmul %58, %59, %cst_21 {dimension_numbers = #tpu.dot_dimension_numbers<[2], [1], [1], [2], [0, 0, 0, 1, 1, 2], [0], [0]>} : vector<4x8x8xbf16>, vector<4x8x8xbf16>, vector<4x8x8xf32> -> vector<4x8x8xf32>
    "tpu.trace_stop"() : () -> ()
    %61 = vector.shape_cast %60 : vector<4x8x8xf32> to vector<32x8xf32>
    %62 = vector.extract_strided_slice %16 {offsets = [8, 0], sizes = [8, 32], strides = [1, 1]} : vector<32x32xbf16> to vector<8x32xbf16>
    %63 = arith.truncf %61 : vector<32x8xf32> to vector<32x8xbf16>
    %cst_22 = arith.constant dense<0.000000e+00> : vector<32x32xf32>
    %64 = tpu.matmul %63, %62, %cst_22 {dimension_numbers = #tpu.dot_dimension_numbers<[1], [0], [0], [1], [0, 0, 1, 1], [], []>} : vector<32x8xbf16>, vector<8x32xbf16>, vector<32x32xf32> -> vector<32x32xf32>
    %65 = arith.addf %40, %64 : vector<32x32xf32>
    %66 = vector.extract_strided_slice %14 {offsets = [0, 0, 16], sizes = [4, 8, 8], strides = [1, 1, 1]} : vector<4x8x96xf32> to vector<4x8x8xf32>
    %67 = vector.extract_strided_slice %14 {offsets = [0, 0, 48], sizes = [4, 8, 8], strides = [1, 1, 1]} : vector<4x8x96xf32> to vector<4x8x8xf32>
    %68 = vector.extract_strided_slice %14 {offsets = [0, 0, 80], sizes = [4, 8, 8], strides = [1, 1, 1]} : vector<4x8x96xf32> to vector<4x8x8xf32>
    %69 = arith.truncf %66 : vector<4x8x8xf32> to vector<4x8x8xbf16>
    %70 = arith.truncf %67 : vector<4x8x8xf32> to vector<4x8x8xbf16>
    "tpu.trace_start"() <{level = 10 : i32, message = "bqd,bkd->bqk"}> : () -> ()
    %cst_23 = arith.constant dense<0.000000e+00> : vector<4x8x8xf32>
    %71 = tpu.matmul %69, %70, %cst_23 {dimension_numbers = #tpu.dot_dimension_numbers<[2], [2], [1], [1], [0, 0, 0, 1, 1, 1], [0], [0]>} : vector<4x8x8xbf16>, vector<4x8x8xbf16>, vector<4x8x8xf32> -> vector<4x8x8xf32>
    "tpu.trace_stop"() : () -> ()
    %72 = arith.addf %71, %5 : vector<4x8x8xf32>
    %cst_24 = arith.constant dense<0xFF800000> : vector<4x8xf32>
    %73 = vector.multi_reduction <maximumf>, %72, %cst_24 [2] : vector<4x8x8xf32> to vector<4x8xf32>
    %74 = vector.shape_cast %73 : vector<4x8xf32> to vector<4x8x1xf32>
    %75 = vector.broadcast %74 : vector<4x8x1xf32> to vector<4x8x8xf32>
    %76 = arith.subf %72, %75 : vector<4x8x8xf32>
    %77 = math.exp %76 : vector<4x8x8xf32>
    %cst_25 = arith.constant dense<0.000000e+00> : vector<4x8xf32>
    %78 = vector.multi_reduction <add>, %77, %cst_25 [2] : vector<4x8x8xf32> to vector<4x8xf32>
    %79 = vector.shape_cast %78 : vector<4x8xf32> to vector<4x8x1xf32>
    %80 = tpu.reciprocal %79 {approx = true} : vector<4x8x1xf32> -> vector<4x8x1xf32>
    %81 = vector.broadcast %80 : vector<4x8x1xf32> to vector<4x8x8xf32>
    %82 = arith.mulf %77, %81 : vector<4x8x8xf32>
    %83 = arith.truncf %82 : vector<4x8x8xf32> to vector<4x8x8xbf16>
    %84 = arith.truncf %68 : vector<4x8x8xf32> to vector<4x8x8xbf16>
    "tpu.trace_start"() <{level = 10 : i32, message = "bqk,bkd->bqd"}> : () -> ()
    %cst_26 = arith.constant dense<0.000000e+00> : vector<4x8x8xf32>
    %85 = tpu.matmul %83, %84, %cst_26 {dimension_numbers = #tpu.dot_dimension_numbers<[2], [1], [1], [2], [0, 0, 0, 1, 1, 2], [0], [0]>} : vector<4x8x8xbf16>, vector<4x8x8xbf16>, vector<4x8x8xf32> -> vector<4x8x8xf32>
    "tpu.trace_stop"() : () -> ()
    %86 = vector.shape_cast %85 : vector<4x8x8xf32> to vector<32x8xf32>
    %87 = vector.extract_strided_slice %16 {offsets = [16, 0], sizes = [8, 32], strides = [1, 1]} : vector<32x32xbf16> to vector<8x32xbf16>
    %88 = arith.truncf %86 : vector<32x8xf32> to vector<32x8xbf16>
    %cst_27 = arith.constant dense<0.000000e+00> : vector<32x32xf32>
    %89 = tpu.matmul %88, %87, %cst_27 {dimension_numbers = #tpu.dot_dimension_numbers<[1], [0], [0], [1], [0, 0, 1, 1], [], []>} : vector<32x8xbf16>, vector<8x32xbf16>, vector<32x32xf32> -> vector<32x32xf32>
    %90 = arith.addf %65, %89 : vector<32x32xf32>
    %91 = vector.extract_strided_slice %14 {offsets = [0, 0, 24], sizes = [4, 8, 8], strides = [1, 1, 1]} : vector<4x8x96xf32> to vector<4x8x8xf32>
    %92 = vector.extract_strided_slice %14 {offsets = [0, 0, 56], sizes = [4, 8, 8], strides = [1, 1, 1]} : vector<4x8x96xf32> to vector<4x8x8xf32>
    %93 = vector.extract_strided_slice %14 {offsets = [0, 0, 88], sizes = [4, 8, 8], strides = [1, 1, 1]} : vector<4x8x96xf32> to vector<4x8x8xf32>
    %94 = arith.truncf %91 : vector<4x8x8xf32> to vector<4x8x8xbf16>
    %95 = arith.truncf %92 : vector<4x8x8xf32> to vector<4x8x8xbf16>
    "tpu.trace_start"() <{level = 10 : i32, message = "bqd,bkd->bqk"}> : () -> ()
    %cst_28 = arith.constant dense<0.000000e+00> : vector<4x8x8xf32>
    %96 = tpu.matmul %94, %95, %cst_28 {dimension_numbers = #tpu.dot_dimension_numbers<[2], [2], [1], [1], [0, 0, 0, 1, 1, 1], [0], [0]>} : vector<4x8x8xbf16>, vector<4x8x8xbf16>, vector<4x8x8xf32> -> vector<4x8x8xf32>
    "tpu.trace_stop"() : () -> ()
    %97 = arith.addf %96, %5 : vector<4x8x8xf32>
    %cst_29 = arith.constant dense<0xFF800000> : vector<4x8xf32>
    %98 = vector.multi_reduction <maximumf>, %97, %cst_29 [2] : vector<4x8x8xf32> to vector<4x8xf32>
    %99 = vector.shape_cast %98 : vector<4x8xf32> to vector<4x8x1xf32>
    %100 = vector.broadcast %99 : vector<4x8x1xf32> to vector<4x8x8xf32>
    %101 = arith.subf %97, %100 : vector<4x8x8xf32>
    %102 = math.exp %101 : vector<4x8x8xf32>
    %cst_30 = arith.constant dense<0.000000e+00> : vector<4x8xf32>
    %103 = vector.multi_reduction <add>, %102, %cst_30 [2] : vector<4x8x8xf32> to vector<4x8xf32>
    %104 = vector.shape_cast %103 : vector<4x8xf32> to vector<4x8x1xf32>
    %105 = tpu.reciprocal %104 {approx = true} : vector<4x8x1xf32> -> vector<4x8x1xf32>
    %106 = vector.broadcast %105 : vector<4x8x1xf32> to vector<4x8x8xf32>
    %107 = arith.mulf %102, %106 : vector<4x8x8xf32>
    %108 = arith.truncf %107 : vector<4x8x8xf32> to vector<4x8x8xbf16>
    %109 = arith.truncf %93 : vector<4x8x8xf32> to vector<4x8x8xbf16>
    "tpu.trace_start"() <{level = 10 : i32, message = "bqk,bkd->bqd"}> : () -> ()
    %cst_31 = arith.constant dense<0.000000e+00> : vector<4x8x8xf32>
    %110 = tpu.matmul %108, %109, %cst_31 {dimension_numbers = #tpu.dot_dimension_numbers<[2], [1], [1], [2], [0, 0, 0, 1, 1, 2], [0], [0]>} : vector<4x8x8xbf16>, vector<4x8x8xbf16>, vector<4x8x8xf32> -> vector<4x8x8xf32>
    "tpu.trace_stop"() : () -> ()
    %111 = vector.shape_cast %110 : vector<4x8x8xf32> to vector<32x8xf32>
    %112 = vector.extract_strided_slice %16 {offsets = [24, 0], sizes = [8, 32], strides = [1, 1]} : vector<32x32xbf16> to vector<8x32xbf16>
    %113 = arith.truncf %111 : vector<32x8xf32> to vector<32x8xbf16>
    %cst_32 = arith.constant dense<0.000000e+00> : vector<32x32xf32>
    %114 = tpu.matmul %113, %112, %cst_32 {dimension_numbers = #tpu.dot_dimension_numbers<[1], [0], [0], [1], [0, 0, 1, 1], [], []>} : vector<32x8xbf16>, vector<8x32xbf16>, vector<32x32xf32> -> vector<32x32xf32>
    %115 = arith.addf %90, %114 : vector<32x32xf32>
    %c0_33 = arith.constant 0 : index
    %c0_34 = arith.constant 0 : index
    %c0_35 = arith.constant 0 : index
    %116 = vector.load %arg5[%c0_33, %c0_34, %c0_35] : memref<2x1x32xf32, #tpu.memory_space<vmem>>, vector<1x1x32xf32>
    %117 = vector.shape_cast %116 : vector<1x1x32xf32> to vector<1x32xf32>
    %118 = vector.broadcast %117 : vector<1x32xf32> to vector<32x32xf32>
    %119 = arith.addf %115, %118 : vector<32x32xf32>
    %120 = arith.addf %1, %119 : vector<32x32xf32>
    %c0_36 = arith.constant 0 : index
    %c0_37 = arith.constant 0 : index
    %c0_38 = arith.constant 0 : index
    %121 = vector.load %arg6[%c0_36, %c0_37, %c0_38] : memref<2x1x32xf32, #tpu.memory_space<vmem>>, vector<1x1x32xf32>
    %122 = vector.shape_cast %121 : vector<1x1x32xf32> to vector<1x32xf32>
    %c0_39 = arith.constant 0 : index
    %c0_40 = arith.constant 0 : index
    %c0_41 = arith.constant 0 : index
    %123 = vector.load %arg7[%c0_39, %c0_40, %c0_41] : memref<2x1x32xf32, #tpu.memory_space<vmem>>, vector<1x1x32xf32>
    %124 = vector.shape_cast %123 : vector<1x1x32xf32> to vector<1x32xf32>
    %cst_42 = arith.constant dense<0.000000e+00> : vector<32xf32>
    %125 = vector.multi_reduction <add>, %120, %cst_42 [1] : vector<32x32xf32> to vector<32xf32>
    %126 = vector.shape_cast %125 : vector<32xf32> to vector<32x1xf32>
    %cst_43 = arith.constant 3.200000e+01 : f32
    %127 = vector.broadcast %cst_43 : f32 to vector<32x1xf32>
    %128 = arith.divf %126, %127 : vector<32x1xf32>
    %129 = vector.broadcast %128 : vector<32x1xf32> to vector<32x32xf32>
    %130 = arith.subf %120, %129 : vector<32x32xf32>
    %131 = arith.mulf %130, %130 : vector<32x32xf32>
    %cst_44 = arith.constant dense<0.000000e+00> : vector<32xf32>
    %132 = vector.multi_reduction <add>, %131, %cst_44 [1] : vector<32x32xf32> to vector<32xf32>
    %133 = vector.shape_cast %132 : vector<32xf32> to vector<32x1xf32>
    %cst_45 = arith.constant 3.200000e+01 : f32
    %134 = vector.broadcast %cst_45 : f32 to vector<32x1xf32>
    %135 = arith.divf %133, %134 : vector<32x1xf32>
    %136 = vector.broadcast %128 : vector<32x1xf32> to vector<32x32xf32>
    %137 = arith.subf %120, %136 : vector<32x32xf32>
    %cst_46 = arith.constant 9.99999974E-6 : f32
    %138 = vector.broadcast %cst_46 : f32 to vector<32x1xf32>
    %139 = arith.addf %135, %138 : vector<32x1xf32>
    %140 = math.rsqrt %139 : vector<32x1xf32>
    %141 = vector.broadcast %140 : vector<32x1xf32> to vector<32x32xf32>
    %142 = arith.mulf %137, %141 : vector<32x32xf32>
    %143 = vector.broadcast %122 : vector<1x32xf32> to vector<32x32xf32>
    %144 = arith.mulf %142, %143 : vector<32x32xf32>
    %145 = vector.broadcast %124 : vector<1x32xf32> to vector<32x32xf32>
    %146 = arith.addf %144, %145 : vector<32x32xf32>
    %c0_47 = arith.constant 0 : index
    %c0_48 = arith.constant 0 : index
    %c0_49 = arith.constant 0 : index
    %147 = vector.load %arg8[%c0_47, %c0_48, %c0_49] : memref<2x32x128xbf16, #tpu.memory_space<vmem>>, vector<1x32x128xbf16>
    %148 = vector.shape_cast %147 : vector<1x32x128xbf16> to vector<32x128xbf16>
    %149 = arith.truncf %146 : vector<32x32xf32> to vector<32x32xbf16>
    %cst_50 = arith.constant dense<0.000000e+00> : vector<32x128xf32>
    %150 = tpu.matmul %149, %148, %cst_50 {dimension_numbers = #tpu.dot_dimension_numbers<[1], [0], [0], [1], [0, 0, 1, 1], [], []>} : vector<32x32xbf16>, vector<32x128xbf16>, vector<32x128xf32> -> vector<32x128xf32>
    %c0_51 = arith.constant 0 : index
    %c0_52 = arith.constant 0 : index
    %c0_53 = arith.constant 0 : index
    %151 = vector.load %arg9[%c0_51, %c0_52, %c0_53] : memref<2x1x128xf32, #tpu.memory_space<vmem>>, vector<1x1x128xf32>
    %152 = vector.shape_cast %151 : vector<1x1x128xf32> to vector<1x128xf32>
    %153 = vector.broadcast %152 : vector<1x128xf32> to vector<32x128xf32>
    %154 = arith.addf %150, %153 : vector<32x128xf32>
    %cst_54 = arith.constant 0.000000e+00 : f32
    %155 = vector.broadcast %cst_54 : f32 to vector<32x128xf32>
    %156 = arith.maximumf %154, %155 : vector<32x128xf32>
    %c0_55 = arith.constant 0 : index
    %c0_56 = arith.constant 0 : index
    %c0_57 = arith.constant 0 : index
    %157 = vector.load %arg10[%c0_55, %c0_56, %c0_57] : memref<2x128x32xbf16, #tpu.memory_space<vmem>>, vector<1x128x32xbf16>
    %158 = vector.shape_cast %157 : vector<1x128x32xbf16> to vector<128x32xbf16>
    %159 = arith.truncf %156 : vector<32x128xf32> to vector<32x128xbf16>
    %cst_58 = arith.constant dense<0.000000e+00> : vector<32x32xf32>
    %160 = tpu.matmul %159, %158, %cst_58 {dimension_numbers = #tpu.dot_dimension_numbers<[1], [0], [0], [1], [0, 0, 1, 1], [], []>} : vector<32x128xbf16>, vector<128x32xbf16>, vector<32x32xf32> -> vector<32x32xf32>
    %c0_59 = arith.constant 0 : index
    %c0_60 = arith.constant 0 : index
    %c0_61 = arith.constant 0 : index
    %161 = vector.load %arg11[%c0_59, %c0_60, %c0_61] : memref<2x1x32xf32, #tpu.memory_space<vmem>>, vector<1x1x32xf32>
    %162 = vector.shape_cast %161 : vector<1x1x32xf32> to vector<1x32xf32>
    %163 = vector.broadcast %162 : vector<1x32xf32> to vector<32x32xf32>
    %164 = arith.addf %160, %163 : vector<32x32xf32>
    %165 = arith.addf %146, %164 : vector<32x32xf32>
    %c0_62 = arith.constant 0 : index
    %c0_63 = arith.constant 0 : index
    %c0_64 = arith.constant 0 : index
    %166 = vector.load %arg12[%c0_62, %c0_63, %c0_64] : memref<2x1x32xf32, #tpu.memory_space<vmem>>, vector<1x1x32xf32>
    %167 = vector.shape_cast %166 : vector<1x1x32xf32> to vector<1x32xf32>
    %c0_65 = arith.constant 0 : index
    %c0_66 = arith.constant 0 : index
    %c0_67 = arith.constant 0 : index
    %168 = vector.load %arg13[%c0_65, %c0_66, %c0_67] : memref<2x1x32xf32, #tpu.memory_space<vmem>>, vector<1x1x32xf32>
    %169 = vector.shape_cast %168 : vector<1x1x32xf32> to vector<1x32xf32>
    %cst_68 = arith.constant dense<0.000000e+00> : vector<32xf32>
    %170 = vector.multi_reduction <add>, %165, %cst_68 [1] : vector<32x32xf32> to vector<32xf32>
    %171 = vector.shape_cast %170 : vector<32xf32> to vector<32x1xf32>
    %cst_69 = arith.constant 3.200000e+01 : f32
    %172 = vector.broadcast %cst_69 : f32 to vector<32x1xf32>
    %173 = arith.divf %171, %172 : vector<32x1xf32>
    %174 = vector.broadcast %173 : vector<32x1xf32> to vector<32x32xf32>
    %175 = arith.subf %165, %174 : vector<32x32xf32>
    %176 = arith.mulf %175, %175 : vector<32x32xf32>
    %cst_70 = arith.constant dense<0.000000e+00> : vector<32xf32>
    %177 = vector.multi_reduction <add>, %176, %cst_70 [1] : vector<32x32xf32> to vector<32xf32>
    %178 = vector.shape_cast %177 : vector<32xf32> to vector<32x1xf32>
    %cst_71 = arith.constant 3.200000e+01 : f32
    %179 = vector.broadcast %cst_71 : f32 to vector<32x1xf32>
    %180 = arith.divf %178, %179 : vector<32x1xf32>
    %181 = vector.broadcast %173 : vector<32x1xf32> to vector<32x32xf32>
    %182 = arith.subf %165, %181 : vector<32x32xf32>
    %cst_72 = arith.constant 9.99999974E-6 : f32
    %183 = vector.broadcast %cst_72 : f32 to vector<32x1xf32>
    %184 = arith.addf %180, %183 : vector<32x1xf32>
    %185 = math.rsqrt %184 : vector<32x1xf32>
    %186 = vector.broadcast %185 : vector<32x1xf32> to vector<32x32xf32>
    %187 = arith.mulf %182, %186 : vector<32x32xf32>
    %188 = vector.broadcast %167 : vector<1x32xf32> to vector<32x32xf32>
    %189 = arith.mulf %187, %188 : vector<32x32xf32>
    %190 = vector.broadcast %169 : vector<1x32xf32> to vector<32x32xf32>
    %191 = arith.addf %189, %190 : vector<32x32xf32>
    %c1 = arith.constant 1 : index
    %c0_73 = arith.constant 0 : index
    %c0_74 = arith.constant 0 : index
    %192 = vector.load %arg2[%c1, %c0_73, %c0_74] : memref<2x32x96xbf16, #tpu.memory_space<vmem>>, vector<1x32x96xbf16>
    %193 = vector.shape_cast %192 : vector<1x32x96xbf16> to vector<32x96xbf16>
    %194 = arith.truncf %191 : vector<32x32xf32> to vector<32x32xbf16>
    %cst_75 = arith.constant dense<0.000000e+00> : vector<32x96xf32>
    %195 = tpu.matmul %194, %193, %cst_75 {dimension_numbers = #tpu.dot_dimension_numbers<[1], [0], [0], [1], [0, 0, 1, 1], [], []>} : vector<32x32xbf16>, vector<32x96xbf16>, vector<32x96xf32> -> vector<32x96xf32>
    %c1_76 = arith.constant 1 : index
    %c0_77 = arith.constant 0 : index
    %c0_78 = arith.constant 0 : index
    %196 = vector.load %arg3[%c1_76, %c0_77, %c0_78] : memref<2x1x96xf32, #tpu.memory_space<vmem>>, vector<1x1x96xf32>
    %197 = vector.shape_cast %196 : vector<1x1x96xf32> to vector<1x96xf32>
    %198 = vector.broadcast %197 : vector<1x96xf32> to vector<32x96xf32>
    %199 = arith.addf %195, %198 : vector<32x96xf32>
    %200 = vector.shape_cast %199 : vector<32x96xf32> to vector<4x8x96xf32>
    %c1_79 = arith.constant 1 : index
    %c0_80 = arith.constant 0 : index
    %c0_81 = arith.constant 0 : index
    %201 = vector.load %arg4[%c1_79, %c0_80, %c0_81] : memref<2x32x32xbf16, #tpu.memory_space<vmem>>, vector<1x32x32xbf16>
    %202 = vector.shape_cast %201 : vector<1x32x32xbf16> to vector<32x32xbf16>
    %203 = vector.extract_strided_slice %200 {offsets = [0, 0, 0], sizes = [4, 8, 8], strides = [1, 1, 1]} : vector<4x8x96xf32> to vector<4x8x8xf32>
    %204 = vector.extract_strided_slice %200 {offsets = [0, 0, 32], sizes = [4, 8, 8], strides = [1, 1, 1]} : vector<4x8x96xf32> to vector<4x8x8xf32>
    %205 = vector.extract_strided_slice %200 {offsets = [0, 0, 64], sizes = [4, 8, 8], strides = [1, 1, 1]} : vector<4x8x96xf32> to vector<4x8x8xf32>
    %206 = arith.truncf %203 : vector<4x8x8xf32> to vector<4x8x8xbf16>
    %207 = arith.truncf %204 : vector<4x8x8xf32> to vector<4x8x8xbf16>
    "tpu.trace_start"() <{level = 10 : i32, message = "bqd,bkd->bqk"}> : () -> ()
    %cst_82 = arith.constant dense<0.000000e+00> : vector<4x8x8xf32>
    %208 = tpu.matmul %206, %207, %cst_82 {dimension_numbers = #tpu.dot_dimension_numbers<[2], [2], [1], [1], [0, 0, 0, 1, 1, 1], [0], [0]>} : vector<4x8x8xbf16>, vector<4x8x8xbf16>, vector<4x8x8xf32> -> vector<4x8x8xf32>
    "tpu.trace_stop"() : () -> ()
    %209 = arith.addf %208, %5 : vector<4x8x8xf32>
    %cst_83 = arith.constant dense<0xFF800000> : vector<4x8xf32>
    %210 = vector.multi_reduction <maximumf>, %209, %cst_83 [2] : vector<4x8x8xf32> to vector<4x8xf32>
    %211 = vector.shape_cast %210 : vector<4x8xf32> to vector<4x8x1xf32>
    %212 = vector.broadcast %211 : vector<4x8x1xf32> to vector<4x8x8xf32>
    %213 = arith.subf %209, %212 : vector<4x8x8xf32>
    %214 = math.exp %213 : vector<4x8x8xf32>
    %cst_84 = arith.constant dense<0.000000e+00> : vector<4x8xf32>
    %215 = vector.multi_reduction <add>, %214, %cst_84 [2] : vector<4x8x8xf32> to vector<4x8xf32>
    %216 = vector.shape_cast %215 : vector<4x8xf32> to vector<4x8x1xf32>
    %217 = tpu.reciprocal %216 {approx = true} : vector<4x8x1xf32> -> vector<4x8x1xf32>
    %218 = vector.broadcast %217 : vector<4x8x1xf32> to vector<4x8x8xf32>
    %219 = arith.mulf %214, %218 : vector<4x8x8xf32>
    %220 = arith.truncf %219 : vector<4x8x8xf32> to vector<4x8x8xbf16>
    %221 = arith.truncf %205 : vector<4x8x8xf32> to vector<4x8x8xbf16>
    "tpu.trace_start"() <{level = 10 : i32, message = "bqk,bkd->bqd"}> : () -> ()
    %cst_85 = arith.constant dense<0.000000e+00> : vector<4x8x8xf32>
    %222 = tpu.matmul %220, %221, %cst_85 {dimension_numbers = #tpu.dot_dimension_numbers<[2], [1], [1], [2], [0, 0, 0, 1, 1, 2], [0], [0]>} : vector<4x8x8xbf16>, vector<4x8x8xbf16>, vector<4x8x8xf32> -> vector<4x8x8xf32>
    "tpu.trace_stop"() : () -> ()
    %223 = vector.shape_cast %222 : vector<4x8x8xf32> to vector<32x8xf32>
    %224 = vector.extract_strided_slice %202 {offsets = [0, 0], sizes = [8, 32], strides = [1, 1]} : vector<32x32xbf16> to vector<8x32xbf16>
    %225 = arith.truncf %223 : vector<32x8xf32> to vector<32x8xbf16>
    %cst_86 = arith.constant dense<0.000000e+00> : vector<32x32xf32>
    %226 = tpu.matmul %225, %224, %cst_86 {dimension_numbers = #tpu.dot_dimension_numbers<[1], [0], [0], [1], [0, 0, 1, 1], [], []>} : vector<32x8xbf16>, vector<8x32xbf16>, vector<32x32xf32> -> vector<32x32xf32>
    %227 = vector.extract_strided_slice %200 {offsets = [0, 0, 8], sizes = [4, 8, 8], strides = [1, 1, 1]} : vector<4x8x96xf32> to vector<4x8x8xf32>
    %228 = vector.extract_strided_slice %200 {offsets = [0, 0, 40], sizes = [4, 8, 8], strides = [1, 1, 1]} : vector<4x8x96xf32> to vector<4x8x8xf32>
    %229 = vector.extract_strided_slice %200 {offsets = [0, 0, 72], sizes = [4, 8, 8], strides = [1, 1, 1]} : vector<4x8x96xf32> to vector<4x8x8xf32>
    %230 = arith.truncf %227 : vector<4x8x8xf32> to vector<4x8x8xbf16>
    %231 = arith.truncf %228 : vector<4x8x8xf32> to vector<4x8x8xbf16>
    "tpu.trace_start"() <{level = 10 : i32, message = "bqd,bkd->bqk"}> : () -> ()
    %cst_87 = arith.constant dense<0.000000e+00> : vector<4x8x8xf32>
    %232 = tpu.matmul %230, %231, %cst_87 {dimension_numbers = #tpu.dot_dimension_numbers<[2], [2], [1], [1], [0, 0, 0, 1, 1, 1], [0], [0]>} : vector<4x8x8xbf16>, vector<4x8x8xbf16>, vector<4x8x8xf32> -> vector<4x8x8xf32>
    "tpu.trace_stop"() : () -> ()
    %233 = arith.addf %232, %5 : vector<4x8x8xf32>
    %cst_88 = arith.constant dense<0xFF800000> : vector<4x8xf32>
    %234 = vector.multi_reduction <maximumf>, %233, %cst_88 [2] : vector<4x8x8xf32> to vector<4x8xf32>
    %235 = vector.shape_cast %234 : vector<4x8xf32> to vector<4x8x1xf32>
    %236 = vector.broadcast %235 : vector<4x8x1xf32> to vector<4x8x8xf32>
    %237 = arith.subf %233, %236 : vector<4x8x8xf32>
    %238 = math.exp %237 : vector<4x8x8xf32>
    %cst_89 = arith.constant dense<0.000000e+00> : vector<4x8xf32>
    %239 = vector.multi_reduction <add>, %238, %cst_89 [2] : vector<4x8x8xf32> to vector<4x8xf32>
    %240 = vector.shape_cast %239 : vector<4x8xf32> to vector<4x8x1xf32>
    %241 = tpu.reciprocal %240 {approx = true} : vector<4x8x1xf32> -> vector<4x8x1xf32>
    %242 = vector.broadcast %241 : vector<4x8x1xf32> to vector<4x8x8xf32>
    %243 = arith.mulf %238, %242 : vector<4x8x8xf32>
    %244 = arith.truncf %243 : vector<4x8x8xf32> to vector<4x8x8xbf16>
    %245 = arith.truncf %229 : vector<4x8x8xf32> to vector<4x8x8xbf16>
    "tpu.trace_start"() <{level = 10 : i32, message = "bqk,bkd->bqd"}> : () -> ()
    %cst_90 = arith.constant dense<0.000000e+00> : vector<4x8x8xf32>
    %246 = tpu.matmul %244, %245, %cst_90 {dimension_numbers = #tpu.dot_dimension_numbers<[2], [1], [1], [2], [0, 0, 0, 1, 1, 2], [0], [0]>} : vector<4x8x8xbf16>, vector<4x8x8xbf16>, vector<4x8x8xf32> -> vector<4x8x8xf32>
    "tpu.trace_stop"() : () -> ()
    %247 = vector.shape_cast %246 : vector<4x8x8xf32> to vector<32x8xf32>
    %248 = vector.extract_strided_slice %202 {offsets = [8, 0], sizes = [8, 32], strides = [1, 1]} : vector<32x32xbf16> to vector<8x32xbf16>
    %249 = arith.truncf %247 : vector<32x8xf32> to vector<32x8xbf16>
    %cst_91 = arith.constant dense<0.000000e+00> : vector<32x32xf32>
    %250 = tpu.matmul %249, %248, %cst_91 {dimension_numbers = #tpu.dot_dimension_numbers<[1], [0], [0], [1], [0, 0, 1, 1], [], []>} : vector<32x8xbf16>, vector<8x32xbf16>, vector<32x32xf32> -> vector<32x32xf32>
    %251 = arith.addf %226, %250 : vector<32x32xf32>
    %252 = vector.extract_strided_slice %200 {offsets = [0, 0, 16], sizes = [4, 8, 8], strides = [1, 1, 1]} : vector<4x8x96xf32> to vector<4x8x8xf32>
    %253 = vector.extract_strided_slice %200 {offsets = [0, 0, 48], sizes = [4, 8, 8], strides = [1, 1, 1]} : vector<4x8x96xf32> to vector<4x8x8xf32>
    %254 = vector.extract_strided_slice %200 {offsets = [0, 0, 80], sizes = [4, 8, 8], strides = [1, 1, 1]} : vector<4x8x96xf32> to vector<4x8x8xf32>
    %255 = arith.truncf %252 : vector<4x8x8xf32> to vector<4x8x8xbf16>
    %256 = arith.truncf %253 : vector<4x8x8xf32> to vector<4x8x8xbf16>
    "tpu.trace_start"() <{level = 10 : i32, message = "bqd,bkd->bqk"}> : () -> ()
    %cst_92 = arith.constant dense<0.000000e+00> : vector<4x8x8xf32>
    %257 = tpu.matmul %255, %256, %cst_92 {dimension_numbers = #tpu.dot_dimension_numbers<[2], [2], [1], [1], [0, 0, 0, 1, 1, 1], [0], [0]>} : vector<4x8x8xbf16>, vector<4x8x8xbf16>, vector<4x8x8xf32> -> vector<4x8x8xf32>
    "tpu.trace_stop"() : () -> ()
    %258 = arith.addf %257, %5 : vector<4x8x8xf32>
    %cst_93 = arith.constant dense<0xFF800000> : vector<4x8xf32>
    %259 = vector.multi_reduction <maximumf>, %258, %cst_93 [2] : vector<4x8x8xf32> to vector<4x8xf32>
    %260 = vector.shape_cast %259 : vector<4x8xf32> to vector<4x8x1xf32>
    %261 = vector.broadcast %260 : vector<4x8x1xf32> to vector<4x8x8xf32>
    %262 = arith.subf %258, %261 : vector<4x8x8xf32>
    %263 = math.exp %262 : vector<4x8x8xf32>
    %cst_94 = arith.constant dense<0.000000e+00> : vector<4x8xf32>
    %264 = vector.multi_reduction <add>, %263, %cst_94 [2] : vector<4x8x8xf32> to vector<4x8xf32>
    %265 = vector.shape_cast %264 : vector<4x8xf32> to vector<4x8x1xf32>
    %266 = tpu.reciprocal %265 {approx = true} : vector<4x8x1xf32> -> vector<4x8x1xf32>
    %267 = vector.broadcast %266 : vector<4x8x1xf32> to vector<4x8x8xf32>
    %268 = arith.mulf %263, %267 : vector<4x8x8xf32>
    %269 = arith.truncf %268 : vector<4x8x8xf32> to vector<4x8x8xbf16>
    %270 = arith.truncf %254 : vector<4x8x8xf32> to vector<4x8x8xbf16>
    "tpu.trace_start"() <{level = 10 : i32, message = "bqk,bkd->bqd"}> : () -> ()
    %cst_95 = arith.constant dense<0.000000e+00> : vector<4x8x8xf32>
    %271 = tpu.matmul %269, %270, %cst_95 {dimension_numbers = #tpu.dot_dimension_numbers<[2], [1], [1], [2], [0, 0, 0, 1, 1, 2], [0], [0]>} : vector<4x8x8xbf16>, vector<4x8x8xbf16>, vector<4x8x8xf32> -> vector<4x8x8xf32>
    "tpu.trace_stop"() : () -> ()
    %272 = vector.shape_cast %271 : vector<4x8x8xf32> to vector<32x8xf32>
    %273 = vector.extract_strided_slice %202 {offsets = [16, 0], sizes = [8, 32], strides = [1, 1]} : vector<32x32xbf16> to vector<8x32xbf16>
    %274 = arith.truncf %272 : vector<32x8xf32> to vector<32x8xbf16>
    %cst_96 = arith.constant dense<0.000000e+00> : vector<32x32xf32>
    %275 = tpu.matmul %274, %273, %cst_96 {dimension_numbers = #tpu.dot_dimension_numbers<[1], [0], [0], [1], [0, 0, 1, 1], [], []>} : vector<32x8xbf16>, vector<8x32xbf16>, vector<32x32xf32> -> vector<32x32xf32>
    %276 = arith.addf %251, %275 : vector<32x32xf32>
    %277 = vector.extract_strided_slice %200 {offsets = [0, 0, 24], sizes = [4, 8, 8], strides = [1, 1, 1]} : vector<4x8x96xf32> to vector<4x8x8xf32>
    %278 = vector.extract_strided_slice %200 {offsets = [0, 0, 56], sizes = [4, 8, 8], strides = [1, 1, 1]} : vector<4x8x96xf32> to vector<4x8x8xf32>
    %279 = vector.extract_strided_slice %200 {offsets = [0, 0, 88], sizes = [4, 8, 8], strides = [1, 1, 1]} : vector<4x8x96xf32> to vector<4x8x8xf32>
    %280 = arith.truncf %277 : vector<4x8x8xf32> to vector<4x8x8xbf16>
    %281 = arith.truncf %278 : vector<4x8x8xf32> to vector<4x8x8xbf16>
    "tpu.trace_start"() <{level = 10 : i32, message = "bqd,bkd->bqk"}> : () -> ()
    %cst_97 = arith.constant dense<0.000000e+00> : vector<4x8x8xf32>
    %282 = tpu.matmul %280, %281, %cst_97 {dimension_numbers = #tpu.dot_dimension_numbers<[2], [2], [1], [1], [0, 0, 0, 1, 1, 1], [0], [0]>} : vector<4x8x8xbf16>, vector<4x8x8xbf16>, vector<4x8x8xf32> -> vector<4x8x8xf32>
    "tpu.trace_stop"() : () -> ()
    %283 = arith.addf %282, %5 : vector<4x8x8xf32>
    %cst_98 = arith.constant dense<0xFF800000> : vector<4x8xf32>
    %284 = vector.multi_reduction <maximumf>, %283, %cst_98 [2] : vector<4x8x8xf32> to vector<4x8xf32>
    %285 = vector.shape_cast %284 : vector<4x8xf32> to vector<4x8x1xf32>
    %286 = vector.broadcast %285 : vector<4x8x1xf32> to vector<4x8x8xf32>
    %287 = arith.subf %283, %286 : vector<4x8x8xf32>
    %288 = math.exp %287 : vector<4x8x8xf32>
    %cst_99 = arith.constant dense<0.000000e+00> : vector<4x8xf32>
    %289 = vector.multi_reduction <add>, %288, %cst_99 [2] : vector<4x8x8xf32> to vector<4x8xf32>
    %290 = vector.shape_cast %289 : vector<4x8xf32> to vector<4x8x1xf32>
    %291 = tpu.reciprocal %290 {approx = true} : vector<4x8x1xf32> -> vector<4x8x1xf32>
    %292 = vector.broadcast %291 : vector<4x8x1xf32> to vector<4x8x8xf32>
    %293 = arith.mulf %288, %292 : vector<4x8x8xf32>
    %294 = arith.truncf %293 : vector<4x8x8xf32> to vector<4x8x8xbf16>
    %295 = arith.truncf %279 : vector<4x8x8xf32> to vector<4x8x8xbf16>
    "tpu.trace_start"() <{level = 10 : i32, message = "bqk,bkd->bqd"}> : () -> ()
    %cst_100 = arith.constant dense<0.000000e+00> : vector<4x8x8xf32>
    %296 = tpu.matmul %294, %295, %cst_100 {dimension_numbers = #tpu.dot_dimension_numbers<[2], [1], [1], [2], [0, 0, 0, 1, 1, 2], [0], [0]>} : vector<4x8x8xbf16>, vector<4x8x8xbf16>, vector<4x8x8xf32> -> vector<4x8x8xf32>
    "tpu.trace_stop"() : () -> ()
    %297 = vector.shape_cast %296 : vector<4x8x8xf32> to vector<32x8xf32>
    %298 = vector.extract_strided_slice %202 {offsets = [24, 0], sizes = [8, 32], strides = [1, 1]} : vector<32x32xbf16> to vector<8x32xbf16>
    %299 = arith.truncf %297 : vector<32x8xf32> to vector<32x8xbf16>
    %cst_101 = arith.constant dense<0.000000e+00> : vector<32x32xf32>
    %300 = tpu.matmul %299, %298, %cst_101 {dimension_numbers = #tpu.dot_dimension_numbers<[1], [0], [0], [1], [0, 0, 1, 1], [], []>} : vector<32x8xbf16>, vector<8x32xbf16>, vector<32x32xf32> -> vector<32x32xf32>
    %301 = arith.addf %276, %300 : vector<32x32xf32>
    %c1_102 = arith.constant 1 : index
    %c0_103 = arith.constant 0 : index
    %c0_104 = arith.constant 0 : index
    %302 = vector.load %arg5[%c1_102, %c0_103, %c0_104] : memref<2x1x32xf32, #tpu.memory_space<vmem>>, vector<1x1x32xf32>
    %303 = vector.shape_cast %302 : vector<1x1x32xf32> to vector<1x32xf32>
    %304 = vector.broadcast %303 : vector<1x32xf32> to vector<32x32xf32>
    %305 = arith.addf %301, %304 : vector<32x32xf32>
    %306 = arith.addf %191, %305 : vector<32x32xf32>
    %c1_105 = arith.constant 1 : index
    %c0_106 = arith.constant 0 : index
    %c0_107 = arith.constant 0 : index
    %307 = vector.load %arg6[%c1_105, %c0_106, %c0_107] : memref<2x1x32xf32, #tpu.memory_space<vmem>>, vector<1x1x32xf32>
    %308 = vector.shape_cast %307 : vector<1x1x32xf32> to vector<1x32xf32>
    %c1_108 = arith.constant 1 : index
    %c0_109 = arith.constant 0 : index
    %c0_110 = arith.constant 0 : index
    %309 = vector.load %arg7[%c1_108, %c0_109, %c0_110] : memref<2x1x32xf32, #tpu.memory_space<vmem>>, vector<1x1x32xf32>
    %310 = vector.shape_cast %309 : vector<1x1x32xf32> to vector<1x32xf32>
    %cst_111 = arith.constant dense<0.000000e+00> : vector<32xf32>
    %311 = vector.multi_reduction <add>, %306, %cst_111 [1] : vector<32x32xf32> to vector<32xf32>
    %312 = vector.shape_cast %311 : vector<32xf32> to vector<32x1xf32>
    %cst_112 = arith.constant 3.200000e+01 : f32
    %313 = vector.broadcast %cst_112 : f32 to vector<32x1xf32>
    %314 = arith.divf %312, %313 : vector<32x1xf32>
    %315 = vector.broadcast %314 : vector<32x1xf32> to vector<32x32xf32>
    %316 = arith.subf %306, %315 : vector<32x32xf32>
    %317 = arith.mulf %316, %316 : vector<32x32xf32>
    %cst_113 = arith.constant dense<0.000000e+00> : vector<32xf32>
    %318 = vector.multi_reduction <add>, %317, %cst_113 [1] : vector<32x32xf32> to vector<32xf32>
    %319 = vector.shape_cast %318 : vector<32xf32> to vector<32x1xf32>
    %cst_114 = arith.constant 3.200000e+01 : f32
    %320 = vector.broadcast %cst_114 : f32 to vector<32x1xf32>
    %321 = arith.divf %319, %320 : vector<32x1xf32>
    %322 = vector.broadcast %314 : vector<32x1xf32> to vector<32x32xf32>
    %323 = arith.subf %306, %322 : vector<32x32xf32>
    %cst_115 = arith.constant 9.99999974E-6 : f32
    %324 = vector.broadcast %cst_115 : f32 to vector<32x1xf32>
    %325 = arith.addf %321, %324 : vector<32x1xf32>
    %326 = math.rsqrt %325 : vector<32x1xf32>
    %327 = vector.broadcast %326 : vector<32x1xf32> to vector<32x32xf32>
    %328 = arith.mulf %323, %327 : vector<32x32xf32>
    %329 = vector.broadcast %308 : vector<1x32xf32> to vector<32x32xf32>
    %330 = arith.mulf %328, %329 : vector<32x32xf32>
    %331 = vector.broadcast %310 : vector<1x32xf32> to vector<32x32xf32>
    %332 = arith.addf %330, %331 : vector<32x32xf32>
    %c1_116 = arith.constant 1 : index
    %c0_117 = arith.constant 0 : index
    %c0_118 = arith.constant 0 : index
    %333 = vector.load %arg8[%c1_116, %c0_117, %c0_118] : memref<2x32x128xbf16, #tpu.memory_space<vmem>>, vector<1x32x128xbf16>
    %334 = vector.shape_cast %333 : vector<1x32x128xbf16> to vector<32x128xbf16>
    %335 = arith.truncf %332 : vector<32x32xf32> to vector<32x32xbf16>
    %cst_119 = arith.constant dense<0.000000e+00> : vector<32x128xf32>
    %336 = tpu.matmul %335, %334, %cst_119 {dimension_numbers = #tpu.dot_dimension_numbers<[1], [0], [0], [1], [0, 0, 1, 1], [], []>} : vector<32x32xbf16>, vector<32x128xbf16>, vector<32x128xf32> -> vector<32x128xf32>
    %c1_120 = arith.constant 1 : index
    %c0_121 = arith.constant 0 : index
    %c0_122 = arith.constant 0 : index
    %337 = vector.load %arg9[%c1_120, %c0_121, %c0_122] : memref<2x1x128xf32, #tpu.memory_space<vmem>>, vector<1x1x128xf32>
    %338 = vector.shape_cast %337 : vector<1x1x128xf32> to vector<1x128xf32>
    %339 = vector.broadcast %338 : vector<1x128xf32> to vector<32x128xf32>
    %340 = arith.addf %336, %339 : vector<32x128xf32>
    %cst_123 = arith.constant 0.000000e+00 : f32
    %341 = vector.broadcast %cst_123 : f32 to vector<32x128xf32>
    %342 = arith.maximumf %340, %341 : vector<32x128xf32>
    %c1_124 = arith.constant 1 : index
    %c0_125 = arith.constant 0 : index
    %c0_126 = arith.constant 0 : index
    %343 = vector.load %arg10[%c1_124, %c0_125, %c0_126] : memref<2x128x32xbf16, #tpu.memory_space<vmem>>, vector<1x128x32xbf16>
    %344 = vector.shape_cast %343 : vector<1x128x32xbf16> to vector<128x32xbf16>
    %345 = arith.truncf %342 : vector<32x128xf32> to vector<32x128xbf16>
    %cst_127 = arith.constant dense<0.000000e+00> : vector<32x32xf32>
    %346 = tpu.matmul %345, %344, %cst_127 {dimension_numbers = #tpu.dot_dimension_numbers<[1], [0], [0], [1], [0, 0, 1, 1], [], []>} : vector<32x128xbf16>, vector<128x32xbf16>, vector<32x32xf32> -> vector<32x32xf32>
    %c1_128 = arith.constant 1 : index
    %c0_129 = arith.constant 0 : index
    %c0_130 = arith.constant 0 : index
    %347 = vector.load %arg11[%c1_128, %c0_129, %c0_130] : memref<2x1x32xf32, #tpu.memory_space<vmem>>, vector<1x1x32xf32>
    %348 = vector.shape_cast %347 : vector<1x1x32xf32> to vector<1x32xf32>
    %349 = vector.broadcast %348 : vector<1x32xf32> to vector<32x32xf32>
    %350 = arith.addf %346, %349 : vector<32x32xf32>
    %351 = arith.addf %332, %350 : vector<32x32xf32>
    %c1_131 = arith.constant 1 : index
    %c0_132 = arith.constant 0 : index
    %c0_133 = arith.constant 0 : index
    %352 = vector.load %arg12[%c1_131, %c0_132, %c0_133] : memref<2x1x32xf32, #tpu.memory_space<vmem>>, vector<1x1x32xf32>
    %353 = vector.shape_cast %352 : vector<1x1x32xf32> to vector<1x32xf32>
    %c1_134 = arith.constant 1 : index
    %c0_135 = arith.constant 0 : index
    %c0_136 = arith.constant 0 : index
    %354 = vector.load %arg13[%c1_134, %c0_135, %c0_136] : memref<2x1x32xf32, #tpu.memory_space<vmem>>, vector<1x1x32xf32>
    %355 = vector.shape_cast %354 : vector<1x1x32xf32> to vector<1x32xf32>
    %cst_137 = arith.constant dense<0.000000e+00> : vector<32xf32>
    %356 = vector.multi_reduction <add>, %351, %cst_137 [1] : vector<32x32xf32> to vector<32xf32>
    %357 = vector.shape_cast %356 : vector<32xf32> to vector<32x1xf32>
    %cst_138 = arith.constant 3.200000e+01 : f32
    %358 = vector.broadcast %cst_138 : f32 to vector<32x1xf32>
    %359 = arith.divf %357, %358 : vector<32x1xf32>
    %360 = vector.broadcast %359 : vector<32x1xf32> to vector<32x32xf32>
    %361 = arith.subf %351, %360 : vector<32x32xf32>
    %362 = arith.mulf %361, %361 : vector<32x32xf32>
    %cst_139 = arith.constant dense<0.000000e+00> : vector<32xf32>
    %363 = vector.multi_reduction <add>, %362, %cst_139 [1] : vector<32x32xf32> to vector<32xf32>
    %364 = vector.shape_cast %363 : vector<32xf32> to vector<32x1xf32>
    %cst_140 = arith.constant 3.200000e+01 : f32
    %365 = vector.broadcast %cst_140 : f32 to vector<32x1xf32>
    %366 = arith.divf %364, %365 : vector<32x1xf32>
    %367 = vector.broadcast %359 : vector<32x1xf32> to vector<32x32xf32>
    %368 = arith.subf %351, %367 : vector<32x32xf32>
    %cst_141 = arith.constant 9.99999974E-6 : f32
    %369 = vector.broadcast %cst_141 : f32 to vector<32x1xf32>
    %370 = arith.addf %366, %369 : vector<32x1xf32>
    %371 = math.rsqrt %370 : vector<32x1xf32>
    %372 = vector.broadcast %371 : vector<32x1xf32> to vector<32x32xf32>
    %373 = arith.mulf %368, %372 : vector<32x32xf32>
    %374 = vector.broadcast %353 : vector<1x32xf32> to vector<32x32xf32>
    %375 = arith.mulf %373, %374 : vector<32x32xf32>
    %376 = vector.broadcast %355 : vector<1x32xf32> to vector<32x32xf32>
    %377 = arith.addf %375, %376 : vector<32x32xf32>
    %378 = vector.shape_cast %377 : vector<32x32xf32> to vector<4x8x32xf32>
    %cst_142 = arith.constant dense<0.000000e+00> : vector<4x32xf32>
    %379 = vector.multi_reduction <add>, %378, %cst_142 [1] : vector<4x8x32xf32> to vector<4x32xf32>
    %cst_143 = arith.constant 8.000000e+00 : f32
    %380 = vector.broadcast %cst_143 : f32 to vector<4x32xf32>
    %381 = arith.divf %379, %380 : vector<4x32xf32>
    %c0_144 = arith.constant 0 : index
    %c0_145 = arith.constant 0 : index
    %382 = vector.load %arg14[%c0_144, %c0_145] : memref<32x64xbf16, #tpu.memory_space<vmem>>, vector<32x64xbf16>
    %383 = arith.truncf %381 : vector<4x32xf32> to vector<4x32xbf16>
    %cst_146 = arith.constant dense<0.000000e+00> : vector<4x64xf32>
    %384 = tpu.matmul %383, %382, %cst_146 {dimension_numbers = #tpu.dot_dimension_numbers<[1], [0], [0], [1], [0, 0, 1, 1], [], []>} : vector<4x32xbf16>, vector<32x64xbf16>, vector<4x64xf32> -> vector<4x64xf32>
    %c0_147 = arith.constant 0 : index
    %c0_148 = arith.constant 0 : index
    %385 = vector.load %arg15[%c0_147, %c0_148] : memref<1x64xf32, #tpu.memory_space<vmem>>, vector<1x64xf32>
    %386 = vector.broadcast %385 : vector<1x64xf32> to vector<4x64xf32>
    %387 = arith.addf %384, %386 : vector<4x64xf32>
    %c0_149 = arith.constant 0 : index
    %c0_150 = arith.constant 0 : index
    %388 = vector.load %arg16[%c0_149, %c0_150] : memref<1x64xf32, #tpu.memory_space<vmem>>, vector<1x64xf32>
    %c0_151 = arith.constant 0 : index
    %c0_152 = arith.constant 0 : index
    %389 = vector.load %arg17[%c0_151, %c0_152] : memref<1x64xf32, #tpu.memory_space<vmem>>, vector<1x64xf32>
    %c0_153 = arith.constant 0 : index
    %c0_154 = arith.constant 0 : index
    %390 = vector.load %arg18[%c0_153, %c0_154] : memref<1x64xf32, #tpu.memory_space<vmem>>, vector<1x64xf32>
    %c0_155 = arith.constant 0 : index
    %c0_156 = arith.constant 0 : index
    %391 = vector.load %arg19[%c0_155, %c0_156] : memref<1x64xf32, #tpu.memory_space<vmem>>, vector<1x64xf32>
    %392 = vector.broadcast %390 : vector<1x64xf32> to vector<4x64xf32>
    %393 = arith.subf %387, %392 : vector<4x64xf32>
    %cst_157 = arith.constant 9.99999974E-6 : f32
    %394 = vector.broadcast %cst_157 : f32 to vector<1x64xf32>
    %395 = arith.addf %391, %394 : vector<1x64xf32>
    %396 = math.rsqrt %395 : vector<1x64xf32>
    %397 = vector.broadcast %396 : vector<1x64xf32> to vector<4x64xf32>
    %398 = arith.mulf %393, %397 : vector<4x64xf32>
    %399 = vector.broadcast %388 : vector<1x64xf32> to vector<4x64xf32>
    %400 = arith.mulf %398, %399 : vector<4x64xf32>
    %401 = vector.broadcast %389 : vector<1x64xf32> to vector<4x64xf32>
    %402 = arith.addf %400, %401 : vector<4x64xf32>
    %cst_158 = arith.constant 0.000000e+00 : f32
    %403 = vector.broadcast %cst_158 : f32 to vector<4x64xf32>
    %404 = arith.maximumf %402, %403 : vector<4x64xf32>
    %c0_159 = arith.constant 0 : index
    %c0_160 = arith.constant 0 : index
    %405 = vector.load %arg20[%c0_159, %c0_160] : memref<64x32xbf16, #tpu.memory_space<vmem>>, vector<64x32xbf16>
    %406 = arith.truncf %404 : vector<4x64xf32> to vector<4x64xbf16>
    %cst_161 = arith.constant dense<0.000000e+00> : vector<4x32xf32>
    %407 = tpu.matmul %406, %405, %cst_161 {dimension_numbers = #tpu.dot_dimension_numbers<[1], [0], [0], [1], [0, 0, 1, 1], [], []>} : vector<4x64xbf16>, vector<64x32xbf16>, vector<4x32xf32> -> vector<4x32xf32>
    %c0_162 = arith.constant 0 : index
    %c0_163 = arith.constant 0 : index
    %408 = vector.load %arg21[%c0_162, %c0_163] : memref<1x32xf32, #tpu.memory_space<vmem>>, vector<1x32xf32>
    %409 = vector.broadcast %408 : vector<1x32xf32> to vector<4x32xf32>
    %410 = arith.addf %407, %409 : vector<4x32xf32>
    %c0_164 = arith.constant 0 : index
    %c0_165 = arith.constant 0 : index
    %411 = vector.load %arg22[%c0_164, %c0_165] : memref<1x32xf32, #tpu.memory_space<vmem>>, vector<1x32xf32>
    %c0_166 = arith.constant 0 : index
    %c0_167 = arith.constant 0 : index
    %412 = vector.load %arg23[%c0_166, %c0_167] : memref<1x32xf32, #tpu.memory_space<vmem>>, vector<1x32xf32>
    %c0_168 = arith.constant 0 : index
    %c0_169 = arith.constant 0 : index
    %413 = vector.load %arg24[%c0_168, %c0_169] : memref<1x32xf32, #tpu.memory_space<vmem>>, vector<1x32xf32>
    %c0_170 = arith.constant 0 : index
    %c0_171 = arith.constant 0 : index
    %414 = vector.load %arg25[%c0_170, %c0_171] : memref<1x32xf32, #tpu.memory_space<vmem>>, vector<1x32xf32>
    %415 = vector.broadcast %413 : vector<1x32xf32> to vector<4x32xf32>
    %416 = arith.subf %410, %415 : vector<4x32xf32>
    %cst_172 = arith.constant 9.99999974E-6 : f32
    %417 = vector.broadcast %cst_172 : f32 to vector<1x32xf32>
    %418 = arith.addf %414, %417 : vector<1x32xf32>
    %419 = math.rsqrt %418 : vector<1x32xf32>
    %420 = vector.broadcast %419 : vector<1x32xf32> to vector<4x32xf32>
    %421 = arith.mulf %416, %420 : vector<4x32xf32>
    %422 = vector.broadcast %411 : vector<1x32xf32> to vector<4x32xf32>
    %423 = arith.mulf %421, %422 : vector<4x32xf32>
    %424 = vector.broadcast %412 : vector<1x32xf32> to vector<4x32xf32>
    %425 = arith.addf %423, %424 : vector<4x32xf32>
    %cst_173 = arith.constant 0.000000e+00 : f32
    %426 = vector.broadcast %cst_173 : f32 to vector<4x32xf32>
    %427 = arith.maximumf %425, %426 : vector<4x32xf32>
    %c0_174 = arith.constant 0 : index
    %c0_175 = arith.constant 0 : index
    %428 = vector.load %arg26[%c0_174, %c0_175] : memref<32x128xbf16, #tpu.memory_space<vmem>>, vector<32x128xbf16>
    %429 = arith.truncf %427 : vector<4x32xf32> to vector<4x32xbf16>
    %cst_176 = arith.constant dense<0.000000e+00> : vector<4x128xf32>
    %430 = tpu.matmul %429, %428, %cst_176 {dimension_numbers = #tpu.dot_dimension_numbers<[1], [0], [0], [1], [0, 0, 1, 1], [], []>} : vector<4x32xbf16>, vector<32x128xbf16>, vector<4x128xf32> -> vector<4x128xf32>
    %c0_177 = arith.constant 0 : index
    %c0_178 = arith.constant 0 : index
    %431 = vector.load %arg27[%c0_177, %c0_178] : memref<1x128xf32, #tpu.memory_space<vmem>>, vector<1x128xf32>
    %432 = vector.broadcast %431 : vector<1x128xf32> to vector<4x128xf32>
    %433 = arith.addf %430, %432 : vector<4x128xf32>
    %c0_179 = arith.constant 0 : index
    %c0_180 = arith.constant 0 : index
    %434 = vector.load %arg28[%c0_179, %c0_180] : memref<4x128xf32, #tpu.memory_space<vmem>>, vector<4x128xf32>
    tpu.vector_store %arg28[%c0_179, %c0_180], %433 {strides = array<i32>} : memref<4x128xf32, #tpu.memory_space<vmem>>, vector<4x128xf32>,
    return
  }
}

</mosaic_0001>

<bundles_post_ra>
// kernel: snli_transformer_forward.1
= control target key start
LH: loop header
LB: loop body
LE: loop exit
PB: predicated region body
PF: predicated region fallthrough
CT: control target
= control target key end

     0   :  { %s7841_s0 = inlined_call_operand.vmem [shape: f32[4,8,32], index: 0, kind: input, shape index: {}]   ;;  %s7842_s1 = inlined_call_operand.vmem [shape: f32[4,8], index: 1, kind: input, shape index: {}]   ;;  %s7843_s2 = inlined_call_operand.vmem [shape: bf16[2,32,96], index: 2, kind: input, shape index: {}]   ;;  %s7844_s3 = inlined_call_operand.vmem [shape: f32[2,1,96], index: 3, kind: input, shape index: {}]   ;;  %s7845_s4 = inlined_call_operand.vmem [shape: bf16[2,32,32], index: 4, kind: input, shape index: {}]   ;;  %s7846_s5 = inlined_call_operand.vmem [shape: f32[2,1,32], index: 5, kind: input, shape index: {}]   ;;  %s7847_s6 = inlined_call_operand.vmem [shape: f32[2,1,32], index: 6, kind: input, shape index: {}]   ;;  %s7848_s7 = inlined_call_operand.vmem [shape: f32[2,1,32], index: 7, kind: input, shape index: {}]   ;;  %s7849_s8 = inlined_call_operand.vmem [shape: bf16[2,32,128], index: 8, kind: input, shape index: {}]   ;;  %s7850_s9 = inlined_call_operand.vmem [shape: f32[2,1,128], index: 9, kind: input, shape index: {}]   ;;  %s7851_s10 = inlined_call_operand.vmem [shape: bf16[2,128,32], index: 10, kind: input, shape index: {}]   ;;  %s7852_s11 = inlined_call_operand.vmem [shape: f32[2,1,32], index: 11, kind: input, shape index: {}]   ;;  %s7853_s12 = inlined_call_operand.vmem [shape: f32[2,1,32], index: 12, kind: input, shape index: {}]   ;;  %s7854_s13 = inlined_call_operand.vmem [shape: f32[2,1,32], index: 13, kind: input, shape index: {}]   ;;  %s7855_s14 = inlined_call_operand.vmem [shape: bf16[32,64], index: 14, kind: input, shape index: {}]   ;;  %s7856_s15 = inlined_call_operand.vmem [shape: f32[1,64], index: 15, kind: input, shape index: {}]   ;;  %s7857_s16 = inlined_call_operand.vmem [shape: f32[1,64], index: 16, kind: input, shape index: {}]   ;;  %s7858_s17 = inlined_call_operand.vmem [shape: f32[1,64], index: 17, kind: input, shape index: {}]   ;;  %s7859_s18 = inlined_call_operand.vmem [shape: f32[1,64], index: 18, kind: input, shape index: {}]   ;;  %s7860_s19 = inlined_call_operand.vmem [shape: f32[1,64], index: 19, kind: input, shape index: {}]   ;;  %s7861_s20 = inlined_call_operand.vmem [shape: bf16[64,32], index: 20, kind: input, shape index: {}]   ;;  %s7862_s21 = inlined_call_operand.vmem [shape: f32[1,32], index: 21, kind: input, shape index: {}]   ;;  %s7863_s22 = inlined_call_operand.vmem [shape: f32[1,32], index: 22, kind: input, shape index: {}]   ;;  %s7864_s23 = inlined_call_operand.vmem [shape: f32[1,32], index: 23, kind: input, shape index: {}]   ;;  %s7865_s24 = inlined_call_operand.vmem [shape: f32[1,32], index: 24, kind: input, shape index: {}]   ;;  %s7866_s25 = inlined_call_operand.vmem [shape: f32[1,32], index: 25, kind: input, shape index: {}]   ;;  %s7867_s26 = inlined_call_operand.vmem [shape: bf16[32,128], index: 26, kind: input, shape index: {}]   ;;  %s7868_s27 = inlined_call_operand.vmem [shape: f32[1,128], index: 27, kind: input, shape index: {}]   ;;  %s7869_s28 = inlined_call_operand.hbm [shape: f32[4,128], index: 28, kind: output, shape index: {}]  }
   0x1   :  { %7904 = sst [smem:[#allocation5_spill]] %s7841_s0 }
   0x2   :  { %7905 = sst [smem:[#allocation6_spill]] %s7842_s1 }
   0x3   :  { %7906 = sst [smem:[#allocation7_spill]] %s7843_s2 }
   0x4   :  { %7907 = sst [smem:[#allocation8_spill]] %s7844_s3 }
   0x5   :  { %7908 = sst [smem:[#allocation9_spill]] %s7845_s4 }
   0x6   :  { %7909 = sst [smem:[#allocation10_spill]] %s7846_s5 }
   0x7   :  { %7910 = sst [smem:[#allocation11_spill]] %s7847_s6 }
   0x8   :  { %7911 = sst [smem:[#allocation12_spill]] %s7848_s7 }
   0x9   :  { %7912 = sst [smem:[#allocation13_spill]] %s7849_s8 }
   0xa   :  { %7913 = sst [smem:[#allocation14_spill]] %s7850_s9 }
   0xb   :  { %7914 = sst [smem:[#allocation15_spill]] %s7851_s10 }
   0xc   :  { %7915 = sst [smem:[#allocation16_spill]] %s7852_s11 }
   0xd   :  { %7916 = sst [smem:[#allocation17_spill]] %s7853_s12 }
   0xe   :  { %s7917_s9 = sld [smem:[#allocation7_spill]]  ;;  %vm166_vm0 = vcmask 261120  }
   0xf   :  { %s7918_s0 = sld [smem:[#allocation5_spill]] }
  0x14   :  { %v6380_v0 = vld [vmem:[%s7917_s9 + $0x8] sm:$0xff]   ;;  %v6381_v1 = vld [vmem:[%s7917_s9] sm:$0xff]  }
  0x15   :  { %5825 = vmatprep.subr.bf16.mxu0 %v6380_v0  ;;  %v91_v2 = vld [vmem:[%s7918_s0] sm:$0xff]  ;;  %v92_v3 = vld [vmem:[%s7918_s0 + $0x8] sm:$0xff]  ;;  %v93_v4 = vld [vmem:[%s7918_s0 + $0x10] sm:$0xff] }
  0x16   :  { %5826 = vmatpush3.bf16.msra.mxu0 %v6380_v0  ;;  %v145_v5 = vpack.c.bf16 %v92_v3, %v91_v2  ;;  %v94_v6 = vld [vmem:[%s7918_s0 + $0x18] sm:$0xff] }
  0x17   :  { %5827 = vmatprep.subr.bf16.mxu0 %v6381_v1  ;;  %v146_v7 = vpack.c.bf16 %v94_v6, %v93_v4 }
  0x18   :  { %5829 = vmatprep.mubr.msk.bf16.mxu0 %vm166_vm0, %v145_v5 }
  0x1a   :  { %5828 = vmatpush3.bf16.msra.mxu0 %v6381_v1 }
  0x1d   :  { %5830 = vmatmul.mubr.msk.bf16.vlgmr.msra.gmra.mxu0 %vm166_vm0, %v146_v7 }
  0x1e   :  { %33 = vsyncpa [#allocation3], 0  ;;  %v6602_v8 = vmov 0.0   ;;  %s7919_s5 = sld [smem:[#allocation8_spill]]  ;;  %vm6603_vm1 = vmmov 0   ;;  %s7902_s30 = smov 96   ;;  %v108_v32 = vlaneseq }
  0x1f   :  { %5833 = vmatprep.subr.bf16.mxu1 %v6602_v8  ;;  %5839 = vmatprep.subr.bf16.mxu0 %v6602_v8  ;;  %vm233_vm2 = vcmask 64512   ;;  %v6605_v30 = vmov 1966171168   ;;  %s7920_s10 = sld [smem:[#allocation6_spill]]  ;;  %s7900_s11 = smov 64   ;;  %vm480_vm3 = vcmask 1043456  }
  0x20   :  { %5835 = vmatprep.mubr.msk.bf16.mxu1 %vm6603_vm1, %v6602_v8  ;;  %5841 = vmatprep.mubr.msk.bf16.mxu0 %vm6603_vm1, %v6602_v8  ;;  %v106_v31 = vunpack.c.l.s4 %v6605_v30  ;;  %v109_v34 = vshrl.u32 %v108_v32, 7  ;;  %s7898_s29 = smov 88   ;;  %s7896_s2 = smov 120   ;;  %vm5143_vm4 = vcmask 1041409   ;;  %vm5145_vm5 = vcmask 1042434  }
  0x21   :  { %s7894_s7 = smov 56   ;;  %s7892_s12 = smov 80   ;;  %vm5147_vm6 = vcmask 1043459   ;;  %vm5280_vm7 = vcmask 523264  }
  0x22   :  { %v107_v33 = vunpack.c.0.s8 %v106_v31  ;;  %v6834_v38 = vsub.s32 0, %v109_v34  ;;  %s7890_s1 = smov 112   ;;  %s7921_s3 = sld [smem:[#allocation9_spill]] }
  0x23   :  { %s7888_s4 = smov 48   ;;  %s7886_s8 = smov 72  }
  0x24   :  { %v5442_v9 = vld [vmem:[%s7919_s5] ss:$0 sm:$0xff]  ;;  %v110_v35 = vsub.s32 %v107_v33, %v109_v34  ;;  %s7882_s6 = smov 104  }
  0x25   :  { %v5441_v36 = vld.sshfl [vmem:[%s7920_s10] sm:$0x33 pattern:$0x75316420]  ;;  %s7926_s10 = sld [smem:[#allocation12_spill]] }
  0x26   :  { %v111_v37 = vrot.slane %v5441_v36, %v110_v35  ;;  %v104_v39 = vcombine.high %v5441_v36, %v5441_v36 }
  0x28   :  { %v6837_v40 = vrot.slane %v111_v37, %v6834_v38  ;;  %v118_v41 = vrot.slane %v104_v39, %v110_v35  ;;  %v119_v45 = vcombine.high %v111_v37, %v111_v37 }
  0x2a   :  { %v6841_v44 = vrot.slane %v118_v41, %v6834_v38  ;;  %v6846_v51 = vrot.slane %v119_v45, %v6834_v38  ;;  %v120_v52 = vcombine.high %v118_v41, %v118_v41 }
  0x2c   :  { %v6851_v59 = vrot.slane %v120_v52, %v6834_v38 }
  0xdd   :  { %v5831_v10 = vpop.f32.mrf.mxu0 }
  0xde   :  { %v216_v11 = vadd.f32 %v5831_v10, %v5442_v9 }
  0xdf   :  { %v207_v12 = vpop.f32.mrf.mxu0 }
  0xe0   :  { %v6791_v13 = vpack.c.bf16 %v216_v11, %v216_v11  ;;  %v208_v14 = vadd.f32 %v5442_v9, %v207_v12 }
  0xe1   :  { %v5832_v15 = vpop.f32.mrf.mxu0 }
  0xe2   :  { %v6793_v16 = vpack.c.bf16 %v208_v14, %v208_v14  ;;  %v219_v17 = vadd.f32 %v5832_v15, %v5442_v9  ;;  %330 = vrot.lane.b32.xlu1 %v6791_v13, %s7902_s30 }
  0xe3   :  { %v210_v18 = vpop.f32.mrf.mxu0 }
  0xe4   :  { %v6797_v19 = vpack.c.bf16 %v219_v17, %v219_v17  ;;  %v211_v20 = vadd.f32 %v5442_v9, %v210_v18  ;;  %231 = vrot.lane.b32.xlu0 %v6793_v16, %s7902_s30 }
  0xe6   :  { %v6801_v21 = vpack.c.bf16 %v211_v20, %v211_v20  ;;  %379 = vrot.lane.b32.xlu1 %v6797_v19, %s7902_s30 }
  0xe8   :  { %281 = vrot.lane.b32.xlu0 %v6801_v21, %s7902_s30  ;;  %s7927_s30 = sld [smem:[#allocation14_spill]] }
 0x154   :  { %v331_v24 = vpop.permute.xlu1 %330 }
 0x155   :  { %v336_v27 = vsel %vm233_vm2, %v331_v24, 0 }
 0x156   :  { %v232_v22 = vpop.permute.xlu0 %231 }
 0x157   :  { %v238_v23 = vsel %vm233_vm2, %v232_v22, 0 }
 0x158   :  { %5834 = vmatpush3.bf16.xpose.msra.mxu1 %v238_v23  ;;  %v380_v28 = vpop.permute.xlu1 %379 }
 0x159   :  { %5845 = vmatprep.subr.bf16.mxu1 %v6602_v8  ;;  %v385_v29 = vsel %vm233_vm2, %v380_v28, 0 }
 0x15a   :  { %v282_v25 = vpop.permute.xlu0 %281 }
 0x15b   :  { %v287_v26 = vsel %vm233_vm2, %v282_v25, 0 }
 0x15c   :  { %5840 = vmatpush3.bf16.xpose.msra.mxu0 %v287_v26 }
 0x15d   :  { %5851 = vmatprep.subr.bf16.mxu0 %v6602_v8 }
 0x15f   :  { %5836 = vmatmul.mubr.msk.bf16.vlgmr.msra.gmra.mxu1 %vm233_vm2, %v6793_v16 }
 0x160   :  { %5846 = vmatpush3.bf16.xpose.msra.mxu1 %v336_v27  ;;  %5847 = vmatprep.mubr.msk.bf16.mxu1 %vm6603_vm1, %v6602_v8 }
 0x161   :  { %5857 = vmatprep.subr.bf16.mxu1 %v6602_v8 }
 0x163   :  { %5842 = vmatmul.mubr.msk.bf16.vlgmr.msra.gmra.mxu0 %vm233_vm2, %v6801_v21 }
 0x164   :  { %5852 = vmatpush3.bf16.xpose.msra.mxu0 %v385_v29  ;;  %5853 = vmatprep.mubr.msk.bf16.mxu0 %vm6603_vm1, %v6602_v8 }
 0x165   :  { %5863 = vmatprep.subr.bf16.mxu0 %v6602_v8 }
 0x167   :  { %5848 = vmatmul.mubr.msk.bf16.vlgmr.msra.gmra.mxu1 %vm233_vm2, %v6791_v13 }
 0x168   :  { %5859 = vmatprep.mubr.msk.bf16.mxu1 %vm6603_vm1, %v6602_v8 }
 0x16b   :  { %5854 = vmatmul.mubr.msk.bf16.vlgmr.msra.gmra.mxu0 %vm233_vm2, %v6797_v19 }
 0x16c   :  { %5865 = vmatprep.mubr.msk.bf16.mxu0 %vm6603_vm1, %v6602_v8 }
 0x21f   :  { %v274_v42 = vpop.f32.mrf.mxu1 }
 0x220   :  { %v275_v43 = vadd.f32 %v274_v42, %v6837_v40 }
 0x221   :  { %v5837_v46 = vpop.f32.mrf.mxu1 }
 0x222   :  { %v427_v47 = vsel %vm233_vm2, %v275_v43, -inf }
 0x223   :  { %428 = vmax.xlane.f32.xlu0 %v427_v47  ;;  %v277_v48 = vpop.f32.mrf.mxu1  ;;  %v323_v49 = vpop.f32.mrf.mxu0 }
 0x224   :  { %v324_v50 = vadd.f32 %v323_v49, %v6841_v44 }
 0x225   :  { %v5838_v53 = vpop.f32.mrf.mxu1  ;;  %v5843_v54 = vpop.f32.mrf.mxu0 }
 0x226   :  { %v430_v55 = vsel %vm233_vm2, %v324_v50, -inf }
 0x227   :  { %v372_v56 = vpop.f32.mrf.mxu1  ;;  %431 = vmax.xlane.f32.xlu1 %v430_v55  ;;  %v326_v57 = vpop.f32.mrf.mxu0 }
 0x228   :  { %v373_v58 = vadd.f32 %v372_v56, %v6846_v51 }
 0x229   :  { %v5844_v60 = vpop.f32.mrf.mxu0  ;;  %v5849_v61 = vpop.f32.mrf.mxu1 }
 0x22a   :  { %v433_v62 = vsel %vm233_vm2, %v373_v58, -inf }
 0x22b   :  { %434 = vmax.xlane.f32.xlu0 %v433_v62  ;;  %v375_v63 = vpop.f32.mrf.mxu1  ;;  %v421_v0 = vpop.f32.mrf.mxu0 }
 0x22c   :  { %v422_v1 = vadd.f32 %v421_v0, %v6851_v59 }
 0x22d   :  { %v5850_v2 = vpop.f32.mrf.mxu1  ;;  %v5855_v3 = vpop.f32.mrf.mxu0 }
 0x22e   :  { %v436_v4 = vsel %vm233_vm2, %v422_v1, -inf }
 0x22f   :  { %437 = vmax.xlane.f32.xlu0 %v436_v4  ;;  %v424_v5 = vpop.f32.mrf.mxu0 }
 0x231   :  { %v5856_v6 = vpop.f32.mrf.mxu0 }
 0x238   :  { %475 = vrot.lane.b32.xlu1 %v6793_v16, %s7900_s11 }
 0x2ac   :  { %v429_v7 = vpop.xlane.xlu0 %428 }
 0x2ad   :  { %v439_v9 = vsub.f32 %v275_v43, %v429_v7 }
 0x2af   :  { %v443_v10 = vmul.f32 1.442695, %v439_v9 }
 0x2b0   :  { %v432_v11 = vpop.xlane.xlu1 %431 }
 0x2b1   :  { %6412 = vpow2.f32 %v443_v10  ;;  %v440_v12 = vsub.f32 %v324_v50, %v432_v11 }
 0x2b3   :  { %v445_v14 = vmul.f32 1.442695, %v440_v12 }
 0x2b4   :  { %v476_v15 = vpop.permute.xlu1 %475  ;;  %v435_v24 = vpop.xlane.xlu0 %434 }
 0x2b5   :  { %6414 = vpow2.f32 %v445_v14  ;;  %v482_v17 = vsel %vm480_vm3, %v476_v15, 0  ;;  %v441_v26 = vsub.f32 %v373_v58, %v435_v24 }
 0x2b6   :  { %5858 = vmatpush3.bf16.msra.mxu1 %v482_v17 }
 0x2b7   :  { %5869 = vmatprep.subr.bf16.mxu1 %v6602_v8  ;;  %v447_v28 = vmul.f32 1.442695, %v441_v26 }
 0x2b8   :  { %v438_v25 = vpop.xlane.xlu0 %437 }
 0x2b9   :  { %v442_v27 = vsub.f32 %v422_v1, %v438_v25  ;;  %6416 = vpow2.f32 %v447_v28 }
 0x2bb   :  { %v449_v29 = vmul.f32 1.442695, %v442_v27 }
 0x2bd   :  { %6418 = vpow2.f32 %v449_v29 }
 0x2be   :  { %v6413_v18 = vpop.eup %6412 }
 0x2bf   :  { %v451_v20 = vsel %vm233_vm2, %v6413_v18, 0.0 }
 0x2c0   :  { %452 = vadd.xlane.f32.xlu1 %v451_v20 }
 0x2c2   :  { %v6415_v22 = vpop.eup %6414 }
 0x2c3   :  { %v454_v23 = vsel %vm233_vm2, %v6415_v22, 0.0 }
 0x2c4   :  { %455 = vadd.xlane.f32.xlu0 %v454_v23 }
 0x2c6   :  { %v6417_v30 = vpop.eup %6416 }
 0x2c7   :  { %v457_v32 = vsel %vm233_vm2, %v6417_v30, 0.0 }
 0x2ca   :  { %v6419_v31 = vpop.eup %6418 }
 0x2cb   :  { %v460_v33 = vsel %vm233_vm2, %v6419_v31, 0.0 }
 0x2d1   :  { %572 = vrot.lane.b32.xlu1 %v6791_v13, %s7900_s11 }
 0x2d5   :  { %620 = vrot.lane.b32.xlu1 %v6797_v19, %s7900_s11 }
 0x2da   :  { %524 = vrot.lane.b32.xlu0 %v6801_v21, %s7900_s11  ;;  %s7934_s11 = smov 56  }
 0x2f9   :  { %458 = vadd.xlane.f32.xlu1 %v457_v32  ;;  %461 = vadd.xlane.f32.xlu0 %v460_v33 }
 0x30a   :  { %722 = vrot.lane.b32.xlu1 %v6801_v21, %s7898_s29 }
 0x30e   :  { %720 = vrot.lane.b32.xlu1 %v6801_v21, %s7896_s2 }
 0x30f   :  { %672 = vrot.lane.b32.xlu0 %v6793_v16, %s7898_s29 }
 0x312   :  { %822 = vrot.lane.b32.xlu1 %v6797_v19, %s7898_s29 }
 0x313   :  { %670 = vrot.lane.b32.xlu0 %v6793_v16, %s7896_s2 }
 0x316   :  { %820 = vrot.lane.b32.xlu1 %v6797_v19, %s7896_s2 }
 0x317   :  { %772 = vrot.lane.b32.xlu0 %v6791_v13, %s7898_s29  ;;  %s7930_s29 = smov 96  }
 0x31b   :  { %770 = vrot.lane.b32.xlu0 %v6791_v13, %s7896_s2  ;;  %s7924_s2 = sld [smem:[#allocation15_spill]] }
 0x349   :  { %v453_v34 = vpop.xlane.xlu1 %452 }
 0x34a   :  { %6420 = vrcp.f32 %v453_v34 }
 0x34d   :  { %v456_v35 = vpop.xlane.xlu0 %455  ;;  %v573_v41 = vpop.permute.xlu1 %572 }
 0x34e   :  { %6422 = vrcp.f32 %v456_v35  ;;  %v578_v46 = vsel %vm480_vm3, %v573_v41, 0 }
 0x351   :  { %v525_v36 = vpop.permute.xlu0 %524  ;;  %v621_v48 = vpop.permute.xlu1 %620 }
 0x352   :  { %v530_v37 = vsel %vm480_vm3, %v525_v36, 0  ;;  %v626_v50 = vsel %vm480_vm3, %v621_v48, 0 }
 0x353   :  { %5864 = vmatpush3.bf16.msra.mxu0 %v530_v37 }
 0x354   :  { %5875 = vmatprep.subr.bf16.mxu0 %v6602_v8 }
 0x357   :  { %v6421_v39 = vpop.eup %6420 }
 0x358   :  { %v467_v42 = vmul.f32 %v6421_v39, %v6413_v18 }
 0x35a   :  { %v471_v43 = vpack.c.bf16 %v467_v42, %v467_v42 }
 0x35b   :  { %v6423_v45 = vpop.eup %6422 }
 0x35c   :  { %5860 = vmatmul.mubr.msk.bf16.vlgmr.msra.gmra.mxu1 %vm233_vm2, %v471_v43  ;;  %v468_v47 = vmul.f32 %v6423_v45, %v6415_v22 }
 0x35d   :  { %5870 = vmatpush3.bf16.msra.mxu1 %v578_v46  ;;  %5871 = vmatprep.mubr.msk.bf16.mxu1 %vm6603_vm1, %v6602_v8 }
 0x35e   :  { %v472_v49 = vpack.c.bf16 %v468_v47, %v468_v47  ;;  %5881 = vmatprep.subr.bf16.mxu1 %v6602_v8 }
 0x360   :  { %5866 = vmatmul.mubr.msk.bf16.vlgmr.msra.gmra.mxu0 %vm233_vm2, %v472_v49 }
 0x361   :  { %5876 = vmatpush3.bf16.msra.mxu0 %v626_v50  ;;  %5877 = vmatprep.mubr.msk.bf16.mxu0 %vm6603_vm1, %v6602_v8 }
 0x362   :  { %5887 = vmatprep.subr.bf16.mxu0 %v6602_v8 }
 0x382   :  { %v459_v52 = vpop.xlane.xlu1 %458  ;;  %v462_v53 = vpop.xlane.xlu0 %461 }
 0x383   :  { %6424 = vrcp.f32 %v459_v52 }
 0x384   :  { %6426 = vrcp.f32 %v462_v53 }
 0x386   :  { %v673_v54 = vpop.permute.xlu0 %672  ;;  %v723_v55 = vpop.permute.xlu1 %722 }
 0x387   :  { %v678_v0 = vsel %vm233_vm2, %v673_v54, 0  ;;  %v728_v2 = vsel %vm233_vm2, %v723_v55, 0 }
 0x38a   :  { %v671_v62 = vpop.permute.xlu0 %670  ;;  %v721_v1 = vpop.permute.xlu1 %720 }
 0x38e   :  { %v773_v3 = vpop.permute.xlu0 %772  ;;  %v823_v4 = vpop.permute.xlu1 %822 }
 0x38f   :  { %v778_v5 = vsel %vm233_vm2, %v773_v3, 0  ;;  %v828_v6 = vsel %vm233_vm2, %v823_v4, 0 }
 0x390   :  { %v6425_v56 = vpop.eup %6424 }
 0x391   :  { %v6427_v57 = vpop.eup %6426  ;;  %v469_v58 = vmul.f32 %v6425_v56, %v6417_v30 }
 0x392   :  { %v470_v60 = vmul.f32 %v6427_v57, %v6419_v31  ;;  %v771_v7 = vpop.permute.xlu0 %770  ;;  %v821_v9 = vpop.permute.xlu1 %820 }
 0x393   :  { %v473_v61 = vpack.c.bf16 %v469_v58, %v469_v58 }
 0x394   :  { %v474_v63 = vpack.c.bf16 %v470_v60, %v470_v60 }
 0x395   :  { %5872 = vmatmul.mubr.msk.bf16.vlgmr.msra.gmra.mxu1 %vm233_vm2, %v473_v61 }
 0x396   :  { %5878 = vmatmul.mubr.msk.bf16.vlgmr.msra.gmra.mxu0 %vm233_vm2, %v474_v63  ;;  %5882 = vmatpush3.bf16.xpose.msra.mxu1 %v678_v0 }
 0x397   :  { %5888 = vmatpush3.bf16.xpose.msra.mxu0 %v728_v2  ;;  %5883 = vmatprep.mubr.msk.bf16.mxu1 %vm6603_vm1, %v6602_v8 }
 0x398   :  { %5889 = vmatprep.mubr.msk.bf16.mxu0 %vm6603_vm1, %v6602_v8  ;;  %5893 = vmatprep.subr.bf16.mxu1 %v6602_v8 }
 0x399   :  { %5899 = vmatprep.subr.bf16.mxu0 %v6602_v8 }
 0x39d   :  { %5884 = vmatmul.mubr.msk.bf16.vlgmr.msra.gmra.mxu1 %vm233_vm2, %v671_v62 }
 0x39e   :  { %5890 = vmatmul.mubr.msk.bf16.vlgmr.msra.gmra.mxu0 %vm233_vm2, %v721_v1  ;;  %5894 = vmatpush3.bf16.xpose.msra.mxu1 %v778_v5 }
 0x39f   :  { %5900 = vmatpush3.bf16.xpose.msra.mxu0 %v828_v6  ;;  %5895 = vmatprep.mubr.msk.bf16.mxu1 %vm6603_vm1, %v6602_v8 }
 0x3a0   :  { %5901 = vmatprep.mubr.msk.bf16.mxu0 %vm6603_vm1, %v6602_v8  ;;  %5905 = vmatprep.subr.bf16.mxu1 %v6602_v8 }
 0x3a1   :  { %5911 = vmatprep.subr.bf16.mxu0 %v6602_v8 }
 0x3a5   :  { %5896 = vmatmul.mubr.msk.bf16.vlgmr.msra.gmra.mxu1 %vm233_vm2, %v771_v7 }
 0x3a6   :  { %5902 = vmatmul.mubr.msk.bf16.vlgmr.msra.gmra.mxu0 %vm233_vm2, %v821_v9  ;;  %5907 = vmatprep.mubr.msk.bf16.mxu1 %vm6603_vm1, %v6602_v8 }
 0x3a7   :  { %5913 = vmatprep.mubr.msk.bf16.mxu0 %vm6603_vm1, %v6602_v8 }
 0x41c   :  { %v6924_v10 = vpop.f32.mrf.mxu1 }
 0x41e   :  { %v5861_v11 = vpop.f32.mrf.mxu1 }
 0x420   :  { %v521_v12 = vpop.f32.mrf.mxu1  ;;  %v6926_v14 = vpop.f32.mrf.mxu0 }
 0x421   :  { %v668_v15 = vpack.c.bf16 %v6926_v14, %v6924_v10 }
 0x422   :  { %v5862_v17 = vpop.f32.mrf.mxu1  ;;  %v5867_v18 = vpop.f32.mrf.mxu0 }
 0x424   :  { %v569_v20 = vpop.f32.mrf.mxu0 }
 0x426   :  { %v5868_v22 = vpop.f32.mrf.mxu0 }
 0x455   :  { %v6930_v23 = vpop.f32.mrf.mxu1 }
 0x456   :  { %v6932_v24 = vpop.f32.mrf.mxu0 }
 0x457   :  { %v669_v25 = vpack.c.bf16 %v6932_v24, %v6930_v23  ;;  %v5873_v26 = vpop.f32.mrf.mxu1  ;;  %v223_v23 = vld [vmem:[%s7921_s3 + $0x4] sm:$0xf] }
 0x458   :  { %v5879_v27 = vpop.f32.mrf.mxu0  ;;  %v1119_v24 = vsel %vm480_vm3, %v223_v23, 0 }
 0x459   :  { %v617_v28 = vpop.f32.mrf.mxu1 }
 0x45a   :  { %v665_v29 = vpop.f32.mrf.mxu0 }
 0x45b   :  { %v5874_v30 = vpop.f32.mrf.mxu1 }
 0x45c   :  { %v5880_v31 = vpop.f32.mrf.mxu0 }
 0x45d   :  { %v714_v32 = vpop.f32.mrf.mxu1 }
 0x45e   :  { %v715_v33 = vadd.f32 %v714_v32, %v6837_v40  ;;  %v764_v34 = vpop.f32.mrf.mxu0 }
 0x45f   :  { %v765_v35 = vadd.f32 %v764_v34, %v6841_v44  ;;  %v5885_v36 = vpop.f32.mrf.mxu1 }
 0x460   :  { %v5891_v37 = vpop.f32.mrf.mxu0  ;;  %v870_v39 = vsel %vm233_vm2, %v715_v33, -inf }
 0x461   :  { %v873_v41 = vsel %vm233_vm2, %v765_v35, -inf  ;;  %871 = vmax.xlane.f32.xlu0 %v870_v39  ;;  %v717_v42 = vpop.f32.mrf.mxu1 }
 0x462   :  { %874 = vmax.xlane.f32.xlu1 %v873_v41  ;;  %v767_v43 = vpop.f32.mrf.mxu0 }
 0x463   :  { %v5886_v45 = vpop.f32.mrf.mxu1 }
 0x464   :  { %v5892_v46 = vpop.f32.mrf.mxu0 }
 0x465   :  { %v814_v47 = vpop.f32.mrf.mxu1 }
 0x466   :  { %v815_v48 = vadd.f32 %v814_v47, %v6846_v51  ;;  %v864_v49 = vpop.f32.mrf.mxu0 }
 0x467   :  { %v5897_v50 = vpop.f32.mrf.mxu1  ;;  %v865_v52 = vadd.f32 %v864_v49, %v6851_v59 }
 0x468   :  { %v5903_v53 = vpop.f32.mrf.mxu0  ;;  %v876_v54 = vsel %vm233_vm2, %v815_v48, -inf }
 0x469   :  { %877 = vmax.xlane.f32.xlu0 %v876_v54  ;;  %v817_v55 = vpop.f32.mrf.mxu1  ;;  %v879_v60 = vsel %vm233_vm2, %v865_v52, -inf }
 0x46a   :  { %v867_v56 = vpop.f32.mrf.mxu0 }
 0x46b   :  { %v5898_v57 = vpop.f32.mrf.mxu1 }
 0x46c   :  { %v5904_v58 = vpop.f32.mrf.mxu0 }
 0x46d   :  { %880 = vmax.xlane.f32.xlu0 %v879_v60 }
 0x473   :  { %918 = vrot.lane.b32.xlu1 %v6793_v16, %s7894_s7 }
 0x4ea   :  { %v872_v61 = vpop.xlane.xlu0 %871 }
 0x4eb   :  { %v875_v62 = vpop.xlane.xlu1 %874  ;;  %v882_v63 = vsub.f32 %v715_v33, %v872_v61 }
 0x4ec   :  { %v883_v0 = vsub.f32 %v765_v35, %v875_v62 }
 0x4ed   :  { %v886_v1 = vmul.f32 1.442695, %v882_v63 }
 0x4ee   :  { %v888_v2 = vmul.f32 1.442695, %v883_v0 }
 0x4ef   :  { %6428 = vpow2.f32 %v886_v1  ;;  %v919_v3 = vpop.permute.xlu1 %918 }
 0x4f0   :  { %6430 = vpow2.f32 %v888_v2  ;;  %v924_v4 = vsel %vm480_vm3, %v919_v3, 0 }
 0x4f1   :  { %5906 = vmatpush3.bf16.msra.mxu1 %v924_v4 }
 0x4f2   :  { %v878_v5 = vpop.xlane.xlu0 %877  ;;  %5917 = vmatprep.subr.bf16.mxu1 %v6602_v8 }
 0x4f3   :  { %v884_v6 = vsub.f32 %v815_v48, %v878_v5  ;;  %v222_v48 = vld [vmem:[%s7921_s3] sm:$0xf] }
 0x4f4   :  { %v1177_v57 = vsel %vm480_vm3, %v222_v48, 0 }
 0x4f5   :  { %v890_v7 = vmul.f32 1.442695, %v884_v6 }
 0x4f6   :  { %v881_v9 = vpop.xlane.xlu0 %880 }
 0x4f7   :  { %6432 = vpow2.f32 %v890_v7  ;;  %v885_v11 = vsub.f32 %v865_v52, %v881_v9 }
 0x4f9   :  { %v892_v12 = vmul.f32 1.442695, %v885_v11 }
 0x4fb   :  { %6434 = vpow2.f32 %v892_v12 }
 0x4fc   :  { %v6429_v17 = vpop.eup %6428 }
 0x4fd   :  { %v6431_v18 = vpop.eup %6430  ;;  %v894_v20 = vsel %vm233_vm2, %v6429_v17, 0.0 }
 0x4fe   :  { %v897_v22 = vsel %vm233_vm2, %v6431_v18, 0.0  ;;  %895 = vadd.xlane.f32.xlu1 %v894_v20 }
 0x4ff   :  { %898 = vadd.xlane.f32.xlu0 %v897_v22 }
 0x504   :  { %v6433_v26 = vpop.eup %6432 }
 0x505   :  { %v900_v27 = vsel %vm233_vm2, %v6433_v26, 0.0 }
 0x506   :  { %901 = vadd.xlane.f32.xlu1 %v900_v27 }
 0x508   :  { %v6435_v28 = vpop.eup %6434 }
 0x509   :  { %v903_v29 = vsel %vm233_vm2, %v6435_v28, 0.0 }
 0x50a   :  { %904 = vadd.xlane.f32.xlu0 %v903_v29 }
 0x517   :  { %1014 = vrot.lane.b32.xlu1 %v6791_v13, %s7894_s7 }
 0x51b   :  { %1062 = vrot.lane.b32.xlu1 %v6797_v19, %s7894_s7 }
 0x51f   :  { %1280 = vrot.lane.b32.xlu1 %v6801_v21, %s7892_s12 }
 0x520   :  { %966 = vrot.lane.b32.xlu0 %v6801_v21, %s7894_s7  ;;  %s7928_s7 = sld [smem:[#allocation16_spill]] }
 0x523   :  { %1278 = vrot.lane.b32.xlu1 %v6801_v21, %s7890_s1 }
 0x524   :  { %1230 = vrot.lane.b32.xlu0 %v6793_v16, %s7892_s12 }
 0x527   :  { %1380 = vrot.lane.b32.xlu1 %v6797_v19, %s7892_s12 }
 0x528   :  { %1228 = vrot.lane.b32.xlu0 %v6793_v16, %s7890_s1 }
 0x52b   :  { %1378 = vrot.lane.b32.xlu1 %v6797_v19, %s7890_s1 }
 0x52c   :  { %1330 = vrot.lane.b32.xlu0 %v6791_v13, %s7892_s12  ;;  %s7923_s12 = sld [smem:[#allocation13_spill]] }
 0x530   :  { %1328 = vrot.lane.b32.xlu0 %v6791_v13, %s7890_s1  ;;  %s7932_s1 = smov 88  }
 0x587   :  { %v896_v30 = vpop.xlane.xlu1 %895 }
 0x588   :  { %6436 = vrcp.f32 %v896_v30  ;;  %v899_v31 = vpop.xlane.xlu0 %898 }
 0x589   :  { %6438 = vrcp.f32 %v899_v31 }
 0x58f   :  { %v902_v32 = vpop.xlane.xlu1 %901 }
 0x590   :  { %6440 = vrcp.f32 %v902_v32 }
 0x593   :  { %v1015_v33 = vpop.permute.xlu1 %1014  ;;  %v905_v34 = vpop.xlane.xlu0 %904 }
 0x594   :  { %6442 = vrcp.f32 %v905_v34  ;;  %v1020_v46 = vsel %vm480_vm3, %v1015_v33, 0 }
 0x595   :  { %v6437_v35 = vpop.eup %6436 }
 0x596   :  { %v6439_v36 = vpop.eup %6438  ;;  %v910_v37 = vmul.f32 %v6437_v35, %v6429_v17 }
 0x597   :  { %v967_v39 = vpop.permute.xlu0 %966  ;;  %v911_v41 = vmul.f32 %v6439_v36, %v6431_v18  ;;  %v1063_v45 = vpop.permute.xlu1 %1062 }
 0x598   :  { %v972_v42 = vsel %vm480_vm3, %v967_v39, 0  ;;  %v914_v43 = vpack.c.bf16 %v910_v37, %v910_v37  ;;  %v1068_v49 = vsel %vm480_vm3, %v1063_v45, 0 }
 0x599   :  { %5912 = vmatpush3.bf16.msra.mxu0 %v972_v42  ;;  %v915_v47 = vpack.c.bf16 %v911_v41, %v911_v41 }
 0x59a   :  { %5908 = vmatmul.mubr.msk.bf16.vlgmr.msra.gmra.mxu1 %vm233_vm2, %v914_v43  ;;  %5923 = vmatprep.subr.bf16.mxu0 %v6602_v8 }
 0x59b   :  { %5918 = vmatpush3.bf16.msra.mxu1 %v1020_v46  ;;  %5919 = vmatprep.mubr.msk.bf16.mxu1 %vm6603_vm1, %v6602_v8  ;;  %v1281_v58 = vpop.permute.xlu1 %1280  ;;  %v1231_v5 = vpop.permute.xlu0 %1230 }
 0x59c   :  { %5914 = vmatmul.mubr.msk.bf16.vlgmr.msra.gmra.mxu0 %vm233_vm2, %v915_v47  ;;  %v1286_v61 = vsel %vm233_vm2, %v1281_v58, 0  ;;  %6357 = vmatprep.subr.msk.bf16.mxu1 %vm480_vm3, %v223_v23 }
 0x59d   :  { %v6441_v50 = vpop.eup %6440  ;;  %5924 = vmatpush3.bf16.msra.mxu0 %v1068_v49  ;;  %5925 = vmatprep.mubr.msk.bf16.mxu0 %vm6603_vm1, %v6602_v8 }
 0x59e   :  { %v912_v52 = vmul.f32 %v6441_v50, %v6433_v26  ;;  %6358 = vmatprep.subr.msk.bf16.mxu0 %vm480_vm3, %v222_v48  ;;  %v1236_v26 = vsel %vm233_vm2, %v1231_v5, 0 }
 0x59f   :  { %v1279_v60 = vpop.permute.xlu1 %1278  ;;  %v1229_v17 = vpop.permute.xlu0 %1228 }
 0x5a0   :  { %v916_v53 = vpack.c.bf16 %v912_v52, %v912_v52 }
 0x5a1   :  { %v6443_v54 = vpop.eup %6442 }
 0x5a2   :  { %5920 = vmatmul.mubr.msk.bf16.vlgmr.msra.gmra.mxu1 %vm233_vm2, %v916_v53  ;;  %v913_v55 = vmul.f32 %v6443_v54, %v6435_v28 }
 0x5a3   :  { %v1381_v10 = vpop.permute.xlu1 %1380  ;;  %5930 = vmatpush3.bf16.msra.mxu1 %v1119_v24  ;;  %v1331_v29 = vpop.permute.xlu0 %1330 }
 0x5a4   :  { %v917_v56 = vpack.c.bf16 %v913_v55, %v913_v55  ;;  %v1386_v14 = vsel %vm233_vm2, %v1381_v10, 0  ;;  %5941 = vmatprep.subr.bf16.mxu1 %v6602_v8  ;;  %v1336_v32 = vsel %vm233_vm2, %v1331_v29, 0 }
 0x5a6   :  { %5926 = vmatmul.mubr.msk.bf16.vlgmr.msra.gmra.mxu0 %vm233_vm2, %v917_v56 }
 0x5a7   :  { %5937 = vmatprep.mubr.msk.bf16.mxu0 %vm233_vm2, %v668_v15  ;;  %5936 = vmatpush3.bf16.msra.mxu0 %v1177_v57  ;;  %v1379_v15 = vpop.permute.xlu1 %1378  ;;  %v1329_v37 = vpop.permute.xlu0 %1328 }
 0x5a8   :  { %5947 = vmatprep.subr.bf16.mxu0 %v6602_v8 }
 0x5ae   :  { %5938 = vmatmul.mubr.msk.bf16.vlgmr.msra.gmra.mxu0 %vm233_vm2, %v669_v25 }
 0x5af   :  { %5948 = vmatpush3.bf16.xpose.msra.mxu0 %v1286_v61  ;;  %5949 = vmatprep.mubr.msk.bf16.mxu0 %vm6603_vm1, %v6602_v8 }
 0x5b0   :  { %5959 = vmatprep.subr.bf16.mxu0 %v6602_v8 }
 0x5b6   :  { %5950 = vmatmul.mubr.msk.bf16.vlgmr.msra.gmra.mxu0 %vm233_vm2, %v1279_v60 }
 0x5b7   :  { %5960 = vmatpush3.bf16.xpose.msra.mxu0 %v1386_v14  ;;  %5961 = vmatprep.mubr.msk.bf16.mxu0 %vm6603_vm1, %v6602_v8 }
 0x5b8   :  { %5971 = vmatprep.subr.bf16.mxu0 %v6602_v8 }
 0x5be   :  { %5962 = vmatmul.mubr.msk.bf16.vlgmr.msra.gmra.mxu0 %vm233_vm2, %v1379_v15 }
 0x5bf   :  { %5973 = vmatprep.mubr.msk.bf16.mxu0 %vm6603_vm1, %v6602_v8 }
 0x65a   :  { %v960_v25 = vpop.f32.mrf.mxu1 }
 0x65c   :  { %v5909_v62 = vpop.f32.mrf.mxu1  ;;  %v1008_v63 = vpop.f32.mrf.mxu0 }
 0x65d   :  { %v1110_v0 = vpack.c.bf16 %v1008_v63, %v960_v25 }
 0x65e   :  { %v963_v1 = vpop.f32.mrf.mxu1  ;;  %v5915_v2 = vpop.f32.mrf.mxu0 }
 0x65f   :  { %5931 = vmatprep.mubr.msk.bf16.mxu1 %vm233_vm2, %v1110_v0 }
 0x660   :  { %v5910_v3 = vpop.f32.mrf.mxu1  ;;  %v1011_v4 = vpop.f32.mrf.mxu0 }
 0x662   :  { %v5916_v6 = vpop.f32.mrf.mxu0  ;;  %v1056_v7 = vpop.f32.mrf.mxu1 }
 0x664   :  { %v5921_v9 = vpop.f32.mrf.mxu1 }
 0x666   :  { %v1059_v11 = vpop.f32.mrf.mxu1  ;;  %v1104_v12 = vpop.f32.mrf.mxu0 }
 0x667   :  { %v1111_v18 = vpack.c.bf16 %v1104_v12, %v1056_v7 }
 0x668   :  { %v5922_v20 = vpop.f32.mrf.mxu1  ;;  %v5927_v22 = vpop.f32.mrf.mxu0 }
 0x669   :  { %5932 = vmatmul.mubr.msk.bf16.vlgmr.msra.gmra.mxu1 %vm233_vm2, %v1111_v18 }
 0x66a   :  { %5942 = vmatpush3.bf16.xpose.msra.mxu1 %v1236_v26  ;;  %v1107_v27 = vpop.f32.mrf.mxu0  ;;  %5943 = vmatprep.mubr.msk.bf16.mxu1 %vm6603_vm1, %v6602_v8 }
 0x66b   :  { %5953 = vmatprep.subr.bf16.mxu1 %v6602_v8 }
 0x66c   :  { %v5928_v28 = vpop.f32.mrf.mxu0 }
 0x66e   :  { %v7024_v30 = vpop.f32.mrf.mxu0 }
 0x670   :  { %v7026_v31 = vpop.f32.mrf.mxu0 }
 0x671   :  { %5944 = vmatmul.mubr.msk.bf16.vlgmr.msra.gmra.mxu1 %vm233_vm2, %v1229_v17 }
 0x672   :  { %5954 = vmatpush3.bf16.xpose.msra.mxu1 %v1336_v32  ;;  %v7030_v33 = vpop.f32.mrf.mxu0  ;;  %5955 = vmatprep.mubr.msk.bf16.mxu1 %vm6603_vm1, %v6602_v8 }
 0x673   :  { %5965 = vmatprep.subr.bf16.mxu1 %v6602_v8 }
 0x674   :  { %v7035_v34 = vpop.f32.mrf.mxu0 }
 0x676   :  { %v1322_v35 = vpop.f32.mrf.mxu0 }
 0x677   :  { %v1323_v36 = vadd.f32 %v1322_v35, %v6841_v44 }
 0x678   :  { %v5951_v39 = vpop.f32.mrf.mxu0 }
 0x679   :  { %5956 = vmatmul.mubr.msk.bf16.vlgmr.msra.gmra.mxu1 %vm233_vm2, %v1329_v37  ;;  %v1431_v41 = vsel %vm233_vm2, %v1323_v36, -inf }
 0x67a   :  { %1432 = vmax.xlane.f32.xlu1 %v1431_v41  ;;  %v1325_v42 = vpop.f32.mrf.mxu0  ;;  %5967 = vmatprep.mubr.msk.bf16.mxu1 %vm6603_vm1, %v6602_v8 }
 0x67c   :  { %v5952_v43 = vpop.f32.mrf.mxu0 }
 0x67e   :  { %v1422_v45 = vpop.f32.mrf.mxu0 }
 0x67f   :  { %v1423_v63 = vadd.f32 %v1422_v45, %v6851_v59 }
 0x680   :  { %v5963_v46 = vpop.f32.mrf.mxu0 }
 0x681   :  { %v1437_v3 = vsel %vm233_vm2, %v1423_v63, -inf }
 0x682   :  { %v1425_v47 = vpop.f32.mrf.mxu0 }
 0x684   :  { %v5964_v48 = vpop.f32.mrf.mxu0 }
 0x68b   :  { %1476 = vrot.lane.b32.xlu1 %v6793_v16, %s7888_s4 }
 0x68f   :  { %1572 = vrot.lane.b32.xlu1 %v6791_v13, %s7888_s4 }
 0x703   :  { %v1433_v49 = vpop.xlane.xlu1 %1432 }
 0x704   :  { %v1441_v55 = vsub.f32 %v1323_v36, %v1433_v49 }
 0x706   :  { %v1446_v58 = vmul.f32 1.442695, %v1441_v55 }
 0x707   :  { %v1477_v50 = vpop.permute.xlu1 %1476 }
 0x708   :  { %v1482_v52 = vsel %vm480_vm3, %v1477_v50, 0  ;;  %6444 = vpow2.f32 %v1446_v58 }
 0x709   :  { %5966 = vmatpush3.bf16.msra.mxu1 %v1482_v52 }
 0x70a   :  { %5977 = vmatprep.subr.bf16.mxu1 %v6602_v8 }
 0x70b   :  { %v1573_v36 = vpop.permute.xlu1 %1572 }
 0x70c   :  { %v1578_v55 = vsel %vm480_vm3, %v1573_v36, 0 }
 0x715   :  { %v6445_v4 = vpop.eup %6444 }
 0x716   :  { %v1455_v5 = vsel %vm233_vm2, %v6445_v4, 0.0 }
 0x729   :  { %v7048_v53 = vpop.f32.mrf.mxu1 }
 0x72b   :  { %v7050_v54 = vpop.f32.mrf.mxu1 }
 0x72d   :  { %v7052_v56 = vpop.f32.mrf.mxu1 }
 0x72f   :  { %v7054_v57 = vpop.f32.mrf.mxu1 }
 0x731   :  { %v1272_v60 = vpop.f32.mrf.mxu1 }
 0x732   :  { %v1273_v61 = vadd.f32 %v1272_v60, %v6837_v40 }
 0x733   :  { %v5945_v10 = vpop.f32.mrf.mxu1 }
 0x734   :  { %v1428_v14 = vsel %vm233_vm2, %v1273_v61, -inf }
 0x735   :  { %1429 = vmax.xlane.f32.xlu0 %v1428_v14  ;;  %v1275_v15 = vpop.f32.mrf.mxu1 }
 0x737   :  { %v5946_v23 = vpop.f32.mrf.mxu1 }
 0x739   :  { %v1372_v24 = vpop.f32.mrf.mxu1 }
 0x73a   :  { %v1373_v25 = vadd.f32 %v1372_v24, %v6846_v51 }
 0x73b   :  { %v5957_v62 = vpop.f32.mrf.mxu1 }
 0x73c   :  { %v1434_v0 = vsel %vm233_vm2, %v1373_v25, -inf }
 0x73d   :  { %1435 = vmax.xlane.f32.xlu0 %v1434_v0  ;;  %v1375_v1 = vpop.f32.mrf.mxu1 }
 0x73f   :  { %v5958_v2 = vpop.f32.mrf.mxu1 }
 0x741   :  { %1438 = vmax.xlane.f32.xlu0 %v1437_v3  ;;  %v224_v3 = vld [vmem:[%s7921_s3 + $0x8] sm:$0xf] }
 0x745   :  { %1456 = vadd.xlane.f32.xlu0 %v1455_v5 }
 0x7be   :  { %v1430_v6 = vpop.xlane.xlu0 %1429 }
 0x7bf   :  { %v1440_v7 = vsub.f32 %v1273_v61, %v1430_v6 }
 0x7c1   :  { %v1444_v9 = vmul.f32 1.442695, %v1440_v7 }
 0x7c3   :  { %6446 = vpow2.f32 %v1444_v9 }
 0x7c6   :  { %v1436_v11 = vpop.xlane.xlu0 %1435 }
 0x7c7   :  { %v1442_v12 = vsub.f32 %v1373_v25, %v1436_v11 }
 0x7c9   :  { %v1448_v17 = vmul.f32 1.442695, %v1442_v12 }
 0x7ca   :  { %v1439_v18 = vpop.xlane.xlu0 %1438 }
 0x7cb   :  { %6448 = vpow2.f32 %v1448_v17  ;;  %v1443_v20 = vsub.f32 %v1423_v63, %v1439_v18 }
 0x7cd   :  { %v1450_v22 = vmul.f32 1.442695, %v1443_v20 }
 0x7ce   :  { %v1457_v37 = vpop.xlane.xlu0 %1456 }
 0x7cf   :  { %6450 = vpow2.f32 %v1450_v22 }
 0x7d0   :  { %v6447_v26 = vpop.eup %6446  ;;  %6452 = vrcp.f32 %v1457_v37 }
 0x7d1   :  { %v1452_v27 = vsel %vm233_vm2, %v6447_v26, 0.0 }
 0x7d2   :  { %1453 = vadd.xlane.f32.xlu1 %v1452_v27 }
 0x7d8   :  { %v6449_v28 = vpop.eup %6448 }
 0x7d9   :  { %v1458_v29 = vsel %vm233_vm2, %v6449_v28, 0.0 }
 0x7da   :  { %1459 = vadd.xlane.f32.xlu1 %v1458_v29 }
 0x7dc   :  { %v6451_v32 = vpop.eup %6450 }
 0x7dd   :  { %v1461_v35 = vsel %vm233_vm2, %v6451_v32, 0.0  ;;  %v6453_v42 = vpop.eup %6452 }
 0x7de   :  { %1462 = vadd.xlane.f32.xlu0 %v1461_v35  ;;  %v1469_v47 = vmul.f32 %v6453_v42, %v6445_v4  ;;  %v1677_v4 = vsel %vm480_vm3, %v224_v3, 0 }
 0x7e0   :  { %v1473_v58 = vpack.c.bf16 %v1469_v47, %v1469_v47 }
 0x7eb   :  { %1620 = vrot.lane.b32.xlu1 %v6797_v19, %s7888_s4 }
 0x7ef   :  { %1784 = vrot.lane.b32.xlu1 %v6801_v21, %s7886_s8 }
 0x7f3   :  { %1782 = vrot.lane.b32.xlu1 %v6801_v21, %s7882_s6 }
 0x7f4   :  { %1524 = vrot.lane.b32.xlu0 %v6801_v21, %s7888_s4  ;;  %s7933_s4 = smov 120  }
 0x7f7   :  { %1884 = vrot.lane.b32.xlu1 %v6797_v19, %s7886_s8 }
 0x7f8   :  { %1734 = vrot.lane.b32.xlu0 %v6793_v16, %s7886_s8 }
 0x7fb   :  { %1882 = vrot.lane.b32.xlu1 %v6797_v19, %s7882_s6 }
 0x7fc   :  { %1732 = vrot.lane.b32.xlu0 %v6793_v16, %s7882_s6 }
 0x800   :  { %1834 = vrot.lane.b32.xlu0 %v6791_v13, %s7886_s8  ;;  %s7922_s8 = sld [smem:[#allocation10_spill]] }
 0x804   :  { %1832 = vrot.lane.b32.xlu0 %v6791_v13, %s7882_s6  ;;  %s7884_s6 = smov 40  }
 0x85b   :  { %v1454_v39 = vpop.xlane.xlu1 %1453 }
 0x85c   :  { %6454 = vrcp.f32 %v1454_v39 }
 0x863   :  { %v1460_v41 = vpop.xlane.xlu1 %1459 }
 0x864   :  { %6456 = vrcp.f32 %v1460_v41 }
 0x867   :  { %v1463_v43 = vpop.xlane.xlu0 %1462  ;;  %v1621_v52 = vpop.permute.xlu1 %1620 }
 0x868   :  { %6458 = vrcp.f32 %v1463_v43  ;;  %v1626_v60 = vsel %vm480_vm3, %v1621_v52, 0 }
 0x869   :  { %v6455_v45 = vpop.eup %6454 }
 0x86a   :  { %v1468_v46 = vmul.f32 %v6455_v45, %v6447_v26 }
 0x86b   :  { %v1525_v48 = vpop.permute.xlu0 %1524  ;;  %v1785_v20 = vpop.permute.xlu1 %1784 }
 0x86c   :  { %v1530_v49 = vsel %vm480_vm3, %v1525_v48, 0  ;;  %v1472_v50 = vpack.c.bf16 %v1468_v46, %v1468_v46  ;;  %v1790_v39 = vsel %vm233_vm2, %v1785_v20, 0 }
 0x86d   :  { %5972 = vmatpush3.bf16.msra.mxu0 %v1530_v49 }
 0x86e   :  { %5968 = vmatmul.mubr.msk.bf16.vlgmr.msra.gmra.mxu1 %vm233_vm2, %v1472_v50  ;;  %5983 = vmatprep.subr.bf16.mxu0 %v6602_v8 }
 0x86f   :  { %5978 = vmatpush3.bf16.msra.mxu1 %v1578_v55  ;;  %5979 = vmatprep.mubr.msk.bf16.mxu1 %vm6603_vm1, %v6602_v8  ;;  %v1735_v14 = vpop.permute.xlu0 %1734 }
 0x870   :  { %5974 = vmatmul.mubr.msk.bf16.vlgmr.msra.gmra.mxu0 %vm233_vm2, %v1473_v58  ;;  %v1740_v63 = vsel %vm233_vm2, %v1735_v14, 0  ;;  %6359 = vmatprep.subr.msk.bf16.mxu1 %vm480_vm3, %v224_v3  ;;  %v1214_v3 = vadd.f32 %v7026_v31, %v7050_v54 }
 0x871   :  { %v6457_v61 = vpop.eup %6456  ;;  %5984 = vmatpush3.bf16.msra.mxu0 %v1626_v60  ;;  %5985 = vmatprep.mubr.msk.bf16.mxu0 %vm6603_vm1, %v6602_v8 }
 0x872   :  { %v1470_v10 = vmul.f32 %v6457_v61, %v6449_v28  ;;  %5995 = vmatprep.subr.bf16.mxu0 %v6602_v8 }
 0x873   :  { %v1733_v62 = vpop.permute.xlu0 %1732 }
 0x874   :  { %v1474_v15 = vpack.c.bf16 %v1470_v10, %v1470_v10 }
 0x875   :  { %v6459_v23 = vpop.eup %6458 }
 0x876   :  { %5980 = vmatmul.mubr.msk.bf16.vlgmr.msra.gmra.mxu1 %vm233_vm2, %v1474_v15  ;;  %v1471_v24 = vmul.f32 %v6459_v23, %v6451_v32  ;;  %v1783_v32 = vpop.permute.xlu1 %1782 }
 0x877   :  { %v1835_v0 = vpop.permute.xlu0 %1834  ;;  %5990 = vmatpush3.bf16.msra.mxu1 %v1677_v4 }
 0x878   :  { %v1475_v25 = vpack.c.bf16 %v1471_v24, %v1471_v24  ;;  %v1840_v1 = vsel %vm233_vm2, %v1835_v0, 0  ;;  %6001 = vmatprep.subr.bf16.mxu1 %v6602_v8  ;;  %v1222_v0 = vadd.f32 %v7024_v30, %v7048_v53 }
 0x87a   :  { %5986 = vmatmul.mubr.msk.bf16.vlgmr.msra.gmra.mxu0 %vm233_vm2, %v1475_v25  ;;  %v1885_v43 = vpop.permute.xlu1 %1884 }
 0x87b   :  { %5996 = vmatpush3.bf16.xpose.msra.mxu0 %v1740_v63  ;;  %5997 = vmatprep.mubr.msk.bf16.mxu0 %vm6603_vm1, %v6602_v8  ;;  %v1833_v2 = vpop.permute.xlu0 %1832  ;;  %v1890_v48 = vsel %vm233_vm2, %v1885_v43, 0 }
 0x87c   :  { %6007 = vmatprep.subr.bf16.mxu0 %v6602_v8 }
 0x87e   :  { %v1883_v60 = vpop.permute.xlu1 %1882 }
 0x882   :  { %5998 = vmatmul.mubr.msk.bf16.vlgmr.msra.gmra.mxu0 %vm233_vm2, %v1733_v62 }
 0x883   :  { %6008 = vmatpush3.bf16.xpose.msra.mxu0 %v1840_v1  ;;  %6009 = vmatprep.mubr.msk.bf16.mxu0 %vm6603_vm1, %v6602_v8 }
 0x884   :  { %6019 = vmatprep.subr.bf16.mxu0 %v6602_v8 }
 0x88a   :  { %6010 = vmatmul.mubr.msk.bf16.vlgmr.msra.gmra.mxu0 %vm233_vm2, %v1833_v2 }
 0x88b   :  { %6021 = vmatprep.mubr.msk.bf16.mxu0 %vm6603_vm1, %v6602_v8 }
 0x92e   :  { %v1518_v5 = vpop.f32.mrf.mxu1 }
 0x930   :  { %v5969_v6 = vpop.f32.mrf.mxu1  ;;  %v1566_v7 = vpop.f32.mrf.mxu0 }
 0x931   :  { %v1668_v9 = vpack.c.bf16 %v1566_v7, %v1518_v5  ;;  %v1225_v6 = vadd.f32 %v7030_v33, %v7052_v56 }
 0x932   :  { %v1521_v11 = vpop.f32.mrf.mxu1  ;;  %v5975_v12 = vpop.f32.mrf.mxu0 }
 0x933   :  { %5991 = vmatprep.mubr.msk.bf16.mxu1 %vm233_vm2, %v1668_v9 }
 0x934   :  { %v5970_v17 = vpop.f32.mrf.mxu1  ;;  %v1569_v18 = vpop.f32.mrf.mxu0 }
 0x936   :  { %v5976_v22 = vpop.f32.mrf.mxu0  ;;  %v1614_v26 = vpop.f32.mrf.mxu1 }
 0x938   :  { %v5981_v27 = vpop.f32.mrf.mxu1 }
 0x93a   :  { %v1617_v28 = vpop.f32.mrf.mxu1  ;;  %v1662_v29 = vpop.f32.mrf.mxu0 }
 0x93b   :  { %v1669_v35 = vpack.c.bf16 %v1662_v29, %v1614_v26 }
 0x93c   :  { %v5982_v36 = vpop.f32.mrf.mxu1  ;;  %v5987_v37 = vpop.f32.mrf.mxu0 }
 0x93d   :  { %5992 = vmatmul.mubr.msk.bf16.vlgmr.msra.gmra.mxu1 %vm233_vm2, %v1669_v35 }
 0x93e   :  { %6002 = vmatpush3.bf16.xpose.msra.mxu1 %v1790_v39  ;;  %v1665_v41 = vpop.f32.mrf.mxu0  ;;  %6003 = vmatprep.mubr.msk.bf16.mxu1 %vm6603_vm1, %v6602_v8 }
 0x93f   :  { %6013 = vmatprep.subr.bf16.mxu1 %v6602_v8 }
 0x940   :  { %v5988_v42 = vpop.f32.mrf.mxu0 }
 0x942   :  { %v1776_v45 = vpop.f32.mrf.mxu0 }
 0x943   :  { %v1777_v46 = vadd.f32 %v1776_v45, %v6837_v40 }
 0x944   :  { %v5999_v47 = vpop.f32.mrf.mxu0 }
 0x945   :  { %6004 = vmatmul.mubr.msk.bf16.vlgmr.msra.gmra.mxu1 %vm233_vm2, %v1783_v32  ;;  %v1932_v49 = vsel %vm233_vm2, %v1777_v46, -inf }
 0x946   :  { %6014 = vmatpush3.bf16.xpose.msra.mxu1 %v1890_v48  ;;  %1933 = vmax.xlane.f32.xlu0 %v1932_v49  ;;  %v1779_v50 = vpop.f32.mrf.mxu0 }
 0x947   :  { %6015 = vmatprep.mubr.msk.bf16.mxu1 %vm6603_vm1, %v6602_v8  ;;  %6025 = vmatprep.subr.bf16.mxu1 %v6602_v8 }
 0x948   :  { %v6000_v52 = vpop.f32.mrf.mxu0 }
 0x94a   :  { %v1876_v55 = vpop.f32.mrf.mxu0 }
 0x94b   :  { %v1877_v58 = vadd.f32 %v1876_v55, %v6846_v51 }
 0x94c   :  { %v6011_v61 = vpop.f32.mrf.mxu0 }
 0x94d   :  { %6016 = vmatmul.mubr.msk.bf16.vlgmr.msra.gmra.mxu1 %vm233_vm2, %v1883_v60  ;;  %v1938_v10 = vsel %vm233_vm2, %v1877_v58, -inf }
 0x94e   :  { %1939 = vmax.xlane.f32.xlu0 %v1938_v10  ;;  %v1879_v14 = vpop.f32.mrf.mxu0  ;;  %6027 = vmatprep.mubr.msk.bf16.mxu1 %vm6603_vm1, %v6602_v8 }
 0x950   :  { %v6012_v15 = vpop.f32.mrf.mxu0 }
 0x9cf   :  { %v1934_v23 = vpop.xlane.xlu0 %1933 }
 0x9d0   :  { %v1944_v24 = vsub.f32 %v1777_v46, %v1934_v23 }
 0x9d2   :  { %v1948_v62 = vmul.f32 1.442695, %v1944_v24 }
 0x9d4   :  { %6460 = vpow2.f32 %v1948_v62 }
 0x9d7   :  { %v1940_v25 = vpop.xlane.xlu0 %1939 }
 0x9d8   :  { %v1946_v63 = vsub.f32 %v1877_v58, %v1940_v25 }
 0x9da   :  { %v1952_v1 = vmul.f32 1.442695, %v1946_v63 }
 0x9dc   :  { %6462 = vpow2.f32 %v1952_v1 }
 0x9e1   :  { %v6461_v54 = vpop.eup %6460 }
 0x9e2   :  { %v1956_v33 = vsel %vm233_vm2, %v6461_v54, 0.0 }
 0x9e9   :  { %v6463_v56 = vpop.eup %6462 }
 0x9ea   :  { %v1962_v29 = vsel %vm233_vm2, %v6463_v56, 0.0 }
 0x9fd   :  { %v5993_v2 = vpop.f32.mrf.mxu1 }
 0x9fe   :  { %v7139_v4 = vadd.f32 %v5993_v2, %v1222_v0 }
 0x9ff   :  { %v1713_v5 = vpop.f32.mrf.mxu1 }
 0xa00   :  { %v7143_v7 = vadd.f32 %v1713_v5, %v1214_v3 }
 0xa01   :  { %v5994_v9 = vpop.f32.mrf.mxu1 }
 0xa02   :  { %v7145_v11 = vadd.f32 %v5994_v9, %v1225_v6 }
 0xa03   :  { %v7147_v12 = vpop.f32.mrf.mxu1 }
 0xa05   :  { %v1826_v30 = vpop.f32.mrf.mxu1 }
 0xa06   :  { %v1827_v53 = vadd.f32 %v1826_v30, %v6841_v44 }
 0xa07   :  { %v6005_v17 = vpop.f32.mrf.mxu1 }
 0xa08   :  { %v1935_v31 = vsel %vm233_vm2, %v1827_v53, -inf }
 0xa09   :  { %1936 = vmax.xlane.f32.xlu1 %v1935_v31  ;;  %v1829_v18 = vpop.f32.mrf.mxu1 }
 0xa0b   :  { %v6006_v20 = vpop.f32.mrf.mxu1 }
 0xa0c   :  { %v225_v20 = vld [vmem:[%s7921_s3 + $0xc] sm:$0xf] }
 0xa0d   :  { %v1926_v22 = vpop.f32.mrf.mxu1  ;;  %1957 = vadd.xlane.f32.xlu1 %v1956_v33  ;;  %v2181_v33 = vsel %vm480_vm3, %v225_v20, 0 }
 0xa0e   :  { %v1927_v26 = vadd.f32 %v1926_v22, %v6851_v59 }
 0xa0f   :  { %v6017_v27 = vpop.f32.mrf.mxu1 }
 0xa10   :  { %v1941_v28 = vsel %vm233_vm2, %v1927_v26, -inf }
 0xa11   :  { %v1929_v32 = vpop.f32.mrf.mxu1  ;;  %1942 = vmax.xlane.f32.xlu0 %v1941_v28  ;;  %1963 = vadd.xlane.f32.xlu1 %v1962_v29 }
 0xa13   :  { %v6018_v35 = vpop.f32.mrf.mxu1 }
 0xa22   :  { %1980 = vrot.lane.b32.xlu1 %v6793_v16, %s7884_s6 }
 0xa26   :  { %2076 = vrot.lane.b32.xlu1 %v6791_v13, %s7884_s6 }
 0xa2a   :  { %2124 = vrot.lane.b32.xlu1 %v6797_v19, %s7884_s6 }
 0xa92   :  { %v1937_v36 = vpop.xlane.xlu1 %1936 }
 0xa93   :  { %v1945_v37 = vsub.f32 %v1827_v53, %v1937_v36 }
 0xa95   :  { %v1950_v39 = vmul.f32 1.442695, %v1945_v37 }
 0xa96   :  { %v1958_v41 = vpop.xlane.xlu1 %1957 }
 0xa97   :  { %6464 = vpow2.f32 %v1950_v39 }
 0xa98   :  { %6466 = vrcp.f32 %v1958_v41 }
 0xa9a   :  { %v1964_v42 = vpop.xlane.xlu1 %1963  ;;  %v1943_v43 = vpop.xlane.xlu0 %1942 }
 0xa9b   :  { %v1947_v45 = vsub.f32 %v1927_v26, %v1943_v43  ;;  %6468 = vrcp.f32 %v1964_v42  ;;  %v5487_v42 = vld [vmem:[%s7922_s8] ss:$0 sm:$0xff] }
 0xa9d   :  { %v1954_v46 = vmul.f32 1.442695, %v1947_v45  ;;  %v1217_v45 = vadd.f32 %v7035_v34, %v7054_v57  ;;  %v6577_v57 = vld [vmem:[%s7918_s0 + $0x10] sm:$0xff] }
 0xa9e   :  { %v1981_v47 = vpop.permute.xlu1 %1980 }
 0xa9f   :  { %6470 = vpow2.f32 %v1954_v46  ;;  %v1986_v16 = vsel %vm480_vm3, %v1981_v47, 0 }
 0xaa0   :  { %6020 = vmatpush3.bf16.msra.mxu0 %v1986_v16  ;;  %v1729_v16 = vadd.f32 %v7147_v12, %v1217_v45 }
 0xaa1   :  { %6031 = vmatprep.subr.bf16.mxu0 %v6602_v8 }
 0xaa2   :  { %v2077_v50 = vpop.permute.xlu1 %2076 }
 0xaa3   :  { %v2082_v58 = vsel %vm480_vm3, %v2077_v50, 0 }
 0xaa4   :  { %v6465_v13 = vpop.eup %6464 }
 0xaa5   :  { %v6467_v19 = vpop.eup %6466  ;;  %v1959_v48 = vsel %vm233_vm2, %v6465_v13, 0.0 }
 0xaa6   :  { %1960 = vadd.xlane.f32.xlu0 %v1959_v48  ;;  %v1972_v49 = vmul.f32 %v6467_v19, %v6461_v54  ;;  %v2125_v0 = vpop.permute.xlu1 %2124 }
 0xaa7   :  { %v2130_v2 = vsel %vm480_vm3, %v2125_v0, 0 }
 0xaa8   :  { %v1976_v52 = vpack.c.bf16 %v1972_v49, %v1972_v49  ;;  %v6469_v55 = vpop.eup %6468 }
 0xaa9   :  { %v1974_v61 = vmul.f32 %v6469_v55, %v6463_v56 }
 0xaaa   :  { %6022 = vmatmul.mubr.msk.bf16.vlgmr.msra.gmra.mxu0 %vm233_vm2, %v1976_v52 }
 0xaab   :  { %6032 = vmatpush3.bf16.msra.mxu0 %v2082_v58  ;;  %6033 = vmatprep.mubr.msk.bf16.mxu0 %vm6603_vm1, %v6602_v8  ;;  %v1978_v14 = vpack.c.bf16 %v1974_v61, %v1974_v61 }
 0xaac   :  { %v6471_v60 = vpop.eup %6470  ;;  %6360 = vmatprep.subr.msk.bf16.mxu0 %vm480_vm3, %v225_v20 }
 0xaad   :  { %v1965_v10 = vsel %vm233_vm2, %v6471_v60, 0.0 }
 0xaae   :  { %1966 = vadd.xlane.f32.xlu0 %v1965_v10  ;;  %v6579_v10 = vld [vmem:[%s7918_s0 + $0x18] sm:$0xff] }
 0xab2   :  { %6034 = vmatmul.mubr.msk.bf16.vlgmr.msra.gmra.mxu0 %vm233_vm2, %v1978_v14 }
 0xab3   :  { %6044 = vmatpush3.bf16.msra.mxu0 %v2181_v33  ;;  %v6382_v33 = vld [vmem:[%s7923_s12 + $0x8] sm:$0xff]  }
 0xac4   :  { %2028 = vrot.lane.b32.xlu0 %v6801_v21, %s7884_s6  ;;  %s7929_s6 = sld [smem:[#allocation17_spill]] }
 0xb2f   :  { %v1961_v15 = vpop.xlane.xlu0 %1960 }
 0xb30   :  { %6472 = vrcp.f32 %v1961_v15 }
 0xb37   :  { %v1967_v23 = vpop.xlane.xlu0 %1966 }
 0xb38   :  { %6474 = vrcp.f32 %v1967_v23 }
 0xb3b   :  { %v2029_v24 = vpop.permute.xlu0 %2028 }
 0xb3c   :  { %v2034_v25 = vsel %vm480_vm3, %v2029_v24, 0 }
 0xb3d   :  { %v6473_v62 = vpop.eup %6472  ;;  %6026 = vmatpush3.bf16.msra.mxu1 %v2034_v25 }
 0xb3e   :  { %6037 = vmatprep.subr.bf16.mxu1 %v6602_v8  ;;  %v1973_v63 = vmul.f32 %v6473_v62, %v6465_v13 }
 0xb40   :  { %v1977_v1 = vpack.c.bf16 %v1973_v63, %v1973_v63 }
 0xb42   :  { %6028 = vmatmul.mubr.msk.bf16.vlgmr.msra.gmra.mxu1 %vm233_vm2, %v1977_v1 }
 0xb43   :  { %6038 = vmatpush3.bf16.msra.mxu1 %v2130_v2  ;;  %6039 = vmatprep.mubr.msk.bf16.mxu1 %vm6603_vm1, %v6602_v8 }
 0xb44   :  { %6049 = vmatprep.subr.bf16.mxu1 %v6382_v33 }
 0xb45   :  { %v6475_v21 = vpop.eup %6474 }
 0xb46   :  { %v1975_v3 = vmul.f32 %v6475_v21, %v6471_v60 }
 0xb48   :  { %v1979_v5 = vpack.c.bf16 %v1975_v3, %v1975_v3 }
 0xb4a   :  { %6040 = vmatmul.mubr.msk.bf16.vlgmr.msra.gmra.mxu1 %vm233_vm2, %v1979_v5 }
 0xb4b   :  { %6050 = vmatpush3.bf16.msra.mxu1 %v6382_v33  ;;  %v5495_v33 = vld [vmem:[%s7928_s7] ss:$0 sm:$0xff] }
 0xb6a   :  { %v2022_v6 = vpop.f32.mrf.mxu0 }
 0xb6c   :  { %v6023_v9 = vpop.f32.mrf.mxu0 }
 0xb6e   :  { %v2025_v30 = vpop.f32.mrf.mxu0 }
 0xb70   :  { %v6024_v53 = vpop.f32.mrf.mxu0 }
 0xb72   :  { %v2118_v17 = vpop.f32.mrf.mxu0 }
 0xb74   :  { %v6035_v31 = vpop.f32.mrf.mxu0 }
 0xb76   :  { %v2121_v54 = vpop.f32.mrf.mxu0 }
 0xb78   :  { %v6036_v18 = vpop.f32.mrf.mxu0 }
 0xc02   :  { %v2070_v56 = vpop.f32.mrf.mxu1 }
 0xc03   :  { %v2172_v22 = vpack.c.bf16 %v2070_v56, %v2022_v6  ;;  %v6383_v56 = vld [vmem:[%s7923_s12] sm:$0xff]  }
 0xc04   :  { %v6029_v26 = vpop.f32.mrf.mxu1  ;;  %6051 = vmatprep.subr.bf16.mxu1 %v6383_v56 }
 0xc05   :  { %6045 = vmatprep.mubr.msk.bf16.mxu0 %vm233_vm2, %v2172_v22  ;;  %6052 = vmatpush3.bf16.msra.mxu1 %v6383_v56  ;;  %v6384_v22 = vld [vmem:[%s7924_s2 + $0x38] sm:$0xff]   ;;  %v6385_v26 = vld [vmem:[%s7924_s2 + $0x30] sm:$0xff]  }
 0xc06   :  { %v2073_v27 = vpop.f32.mrf.mxu1  ;;  %6057 = vmatprep.subr.bf16.mxu0 %v6384_v22 }
 0xc07   :  { %v6386_v27 = vld [vmem:[%s7924_s2 + $0x28] sm:$0xff]  }
 0xc08   :  { %v6030_v28 = vpop.f32.mrf.mxu1 }
 0xc09   :  { %v6387_v28 = vld [vmem:[%s7924_s2 + $0x20] sm:$0xff]  }
 0xc0a   :  { %v2166_v29 = vpop.f32.mrf.mxu1 }
 0xc0b   :  { %v2173_v32 = vpack.c.bf16 %v2166_v29, %v2118_v17  ;;  %v6388_v29 = vld [vmem:[%s7924_s2 + $0x18] sm:$0xff]  }
 0xc0c   :  { %v6041_v35 = vpop.f32.mrf.mxu1 }
 0xc0d   :  { %6046 = vmatmul.mubr.msk.bf16.vlgmr.msra.gmra.mxu0 %vm233_vm2, %v2173_v32 }
 0xc0e   :  { %v2169_v36 = vpop.f32.mrf.mxu1  ;;  %6058 = vmatpush3.bf16.msra.mxu0 %v6384_v22 }
 0xc0f   :  { %6059 = vmatprep.subr.bf16.mxu0 %v6385_v26 }
 0xc10   :  { %v6042_v37 = vpop.f32.mrf.mxu1 }
 0xc12   :  { %6060 = vmatpush3.bf16.msra.mxu0 %v6385_v26 }
 0xc13   :  { %6061 = vmatprep.subr.bf16.mxu0 %v6386_v27 }
 0xc16   :  { %6062 = vmatpush3.bf16.msra.mxu0 %v6386_v27 }
 0xc17   :  { %6063 = vmatprep.subr.bf16.mxu0 %v6387_v28 }
 0xc1a   :  { %6064 = vmatpush3.bf16.msra.mxu0 %v6387_v28 }
 0xc1b   :  { %6065 = vmatprep.subr.bf16.mxu0 %v6388_v29 }
 0xc1e   :  { %6066 = vmatpush3.bf16.msra.mxu0 %v6388_v29 }
 0xccd   :  { %v6047_v39 = vpop.f32.mrf.mxu0 }
 0xcce   :  { %v2234_v41 = vadd.f32 %v6047_v39, %v7139_v4  ;;  %v6576_v4 = vld [vmem:[%s7918_s0] sm:$0xff] }
 0xccf   :  { %v2217_v43 = vpop.f32.mrf.mxu0 }
 0xcd0   :  { %v2232_v46 = vadd.f32 %v2217_v43, %v7143_v7  ;;  %v2245_v13 = vadd.f32 %v5487_v42, %v2234_v41 }
 0xcd1   :  { %v6048_v47 = vpop.f32.mrf.mxu0 }
 0xcd2   :  { %v2243_v19 = vadd.f32 %v5487_v42, %v2232_v46  ;;  %v2235_v48 = vadd.f32 %v6048_v47, %v7145_v11  ;;  %v2249_v7 = vadd.f32 %v6577_v57, %v2245_v13  ;;  %v6578_v11 = vld [vmem:[%s7918_s0 + $0x8] sm:$0xff]  ;;  %s7925_s0 = sld [smem:[#allocation11_spill]] }
 0xcd3   :  { %v2220_v49 = vpop.f32.mrf.mxu0 }
 0xcd4   :  { %v2233_v50 = vadd.f32 %v2220_v49, %v1729_v16  ;;  %v2247_v52 = vadd.f32 %v6576_v4, %v2243_v19  ;;  %v2246_v55 = vadd.f32 %v5487_v42, %v2235_v48  ;;  %v2259_v60 = vsel %vm166_vm0, %v2249_v7, 0.0 }
 0xcd6   :  { %v2244_v58 = vadd.f32 %v5487_v42, %v2233_v50  ;;  %v2253_v34 = vsel %vm166_vm0, %v2247_v52, 0.0  ;;  %v2250_v14 = vadd.f32 %v6579_v10, %v2246_v55 }
 0xcd7   :  { %2254 = vadd.xlane.f32.xlu0 %v2253_v34 }
 0xcd8   :  { %v2248_v12 = vadd.f32 %v6578_v11, %v2244_v58  ;;  %v2262_v15 = vsel %vm166_vm0, %v2250_v14, 0.0  ;;  %v5488_v48 = vld [vmem:[%s7925_s0] ss:$0 sm:$0xff] }
 0xcd9   :  { %v5489_v58 = vld [vmem:[%s7926_s10] ss:$0 sm:$0xff] }
 0xcda   :  { %v2256_v61 = vsel %vm166_vm0, %v2248_v12, 0.0 }
 0xcdb   :  { %2260 = vadd.xlane.f32.xlu0 %v2259_v60  ;;  %2257 = vadd.xlane.f32.xlu1 %v2256_v61 }
 0xcdf   :  { %2263 = vadd.xlane.f32.xlu0 %v2262_v15 }
 0xd60   :  { %v2255_v23 = vpop.xlane.xlu0 %2254 }
 0xd61   :  { %v2266_v24 = vmul.f32 0.03125, %v2255_v23 }
 0xd63   :  { %v2270_v25 = vsub.f32 %v2247_v52, %v2266_v24  ;;  %v6389_v24 = vld [vmem:[%s7924_s2 + $0x10] sm:$0xff]  }
 0xd64   :  { %v2261_v62 = vpop.xlane.xlu0 %2260  ;;  %v2258_v63 = vpop.xlane.xlu1 %2257  ;;  %6067 = vmatprep.subr.bf16.mxu0 %v6389_v24 }
 0xd65   :  { %v2268_v0 = vmul.f32 0.03125, %v2261_v62  ;;  %v2267_v1 = vmul.f32 0.03125, %v2258_v63  ;;  %v2274_v2 = vmul.f32 %v2270_v25, %v2270_v25  ;;  %6068 = vmatpush3.bf16.msra.mxu0 %v6389_v24  ;;  %v6391_v62 = vld [vmem:[%s7924_s2] sm:$0xff]  }
 0xd67   :  { %v2272_v21 = vsub.f32 %v2249_v7, %v2268_v0  ;;  %v2271_v3 = vsub.f32 %v2248_v12, %v2267_v1  ;;  %v2278_v5 = vsel %vm166_vm0, %v2274_v2, 0.0  ;;  %v5490_v1 = vld [vmem:[%s7927_s30] ss:$0 sm:$0xff] }
 0xd68   :  { %v2264_v6 = vpop.xlane.xlu0 %2263  ;;  %2279 = vadd.xlane.f32.xlu1 %v2278_v5 }
 0xd69   :  { %v2269_v9 = vmul.f32 0.03125, %v2264_v6  ;;  %v2276_v30 = vmul.f32 %v2272_v21, %v2272_v21  ;;  %v2275_v53 = vmul.f32 %v2271_v3, %v2271_v3 }
 0xd6b   :  { %v2273_v17 = vsub.f32 %v2250_v14, %v2269_v9  ;;  %v2284_v31 = vsel %vm166_vm0, %v2276_v30, 0.0  ;;  %v2281_v54 = vsel %vm166_vm0, %v2275_v53, 0.0 }
 0xd6c   :  { %2285 = vadd.xlane.f32.xlu1 %v2284_v31  ;;  %2282 = vadd.xlane.f32.xlu0 %v2281_v54 }
 0xd6d   :  { %v2277_v18 = vmul.f32 %v2273_v17, %v2273_v17 }
 0xd6f   :  { %v2287_v20 = vsel %vm166_vm0, %v2277_v18, 0.0 }
 0xd70   :  { %2288 = vadd.xlane.f32.xlu0 %v2287_v20 }
 0xdf1   :  { %v2280_v32 = vpop.xlane.xlu1 %2279 }
 0xdf2   :  { %v2290_v35 = vmul.f32 0.03125, %v2280_v32 }
 0xdf4   :  { %v2294_v36 = vadd.f32 1e-05, %v2290_v35 }
 0xdf5   :  { %v2283_v37 = vpop.xlane.xlu0 %2282  ;;  %v2286_v39 = vpop.xlane.xlu1 %2285 }
 0xdf6   :  { %6476 = vrsqrt.f32 %v2294_v36  ;;  %v2291_v41 = vmul.f32 0.03125, %v2283_v37  ;;  %v2292_v42 = vmul.f32 0.03125, %v2286_v39 }
 0xdf8   :  { %v2295_v43 = vadd.f32 1e-05, %v2291_v41  ;;  %v2296_v45 = vadd.f32 1e-05, %v2292_v42 }
 0xdf9   :  { %v2289_v46 = vpop.xlane.xlu0 %2288 }
 0xdfa   :  { %6478 = vrsqrt.f32 %v2295_v43  ;;  %v2293_v47 = vmul.f32 0.03125, %v2289_v46 }
 0xdfb   :  { %6480 = vrsqrt.f32 %v2296_v45 }
 0xdfc   :  { %v2297_v16 = vadd.f32 1e-05, %v2293_v47 }
 0xdfe   :  { %6482 = vrsqrt.f32 %v2297_v16 }
 0xe03   :  { %v6477_v13 = vpop.eup %6476 }
 0xe04   :  { %v2302_v19 = vmul.f32 %v6477_v13, %v2270_v25  ;;  %v6390_v25 = vld [vmem:[%s7924_s2 + $0x8] sm:$0xff]  }
 0xe05   :  { %6069 = vmatprep.subr.bf16.mxu0 %v6390_v25 }
 0xe06   :  { %v2312_v52 = vmul.f32 %v5488_v48, %v2302_v19  ;;  %6070 = vmatpush3.bf16.msra.mxu0 %v6390_v25 }
 0xe07   :  { %v6479_v49 = vpop.eup %6478  ;;  %6071 = vmatprep.subr.bf16.mxu0 %v6391_v62 }
 0xe08   :  { %v6481_v50 = vpop.eup %6480  ;;  %v2303_v4 = vmul.f32 %v6479_v49, %v2271_v3  ;;  %v2322_v11 = vadd.f32 %v5489_v58, %v2312_v52 }
 0xe09   :  { %v2304_v55 = vmul.f32 %v6481_v50, %v2272_v21 }
 0xe0a   :  { %v2313_v34 = vmul.f32 %v5488_v48, %v2303_v4  ;;  %6072 = vmatpush3.bf16.msra.mxu0 %v6391_v62 }
 0xe0b   :  { %v6483_v57 = vpop.eup %6482  ;;  %v2314_v60 = vmul.f32 %v5488_v48, %v2304_v55  ;;  %6103 = vmatprep.subr.bf16.mxu0 %v6602_v8 }
 0xe0c   :  { %v2305_v7 = vmul.f32 %v6483_v57, %v2273_v17  ;;  %v2323_v12 = vadd.f32 %v5489_v58, %v2313_v34 }
 0xe0d   :  { %v2324_v14 = vadd.f32 %v5489_v58, %v2314_v60 }
 0xe0e   :  { %v2330_v61 = vpack.c.bf16 %v2323_v12, %v2322_v11  ;;  %v2315_v10 = vmul.f32 %v5488_v48, %v2305_v7 }
 0xe10   :  { %6053 = vmatprep.mubr.msk.bf16.mxu1 %vm166_vm0, %v2330_v61  ;;  %v2325_v15 = vadd.f32 %v5489_v58, %v2315_v10 }
 0xe12   :  { %v2331_v23 = vpack.c.bf16 %v2325_v15, %v2324_v14 }
 0xe14   :  { %6054 = vmatmul.mubr.msk.bf16.vlgmr.msra.gmra.mxu1 %vm166_vm0, %v2331_v23 }
 0xed4   :  { %v6055_v63 = vpop.f32.mrf.mxu1 }
 0xed5   :  { %v2400_v5 = vadd.f32 %v6055_v63, %v5490_v1 }
 0xed6   :  { %v2391_v0 = vpop.f32.mrf.mxu1 }
 0xed7   :  { %v2392_v21 = vadd.f32 %v5490_v1, %v2391_v0  ;;  %v2408_v31 = vmax.f32 %v2400_v5, 0.0 }
 0xed8   :  { %v6056_v2 = vpop.f32.mrf.mxu1 }
 0xed9   :  { %v2403_v3 = vadd.f32 %v6056_v2, %v5490_v1  ;;  %v2406_v53 = vmax.f32 %v2392_v21, 0.0 }
 0xeda   :  { %v2394_v6 = vpop.f32.mrf.mxu1 }
 0xedb   :  { %v2395_v9 = vadd.f32 %v5490_v1, %v2394_v6  ;;  %v2409_v30 = vmax.f32 %v2403_v3, 0.0 }
 0xedd   :  { %v2407_v17 = vmax.f32 %v2395_v9, 0.0  ;;  %v2427_v18 = vpack.c.bf16 %v2409_v30, %v2408_v31 }
 0xedf   :  { %v2426_v54 = vpack.c.bf16 %v2407_v17, %v2406_v53  ;;  %v5504_v53 = vld [vmem:[%s7929_s6] ss:$0 sm:$0xff] }
 0xee1   :  { %6073 = vmatprep.mubr.bf16.mxu0 %v2426_v54 }
 0xee2   :  { %6074 = vmatmul.mubr.bf16.vlgmr.msra.gmra.mxu0 %v2427_v18 }
 0xee3   :  { %6105 = vmatprep.mubr.msk.bf16.mxu0 %vm6603_vm1, %v6602_v8 }
 0xfa2   :  { %v6075_v20 = vpop.f32.mrf.mxu0 }
 0xfa3   :  { %v2526_v22 = vadd.f32 %v6075_v20, %v5495_v33 }
 0xfa4   :  { %v2517_v56 = vpop.f32.mrf.mxu0 }
 0xfa5   :  { %v2518_v26 = vadd.f32 %v5495_v33, %v2517_v56  ;;  %v2534_v37 = vadd.f32 %v2526_v22, %v2324_v14  ;;  %v6392_v14 = vld [vmem:[%s7917_s9 + $0x18] sm:$0xff]  }
 0xfa6   :  { %v6076_v27 = vpop.f32.mrf.mxu0  ;;  %6077 = vmatprep.subr.bf16.mxu1 %v6392_v14 }
 0xfa7   :  { %v2532_v28 = vadd.f32 %v2518_v26, %v2322_v11  ;;  %v2529_v32 = vadd.f32 %v6076_v27, %v5495_v33  ;;  %v2544_v42 = vsel %vm166_vm0, %v2534_v37, 0.0  ;;  %6078 = vmatpush3.bf16.msra.mxu1 %v6392_v14 }
 0xfa8   :  { %v2520_v29 = vpop.f32.mrf.mxu0 }
 0xfa9   :  { %v2521_v35 = vadd.f32 %v5495_v33, %v2520_v29  ;;  %v2538_v36 = vsel %vm166_vm0, %v2532_v28, 0.0  ;;  %v2535_v43 = vadd.f32 %v2529_v32, %v2325_v15  ;;  %v6393_v15 = vld [vmem:[%s7917_s9 + $0x10] sm:$0xff]   ;;  %v5505_v33 = vld [vmem:[%s7854_s13] ss:$0 sm:$0xff]  ;;  %s7935_s9 = smov 80  }
 0xfaa   :  { %2539 = vadd.xlane.f32.xlu1 %v2538_v36  ;;  %6079 = vmatprep.subr.bf16.mxu1 %v6393_v15 }
 0xfab   :  { %v2533_v39 = vadd.f32 %v2521_v35, %v2323_v12  ;;  %v2547_v45 = vsel %vm166_vm0, %v2535_v43, 0.0  ;;  %6080 = vmatpush3.bf16.msra.mxu1 %v6393_v15 }
 0xfac   :  { %6085 = vmatprep.subr.bf16.mxu1 %v6602_v8 }
 0xfad   :  { %v2541_v41 = vsel %vm166_vm0, %v2533_v39, 0.0 }
 0xfae   :  { %2542 = vadd.xlane.f32.xlu0 %v2541_v41  ;;  %2545 = vadd.xlane.f32.xlu1 %v2544_v42  ;;  %v5511_v42 = vld [vmem:[%s7919_s5 + $0x1] ss:$0 sm:$0xff]  ;;  %s7931_s5 = smov 64  }
 0xfb2   :  { %2548 = vadd.xlane.f32.xlu0 %v2547_v45 }
0x1033   :  { %v2540_v46 = vpop.xlane.xlu1 %2539 }
0x1034   :  { %v2550_v47 = vmul.f32 0.03125, %v2540_v46 }
0x1036   :  { %v2554_v16 = vsub.f32 %v2532_v28, %v2550_v47 }
0x1037   :  { %v2543_v13 = vpop.xlane.xlu0 %2542  ;;  %v2546_v19 = vpop.xlane.xlu1 %2545 }
0x1038   :  { %v2551_v48 = vmul.f32 0.03125, %v2543_v13  ;;  %v2552_v49 = vmul.f32 0.03125, %v2546_v19  ;;  %v2558_v50 = vmul.f32 %v2554_v16, %v2554_v16 }
0x103a   :  { %v2555_v4 = vsub.f32 %v2533_v39, %v2551_v48  ;;  %v2556_v52 = vsub.f32 %v2534_v37, %v2552_v49  ;;  %v2562_v55 = vsel %vm166_vm0, %v2558_v50, 0.0 }
0x103b   :  { %v2549_v58 = vpop.xlane.xlu0 %2548  ;;  %2563 = vadd.xlane.f32.xlu1 %v2562_v55 }
0x103c   :  { %v2553_v34 = vmul.f32 0.03125, %v2549_v58  ;;  %v2559_v57 = vmul.f32 %v2555_v4, %v2555_v4  ;;  %v2560_v7 = vmul.f32 %v2556_v52, %v2556_v52 }
0x103e   :  { %v2557_v11 = vsub.f32 %v2535_v43, %v2553_v34  ;;  %v2565_v12 = vsel %vm166_vm0, %v2559_v57, 0.0  ;;  %v2568_v60 = vsel %vm166_vm0, %v2560_v7, 0.0 }
0x103f   :  { %2566 = vadd.xlane.f32.xlu0 %v2565_v12  ;;  %2569 = vadd.xlane.f32.xlu1 %v2568_v60 }
0x1040   :  { %v2561_v61 = vmul.f32 %v2557_v11, %v2557_v11 }
0x1042   :  { %v2571_v10 = vsel %vm166_vm0, %v2561_v61, 0.0 }
0x1043   :  { %2572 = vadd.xlane.f32.xlu0 %v2571_v10 }
0x10c4   :  { %v2564_v23 = vpop.xlane.xlu1 %2563 }
0x10c5   :  { %v2574_v24 = vmul.f32 0.03125, %v2564_v23 }
0x10c7   :  { %v2578_v25 = vadd.f32 1e-05, %v2574_v24 }
0x10c8   :  { %v2567_v62 = vpop.xlane.xlu0 %2566  ;;  %v2570_v63 = vpop.xlane.xlu1 %2569 }
0x10c9   :  { %6484 = vrsqrt.f32 %v2578_v25  ;;  %v2575_v0 = vmul.f32 0.03125, %v2567_v62  ;;  %v2576_v1 = vmul.f32 0.03125, %v2570_v63 }
0x10cb   :  { %v2579_v2 = vadd.f32 1e-05, %v2575_v0  ;;  %v2580_v21 = vadd.f32 1e-05, %v2576_v1 }
0x10cc   :  { %v2573_v3 = vpop.xlane.xlu0 %2572 }
0x10cd   :  { %6486 = vrsqrt.f32 %v2579_v2  ;;  %v2577_v5 = vmul.f32 0.03125, %v2573_v3 }
0x10ce   :  { %6488 = vrsqrt.f32 %v2580_v21 }
0x10cf   :  { %v2581_v6 = vadd.f32 1e-05, %v2577_v5 }
0x10d1   :  { %6490 = vrsqrt.f32 %v2581_v6 }
0x10d6   :  { %v6485_v9 = vpop.eup %6484 }
0x10d7   :  { %v2586_v30 = vmul.f32 %v6485_v9, %v2554_v16 }
0x10d9   :  { %v2596_v18 = vmul.f32 %v5504_v53, %v2586_v30 }
0x10da   :  { %v6487_v17 = vpop.eup %6486 }
0x10db   :  { %v6489_v31 = vpop.eup %6488  ;;  %v2587_v54 = vmul.f32 %v6487_v17, %v2555_v4  ;;  %v7283_v27 = vadd.f32 %v5505_v33, %v2596_v18 }
0x10dc   :  { %v2588_v20 = vmul.f32 %v6489_v31, %v2556_v52 }
0x10dd   :  { %v2597_v56 = vmul.f32 %v5504_v53, %v2587_v54 }
0x10de   :  { %v6491_v22 = vpop.eup %6490  ;;  %v2598_v29 = vmul.f32 %v5504_v53, %v2588_v20 }
0x10df   :  { %v2589_v26 = vmul.f32 %v6491_v22, %v2557_v11  ;;  %v7285_v28 = vadd.f32 %v5505_v33, %v2597_v56 }
0x10e0   :  { %v7290_v36 = vadd.f32 %v5505_v33, %v2598_v29 }
0x10e1   :  { %v2615_v32 = vpack.c.bf16 %v7285_v28, %v7283_v27  ;;  %v2599_v35 = vmul.f32 %v5504_v53, %v2589_v26 }
0x10e3   :  { %6081 = vmatprep.mubr.msk.bf16.mxu1 %vm166_vm0, %v2615_v32  ;;  %v7292_v37 = vadd.f32 %v5505_v33, %v2599_v35 }
0x10e5   :  { %v2616_v39 = vpack.c.bf16 %v7292_v37, %v7290_v36 }
0x10e7   :  { %6082 = vmatmul.mubr.msk.bf16.vlgmr.msra.gmra.mxu1 %vm166_vm0, %v2616_v39 }
0x10e8   :  { %6087 = vmatprep.mubr.msk.bf16.mxu1 %vm6603_vm1, %v6602_v8 }
0x11a7   :  { %v6083_v41 = vpop.f32.mrf.mxu1 }
0x11a8   :  { %v2686_v47 = vadd.f32 %v6083_v41, %v5511_v42 }
0x11a9   :  { %v2677_v43 = vpop.f32.mrf.mxu1 }
0x11aa   :  { %v2678_v45 = vadd.f32 %v5511_v42, %v2677_v43  ;;  %v7306_v48 = vpack.c.bf16 %v2686_v47, %v2686_v47 }
0x11ab   :  { %v6084_v46 = vpop.f32.mrf.mxu1 }
0x11ac   :  { %v7302_v16 = vpack.c.bf16 %v2678_v45, %v2678_v45  ;;  %v2689_v49 = vadd.f32 %v6084_v46, %v5511_v42 }
0x11ad   :  { %v2680_v13 = vpop.f32.mrf.mxu1 }
0x11ae   :  { %v2681_v19 = vadd.f32 %v5511_v42, %v2680_v13  ;;  %2702 = vrot.lane.b32.xlu1 %v7302_v16, %s7930_s29  ;;  %v7314_v4 = vpack.c.bf16 %v2689_v49, %v2689_v49 }
0x11b0   :  { %v7308_v50 = vpack.c.bf16 %v2681_v19, %v2681_v19 }
0x11b2   :  { %2751 = vrot.lane.b32.xlu0 %v7308_v50, %s7930_s29  ;;  %2800 = vrot.lane.b32.xlu1 %v7306_v48, %s7930_s29 }
0x11b6   :  { %2849 = vrot.lane.b32.xlu1 %v7314_v4, %s7930_s29  ;;  %s7936_s29 = smov 112  }
0x1220   :  { %v2703_v52 = vpop.permute.xlu1 %2702 }
0x1221   :  { %v2708_v55 = vsel %vm233_vm2, %v2703_v52, 0 }
0x1222   :  { %6086 = vmatpush3.bf16.xpose.msra.mxu1 %v2708_v55 }
0x1223   :  { %6091 = vmatprep.subr.bf16.mxu1 %v6602_v8 }
0x1224   :  { %v2801_v58 = vpop.permute.xlu1 %2800  ;;  %v2752_v34 = vpop.permute.xlu0 %2751 }
0x1225   :  { %v2757_v7 = vsel %vm233_vm2, %v2752_v34, 0  ;;  %v2806_v12 = vsel %vm233_vm2, %v2801_v58, 0 }
0x1228   :  { %v2850_v57 = vpop.permute.xlu1 %2849 }
0x1229   :  { %v2855_v11 = vsel %vm233_vm2, %v2850_v57, 0  ;;  %6088 = vmatmul.mubr.msk.bf16.vlgmr.msra.gmra.mxu1 %vm233_vm2, %v7302_v16 }
0x122a   :  { %6092 = vmatpush3.bf16.xpose.msra.mxu1 %v2757_v7  ;;  %6104 = vmatpush3.bf16.xpose.msra.mxu0 %v2855_v11 }
0x122b   :  { %6093 = vmatprep.mubr.msk.bf16.mxu1 %vm6603_vm1, %v6602_v8  ;;  %6097 = vmatprep.subr.bf16.mxu1 %v6602_v8 }
0x122c   :  { %6115 = vmatprep.subr.bf16.mxu0 %v6602_v8 }
0x1231   :  { %6094 = vmatmul.mubr.msk.bf16.vlgmr.msra.gmra.mxu1 %vm233_vm2, %v7308_v50  ;;  %6106 = vmatmul.mubr.msk.bf16.vlgmr.msra.gmra.mxu0 %vm233_vm2, %v7314_v4 }
0x1232   :  { %6098 = vmatpush3.bf16.xpose.msra.mxu1 %v2806_v12  ;;  %6099 = vmatprep.mubr.msk.bf16.mxu1 %vm6603_vm1, %v6602_v8 }
0x1233   :  { %6109 = vmatprep.subr.bf16.mxu1 %v6602_v8  ;;  %6117 = vmatprep.mubr.msk.bf16.mxu0 %vm6603_vm1, %v6602_v8 }
0x1239   :  { %6100 = vmatmul.mubr.msk.bf16.vlgmr.msra.gmra.mxu1 %vm233_vm2, %v7306_v48 }
0x123a   :  { %6111 = vmatprep.mubr.msk.bf16.mxu1 %vm6603_vm1, %v6602_v8 }
0x12e9   :  { %v2744_v60 = vpop.f32.mrf.mxu1 }
0x12ea   :  { %v2745_v61 = vadd.f32 %v2744_v60, %v6837_v40 }
0x12eb   :  { %v6089_v10 = vpop.f32.mrf.mxu1 }
0x12ec   :  { %v2897_v14 = vsel %vm233_vm2, %v2745_v61, -inf }
0x12ed   :  { %2898 = vmax.xlane.f32.xlu0 %v2897_v14  ;;  %v2747_v15 = vpop.f32.mrf.mxu1 }
0x12ef   :  { %v6090_v23 = vpop.f32.mrf.mxu1 }
0x12f1   :  { %v2793_v24 = vpop.f32.mrf.mxu1  ;;  %v2891_v25 = vpop.f32.mrf.mxu0 }
0x12f2   :  { %v2794_v62 = vadd.f32 %v2793_v24, %v6841_v44  ;;  %v2892_v53 = vadd.f32 %v2891_v25, %v6851_v59 }
0x12f3   :  { %v6095_v63 = vpop.f32.mrf.mxu1  ;;  %v6107_v0 = vpop.f32.mrf.mxu0 }
0x12f4   :  { %v2900_v1 = vsel %vm233_vm2, %v2794_v62, -inf  ;;  %v2906_v18 = vsel %vm233_vm2, %v2892_v53, -inf }
0x12f5   :  { %2901 = vmax.xlane.f32.xlu1 %v2900_v1  ;;  %v2796_v2 = vpop.f32.mrf.mxu1  ;;  %v2894_v21 = vpop.f32.mrf.mxu0 }
0x12f7   :  { %v6096_v3 = vpop.f32.mrf.mxu1  ;;  %v6108_v5 = vpop.f32.mrf.mxu0 }
0x12f9   :  { %v2842_v6 = vpop.f32.mrf.mxu1 }
0x12fa   :  { %v2843_v9 = vadd.f32 %v2842_v6, %v6846_v51 }
0x12fb   :  { %v6101_v30 = vpop.f32.mrf.mxu1 }
0x12fc   :  { %v2903_v17 = vsel %vm233_vm2, %v2843_v9, -inf }
0x12fd   :  { %2904 = vmax.xlane.f32.xlu0 %v2903_v17  ;;  %v2845_v31 = vpop.f32.mrf.mxu1 }
0x12ff   :  { %v6102_v54 = vpop.f32.mrf.mxu1 }
0x1301   :  { %2907 = vmax.xlane.f32.xlu0 %v2906_v18 }
0x1306   :  { %2945 = vrot.lane.b32.xlu1 %v7302_v16, %s7931_s5 }
0x1376   :  { %v2899_v20 = vpop.xlane.xlu0 %2898 }
0x1377   :  { %v2909_v33 = vsub.f32 %v2745_v61, %v2899_v20 }
0x1379   :  { %v2913_v56 = vmul.f32 1.442695, %v2909_v33 }
0x137b   :  { %6492 = vpow2.f32 %v2913_v56 }
0x137e   :  { %v2902_v22 = vpop.xlane.xlu1 %2901 }
0x137f   :  { %v2910_v39 = vsub.f32 %v2794_v62, %v2902_v22 }
0x1381   :  { %v2915_v45 = vmul.f32 1.442695, %v2910_v39 }
0x1382   :  { %v2946_v26 = vpop.permute.xlu1 %2945 }
0x1383   :  { %v2951_v29 = vsel %vm480_vm3, %v2946_v26, 0 }
0x1384   :  { %6110 = vmatpush3.bf16.msra.mxu1 %v2951_v29 }
0x1385   :  { %6121 = vmatprep.subr.bf16.mxu1 %v6602_v8 }
0x1386   :  { %v2905_v32 = vpop.xlane.xlu0 %2904 }
0x1387   :  { %v2911_v52 = vsub.f32 %v2843_v9, %v2905_v32 }
0x1388   :  { %v6493_v35 = vpop.eup %6492 }
0x1389   :  { %v2921_v41 = vsel %vm233_vm2, %v6493_v35, 0.0  ;;  %v2917_v55 = vmul.f32 1.442695, %v2911_v52 }
0x138a   :  { %2922 = vadd.xlane.f32.xlu1 %v2921_v41  ;;  %v2908_v42 = vpop.xlane.xlu0 %2907 }
0x138b   :  { %v2912_v43 = vsub.f32 %v2892_v53, %v2908_v42 }
0x138d   :  { %v2919_v46 = vmul.f32 1.442695, %v2912_v43 }
0x138f   :  { %6494 = vpow2.f32 %v2919_v46 }
0x1390   :  { %6496 = vpow2.f32 %v2915_v45 }
0x1391   :  { %6498 = vpow2.f32 %v2917_v55 }
0x139b   :  { %3041 = vrot.lane.b32.xlu1 %v7306_v48, %s7931_s5 }
0x139c   :  { %v6495_v47 = vpop.eup %6494 }
0x139d   :  { %v2930_v13 = vsel %vm233_vm2, %v6495_v47, 0.0  ;;  %v6497_v19 = vpop.eup %6496 }
0x139e   :  { %2931 = vadd.xlane.f32.xlu0 %v2930_v13  ;;  %v2924_v49 = vsel %vm233_vm2, %v6497_v19, 0.0  ;;  %v6499_v58 = vpop.eup %6498 }
0x139f   :  { %3089 = vrot.lane.b32.xlu1 %v7314_v4, %s7931_s5  ;;  %v2927_v34 = vsel %vm233_vm2, %v6499_v58, 0.0 }
0x13a2   :  { %2925 = vadd.xlane.f32.xlu0 %v2924_v49 }
0x13a3   :  { %3191 = vrot.lane.b32.xlu1 %v7308_v50, %s7932_s1 }
0x13b8   :  { %2993 = vrot.lane.b32.xlu0 %v7308_v50, %s7931_s5  ;;  %s7939_s5 = smov 104  }
0x13bc   :  { %3141 = vrot.lane.b32.xlu0 %v7302_v16, %s7932_s1 }
0x13c0   :  { %3139 = vrot.lane.b32.xlu0 %v7302_v16, %s7933_s4 }
0x13c4   :  { %3241 = vrot.lane.b32.xlu0 %v7306_v48, %s7932_s1 }
0x13c7   :  { %2928 = vadd.xlane.f32.xlu1 %v2927_v34 }
0x13c8   :  { %3239 = vrot.lane.b32.xlu0 %v7306_v48, %s7933_s4 }
0x13d8   :  { %3189 = vrot.lane.b32.xlu1 %v7308_v50, %s7933_s4 }
0x13dc   :  { %3291 = vrot.lane.b32.xlu1 %v7314_v4, %s7932_s1 }
0x13e0   :  { %3289 = vrot.lane.b32.xlu1 %v7314_v4, %s7933_s4 }
0x1413   :  { %v2923_v57 = vpop.xlane.xlu1 %2922 }
0x1414   :  { %6500 = vrcp.f32 %v2923_v57 }
0x1417   :  { %v3042_v12 = vpop.permute.xlu1 %3041 }
0x1418   :  { %v3047_v61 = vsel %vm480_vm3, %v3042_v12, 0 }
0x141b   :  { %v3090_v62 = vpop.permute.xlu1 %3089 }
0x141c   :  { %v3095_v1 = vsel %vm480_vm3, %v3090_v62, 0 }
0x141f   :  { %v3192_v21 = vpop.permute.xlu1 %3191 }
0x1420   :  { %v3197_v5 = vsel %vm233_vm2, %v3192_v21, 0 }
0x1421   :  { %v6501_v7 = vpop.eup %6500 }
0x1422   :  { %v2937_v11 = vmul.f32 %v6501_v7, %v6493_v35 }
0x1424   :  { %v2941_v60 = vpack.c.bf16 %v2937_v11, %v2937_v11 }
0x1426   :  { %6112 = vmatmul.mubr.msk.bf16.vlgmr.msra.gmra.mxu1 %vm233_vm2, %v2941_v60 }
0x1427   :  { %6122 = vmatpush3.bf16.msra.mxu1 %v3047_v61  ;;  %v2932_v10 = vpop.xlane.xlu0 %2931  ;;  %6123 = vmatprep.mubr.msk.bf16.mxu1 %vm6603_vm1, %v6602_v8 }
0x1428   :  { %6133 = vmatprep.subr.bf16.mxu1 %v6602_v8 }
0x142b   :  { %v2926_v14 = vpop.xlane.xlu0 %2925 }
0x142c   :  { %6502 = vrcp.f32 %v2926_v14 }
0x142d   :  { %6504 = vrcp.f32 %v2932_v10 }
0x142f   :  { %v2994_v15 = vpop.permute.xlu0 %2993 }
0x1430   :  { %v2999_v23 = vsel %vm480_vm3, %v2994_v15, 0 }
0x1431   :  { %6116 = vmatpush3.bf16.msra.mxu0 %v2999_v23 }
0x1432   :  { %6127 = vmatprep.subr.bf16.mxu0 %v6602_v8 }
0x1433   :  { %v3142_v17 = vpop.permute.xlu0 %3141 }
0x1434   :  { %v3147_v56 = vsel %vm233_vm2, %v3142_v17, 0 }
0x1437   :  { %v3140_v33 = vpop.permute.xlu0 %3139 }
0x1439   :  { %v6503_v24 = vpop.eup %6502 }
0x143a   :  { %v2938_v25 = vmul.f32 %v6503_v24, %v6497_v19  ;;  %v6505_v0 = vpop.eup %6504 }
0x143b   :  { %v2940_v2 = vmul.f32 %v6505_v0, %v6495_v47  ;;  %v3242_v22 = vpop.permute.xlu0 %3241 }
0x143c   :  { %v2942_v63 = vpack.c.bf16 %v2938_v25, %v2938_v25  ;;  %v3247_v26 = vsel %vm233_vm2, %v3242_v22, 0 }
0x143d   :  { %v2944_v3 = vpack.c.bf16 %v2940_v2, %v2940_v2 }
0x143e   :  { %6118 = vmatmul.mubr.msk.bf16.vlgmr.msra.gmra.mxu0 %vm233_vm2, %v2942_v63 }
0x143f   :  { %6128 = vmatpush3.bf16.msra.mxu0 %v3095_v1  ;;  %6129 = vmatprep.mubr.msk.bf16.mxu0 %vm6603_vm1, %v6602_v8  ;;  %v3240_v29 = vpop.permute.xlu0 %3239 }
0x1440   :  { %6139 = vmatprep.subr.bf16.mxu0 %v6602_v8 }
0x1446   :  { %6130 = vmatmul.mubr.msk.bf16.vlgmr.msra.gmra.mxu0 %vm233_vm2, %v2944_v3 }
0x1447   :  { %6140 = vmatpush3.bf16.xpose.msra.mxu0 %v3197_v5  ;;  %6141 = vmatprep.mubr.msk.bf16.mxu0 %vm6603_vm1, %v6602_v8 }
0x1448   :  { %6151 = vmatprep.subr.bf16.mxu0 %v6602_v8 }
0x1450   :  { %v2929_v6 = vpop.xlane.xlu1 %2928 }
0x1451   :  { %6506 = vrcp.f32 %v2929_v6 }
0x1454   :  { %v3190_v9 = vpop.permute.xlu1 %3189 }
0x1455   :  { %6142 = vmatmul.mubr.msk.bf16.vlgmr.msra.gmra.mxu0 %vm233_vm2, %v3190_v9 }
0x1456   :  { %6153 = vmatprep.mubr.msk.bf16.mxu0 %vm6603_vm1, %v6602_v8 }
0x1458   :  { %v3292_v30 = vpop.permute.xlu1 %3291 }
0x1459   :  { %v3297_v53 = vsel %vm233_vm2, %v3292_v30, 0 }
0x145a   :  { %6152 = vmatpush3.bf16.xpose.msra.mxu0 %v3297_v53 }
0x145b   :  { %6163 = vmatprep.subr.bf16.mxu0 %v6602_v8 }
0x145c   :  { %v3290_v18 = vpop.permute.xlu1 %3289 }
0x145e   :  { %v6507_v31 = vpop.eup %6506 }
0x145f   :  { %v2939_v54 = vmul.f32 %v6507_v31, %v6499_v58 }
0x1461   :  { %6154 = vmatmul.mubr.msk.bf16.vlgmr.msra.gmra.mxu0 %vm233_vm2, %v3290_v18  ;;  %v2943_v20 = vpack.c.bf16 %v2939_v54, %v2939_v54 }
0x1462   :  { %6165 = vmatprep.mubr.msk.bf16.mxu0 %vm6603_vm1, %v6602_v8 }
0x1463   :  { %6124 = vmatmul.mubr.msk.bf16.vlgmr.msra.gmra.mxu1 %vm233_vm2, %v2943_v20 }
0x1464   :  { %6134 = vmatpush3.bf16.xpose.msra.mxu1 %v3147_v56  ;;  %6135 = vmatprep.mubr.msk.bf16.mxu1 %vm6603_vm1, %v6602_v8 }
0x1465   :  { %6145 = vmatprep.subr.bf16.mxu1 %v6602_v8 }
0x146b   :  { %6136 = vmatmul.mubr.msk.bf16.vlgmr.msra.gmra.mxu1 %vm233_vm2, %v3140_v33 }
0x146c   :  { %6146 = vmatpush3.bf16.xpose.msra.mxu1 %v3247_v26  ;;  %6147 = vmatprep.mubr.msk.bf16.mxu1 %vm6603_vm1, %v6602_v8 }
0x146d   :  { %6157 = vmatprep.subr.bf16.mxu1 %v6602_v8 }
0x1473   :  { %6148 = vmatmul.mubr.msk.bf16.vlgmr.msra.gmra.mxu1 %vm233_vm2, %v3240_v29 }
0x1474   :  { %6159 = vmatprep.mubr.msk.bf16.mxu1 %vm6603_vm1, %v6602_v8 }
0x14e6   :  { %v7418_v32 = vpop.f32.mrf.mxu1 }
0x14e8   :  { %v6113_v35 = vpop.f32.mrf.mxu1 }
0x14ea   :  { %v2990_v39 = vpop.f32.mrf.mxu1 }
0x14ec   :  { %v6114_v41 = vpop.f32.mrf.mxu1 }
0x14fe   :  { %v7420_v42 = vpop.f32.mrf.mxu0 }
0x14ff   :  { %v3137_v43 = vpack.c.bf16 %v7420_v42, %v7418_v32 }
0x1500   :  { %v6119_v45 = vpop.f32.mrf.mxu0 }
0x1502   :  { %v3038_v46 = vpop.f32.mrf.mxu0 }
0x1504   :  { %v6120_v47 = vpop.f32.mrf.mxu0 }
0x1506   :  { %v7424_v13 = vpop.f32.mrf.mxu0 }
0x1508   :  { %v6131_v19 = vpop.f32.mrf.mxu0 }
0x150a   :  { %v3134_v49 = vpop.f32.mrf.mxu0 }
0x150c   :  { %v6132_v52 = vpop.f32.mrf.mxu0 }
0x1515   :  { %v3233_v55 = vpop.f32.mrf.mxu0 }
0x1516   :  { %v3234_v58 = vadd.f32 %v3233_v55, %v6841_v44 }
0x1517   :  { %v6143_v34 = vpop.f32.mrf.mxu0 }
0x1518   :  { %v3342_v57 = vsel %vm233_vm2, %v3234_v58, -inf }
0x1519   :  { %3343 = vmax.xlane.f32.xlu1 %v3342_v57  ;;  %v3236_v7 = vpop.f32.mrf.mxu0 }
0x151b   :  { %v6144_v11 = vpop.f32.mrf.mxu0 }
0x1521   :  { %v3333_v12 = vpop.f32.mrf.mxu0 }
0x1522   :  { %v3334_v9 = vadd.f32 %v3333_v12, %v6851_v59 }
0x1523   :  { %v7428_v60 = vpop.f32.mrf.mxu1  ;;  %v6155_v61 = vpop.f32.mrf.mxu0 }
0x1524   :  { %v3138_v10 = vpack.c.bf16 %v7424_v13, %v7428_v60  ;;  %v3348_v31 = vsel %vm233_vm2, %v3334_v9, -inf  ;;  %v5517_v13 = vld [vmem:[%s7921_s3 + $0x14] sm:$0xf] }
0x1525   :  { %v6125_v14 = vpop.f32.mrf.mxu1  ;;  %v3336_v15 = vpop.f32.mrf.mxu0  ;;  %v3588_v60 = vsel %vm480_vm3, %v5517_v13, 0 }
0x1527   :  { %v3086_v23 = vpop.f32.mrf.mxu1  ;;  %v6156_v24 = vpop.f32.mrf.mxu0 }
0x1529   :  { %v6126_v25 = vpop.f32.mrf.mxu1 }
0x152a   :  { %3387 = vrot.lane.b32.xlu1 %v7302_v16, %s7934_s11 }
0x152b   :  { %v3183_v62 = vpop.f32.mrf.mxu1 }
0x152c   :  { %v3184_v63 = vadd.f32 %v3183_v62, %v6837_v40 }
0x152d   :  { %v6137_v0 = vpop.f32.mrf.mxu1 }
0x152e   :  { %v3339_v1 = vsel %vm233_vm2, %v3184_v63, -inf }
0x152f   :  { %3340 = vmax.xlane.f32.xlu0 %v3339_v1  ;;  %v3186_v2 = vpop.f32.mrf.mxu1 }
0x1531   :  { %v6138_v21 = vpop.f32.mrf.mxu1 }
0x1533   :  { %v3283_v3 = vpop.f32.mrf.mxu1 }
0x1534   :  { %v3284_v5 = vadd.f32 %v3283_v3, %v6846_v51 }
0x1535   :  { %v6149_v6 = vpop.f32.mrf.mxu1 }
0x1536   :  { %v3345_v30 = vsel %vm233_vm2, %v3284_v5, -inf }
0x1537   :  { %3346 = vmax.xlane.f32.xlu0 %v3345_v30  ;;  %v3286_v53 = vpop.f32.mrf.mxu1 }
0x1539   :  { %v6150_v17 = vpop.f32.mrf.mxu1 }
0x153b   :  { %3349 = vmax.xlane.f32.xlu0 %v3348_v31 }
0x15a2   :  { %v3344_v54 = vpop.xlane.xlu1 %3343 }
0x15a3   :  { %v3352_v18 = vsub.f32 %v3234_v58, %v3344_v54 }
0x15a5   :  { %v3357_v20 = vmul.f32 1.442695, %v3352_v18 }
0x15a6   :  { %v3388_v33 = vpop.permute.xlu1 %3387 }
0x15a7   :  { %6508 = vpow2.f32 %v3357_v20  ;;  %v3393_v56 = vsel %vm480_vm3, %v3388_v33, 0 }
0x15a8   :  { %6158 = vmatpush3.bf16.msra.mxu1 %v3393_v56 }
0x15a9   :  { %6169 = vmatprep.subr.bf16.mxu1 %v6602_v8 }
0x15b4   :  { %v6509_v22 = vpop.eup %6508 }
0x15b5   :  { %v3366_v26 = vsel %vm233_vm2, %v6509_v22, 0.0 }
0x15b6   :  { %3367 = vadd.xlane.f32.xlu0 %v3366_v26 }
0x15b8   :  { %v3341_v29 = vpop.xlane.xlu0 %3340 }
0x15b9   :  { %v3351_v35 = vsub.f32 %v3184_v63, %v3341_v29 }
0x15bb   :  { %v3355_v39 = vmul.f32 1.442695, %v3351_v35 }
0x15bd   :  { %6510 = vpow2.f32 %v3355_v39 }
0x15c0   :  { %v3347_v41 = vpop.xlane.xlu0 %3346 }
0x15c1   :  { %v3353_v45 = vsub.f32 %v3284_v5, %v3347_v41  ;;  %v5516_v5 = vld [vmem:[%s7921_s3 + $0x10] sm:$0xf] }
0x15c2   :  { %v3646_v18 = vsel %vm480_vm3, %v5516_v5, 0 }
0x15c3   :  { %v3359_v46 = vmul.f32 1.442695, %v3353_v45 }
0x15c4   :  { %v3350_v47 = vpop.xlane.xlu0 %3349 }
0x15c5   :  { %6512 = vpow2.f32 %v3359_v46  ;;  %v3354_v19 = vsub.f32 %v3334_v9, %v3350_v47 }
0x15c7   :  { %v3361_v49 = vmul.f32 1.442695, %v3354_v19 }
0x15c9   :  { %6514 = vpow2.f32 %v3361_v49 }
0x15ca   :  { %v6511_v52 = vpop.eup %6510 }
0x15cb   :  { %v3363_v55 = vsel %vm233_vm2, %v6511_v52, 0.0 }
0x15cc   :  { %3364 = vadd.xlane.f32.xlu1 %v3363_v55 }
0x15d2   :  { %v6513_v58 = vpop.eup %6512 }
0x15d3   :  { %v3369_v34 = vsel %vm233_vm2, %v6513_v58, 0.0 }
0x15d4   :  { %3370 = vadd.xlane.f32.xlu1 %v3369_v34 }
0x15d6   :  { %v6515_v57 = vpop.eup %6514 }
0x15d7   :  { %v3372_v7 = vsel %vm233_vm2, %v6515_v57, 0.0 }
0x15d8   :  { %3373 = vadd.xlane.f32.xlu0 %v3372_v7 }
0x15e5   :  { %3483 = vrot.lane.b32.xlu1 %v7306_v48, %s7934_s11 }
0x15e9   :  { %3531 = vrot.lane.b32.xlu1 %v7314_v4, %s7934_s11 }
0x15ed   :  { %3749 = vrot.lane.b32.xlu1 %v7308_v50, %s7935_s9 }
0x15ee   :  { %3435 = vrot.lane.b32.xlu0 %v7308_v50, %s7934_s11  ;;  %s7940_s11 = smov 40  }
0x15f1   :  { %3747 = vrot.lane.b32.xlu1 %v7308_v50, %s7936_s29 }
0x15f2   :  { %3699 = vrot.lane.b32.xlu0 %v7302_v16, %s7935_s9 }
0x15f5   :  { %3849 = vrot.lane.b32.xlu1 %v7314_v4, %s7935_s9 }
0x15f6   :  { %3697 = vrot.lane.b32.xlu0 %v7302_v16, %s7936_s29 }
0x15f9   :  { %3847 = vrot.lane.b32.xlu1 %v7314_v4, %s7936_s29 }
0x15fa   :  { %3799 = vrot.lane.b32.xlu0 %v7306_v48, %s7935_s9  ;;  %s7937_s9 = smov 48  }
0x15fe   :  { %3797 = vrot.lane.b32.xlu0 %v7306_v48, %s7936_s29  ;;  %s7938_s29 = smov 72  }
0x163f   :  { %v3368_v11 = vpop.xlane.xlu0 %3367 }
0x1640   :  { %6516 = vrcp.f32 %v3368_v11 }
0x164d   :  { %v6517_v14 = vpop.eup %6516 }
0x164e   :  { %v3380_v62 = vmul.f32 %v6517_v14, %v6509_v22 }
0x1650   :  { %v3384_v3 = vpack.c.bf16 %v3380_v62, %v3380_v62 }
0x1655   :  { %v3365_v12 = vpop.xlane.xlu1 %3364 }
0x1656   :  { %6518 = vrcp.f32 %v3365_v12 }
0x165d   :  { %v3371_v61 = vpop.xlane.xlu1 %3370 }
0x165e   :  { %6520 = vrcp.f32 %v3371_v61 }
0x1661   :  { %v3374_v15 = vpop.xlane.xlu0 %3373  ;;  %v3484_v23 = vpop.permute.xlu1 %3483 }
0x1662   :  { %6522 = vrcp.f32 %v3374_v15  ;;  %v3489_v21 = vsel %vm480_vm3, %v3484_v23, 0 }
0x1663   :  { %v6519_v24 = vpop.eup %6518 }
0x1664   :  { %v3379_v25 = vmul.f32 %v6519_v24, %v6511_v52 }
0x1665   :  { %v3436_v63 = vpop.permute.xlu0 %3435  ;;  %v3532_v2 = vpop.permute.xlu1 %3531 }
0x1666   :  { %v3441_v0 = vsel %vm480_vm3, %v3436_v63, 0  ;;  %v3383_v1 = vpack.c.bf16 %v3379_v25, %v3379_v25  ;;  %v3537_v6 = vsel %vm480_vm3, %v3532_v2, 0 }
0x1667   :  { %6164 = vmatpush3.bf16.msra.mxu0 %v3441_v0 }
0x1668   :  { %6160 = vmatmul.mubr.msk.bf16.vlgmr.msra.gmra.mxu1 %vm233_vm2, %v3383_v1  ;;  %6175 = vmatprep.subr.bf16.mxu0 %v6602_v8 }
0x1669   :  { %6170 = vmatpush3.bf16.msra.mxu1 %v3489_v21  ;;  %6171 = vmatprep.mubr.msk.bf16.mxu1 %vm6603_vm1, %v6602_v8  ;;  %v3750_v20 = vpop.permute.xlu1 %3749  ;;  %v3700_v46 = vpop.permute.xlu0 %3699 }
0x166a   :  { %6166 = vmatmul.mubr.msk.bf16.vlgmr.msra.gmra.mxu0 %vm233_vm2, %v3384_v3  ;;  %v3755_v56 = vsel %vm233_vm2, %v3750_v20, 0  ;;  %6361 = vmatprep.subr.msk.bf16.mxu1 %vm480_vm3, %v5517_v13  ;;  %v3705_v11 = vsel %vm233_vm2, %v3700_v46, 0 }
0x166b   :  { %v6521_v9 = vpop.eup %6520  ;;  %6176 = vmatpush3.bf16.msra.mxu0 %v3537_v6  ;;  %6177 = vmatprep.mubr.msk.bf16.mxu0 %vm6603_vm1, %v6602_v8 }
0x166c   :  { %v3381_v30 = vmul.f32 %v6521_v9, %v6513_v58  ;;  %6362 = vmatprep.subr.msk.bf16.mxu0 %vm480_vm3, %v5516_v5 }
0x166d   :  { %v3748_v33 = vpop.permute.xlu1 %3747  ;;  %v3698_v58 = vpop.permute.xlu0 %3697 }
0x166e   :  { %v3385_v53 = vpack.c.bf16 %v3381_v30, %v3381_v30 }
0x166f   :  { %v6523_v17 = vpop.eup %6522 }
0x1670   :  { %6172 = vmatmul.mubr.msk.bf16.vlgmr.msra.gmra.mxu1 %vm233_vm2, %v3385_v53  ;;  %v3382_v31 = vmul.f32 %v6523_v17, %v6515_v57 }
0x1671   :  { %v3850_v32 = vpop.permute.xlu1 %3849  ;;  %6182 = vmatpush3.bf16.msra.mxu1 %v3588_v60  ;;  %v3800_v14 = vpop.permute.xlu0 %3799 }
0x1672   :  { %v3386_v54 = vpack.c.bf16 %v3382_v31, %v3382_v31  ;;  %v3855_v42 = vsel %vm233_vm2, %v3850_v32, 0  ;;  %6193 = vmatprep.subr.bf16.mxu1 %v6602_v8  ;;  %v3805_v24 = vsel %vm233_vm2, %v3800_v14, 0 }
0x1674   :  { %6178 = vmatmul.mubr.msk.bf16.vlgmr.msra.gmra.mxu0 %vm233_vm2, %v3386_v54 }
0x1675   :  { %6189 = vmatprep.mubr.msk.bf16.mxu0 %vm233_vm2, %v3137_v43  ;;  %6188 = vmatpush3.bf16.msra.mxu0 %v3646_v18  ;;  %v3848_v43 = vpop.permute.xlu1 %3847  ;;  %v3798_v1 = vpop.permute.xlu0 %3797 }
0x1676   :  { %6199 = vmatprep.subr.bf16.mxu0 %v6602_v8 }
0x167c   :  { %6190 = vmatmul.mubr.msk.bf16.vlgmr.msra.gmra.mxu0 %vm233_vm2, %v3138_v10 }
0x167d   :  { %6200 = vmatpush3.bf16.xpose.msra.mxu0 %v3755_v56  ;;  %6201 = vmatprep.mubr.msk.bf16.mxu0 %vm6603_vm1, %v6602_v8 }
0x167e   :  { %6211 = vmatprep.subr.bf16.mxu0 %v6602_v8 }
0x1684   :  { %6202 = vmatmul.mubr.msk.bf16.vlgmr.msra.gmra.mxu0 %vm233_vm2, %v3748_v33 }
0x1685   :  { %6212 = vmatpush3.bf16.xpose.msra.mxu0 %v3855_v42  ;;  %6213 = vmatprep.mubr.msk.bf16.mxu0 %vm6603_vm1, %v6602_v8 }
0x1686   :  { %6223 = vmatprep.subr.bf16.mxu0 %v6602_v8 }
0x168c   :  { %6214 = vmatmul.mubr.msk.bf16.vlgmr.msra.gmra.mxu0 %vm233_vm2, %v3848_v43 }
0x168d   :  { %6225 = vmatprep.mubr.msk.bf16.mxu0 %vm6603_vm1, %v6602_v8 }
0x1728   :  { %v3429_v10 = vpop.f32.mrf.mxu1 }
0x172a   :  { %v6161_v22 = vpop.f32.mrf.mxu1  ;;  %v3477_v26 = vpop.f32.mrf.mxu0 }
0x172b   :  { %v3579_v29 = vpack.c.bf16 %v3477_v26, %v3429_v10 }
0x172c   :  { %v3432_v35 = vpop.f32.mrf.mxu1  ;;  %v6167_v39 = vpop.f32.mrf.mxu0 }
0x172d   :  { %6183 = vmatprep.mubr.msk.bf16.mxu1 %vm233_vm2, %v3579_v29 }
0x172e   :  { %v6162_v41 = vpop.f32.mrf.mxu1  ;;  %v3480_v45 = vpop.f32.mrf.mxu0 }
0x1730   :  { %v6168_v47 = vpop.f32.mrf.mxu0  ;;  %v3525_v19 = vpop.f32.mrf.mxu1 }
0x1732   :  { %v6173_v49 = vpop.f32.mrf.mxu1 }
0x1734   :  { %v3528_v52 = vpop.f32.mrf.mxu1  ;;  %v3573_v55 = vpop.f32.mrf.mxu0 }
0x1735   :  { %v3580_v34 = vpack.c.bf16 %v3573_v55, %v3525_v19 }
0x1736   :  { %v6174_v57 = vpop.f32.mrf.mxu1  ;;  %v6179_v7 = vpop.f32.mrf.mxu0 }
0x1737   :  { %6184 = vmatmul.mubr.msk.bf16.vlgmr.msra.gmra.mxu1 %vm233_vm2, %v3580_v34 }
0x1738   :  { %6194 = vmatpush3.bf16.xpose.msra.mxu1 %v3705_v11  ;;  %v3576_v12 = vpop.f32.mrf.mxu0  ;;  %6195 = vmatprep.mubr.msk.bf16.mxu1 %vm6603_vm1, %v6602_v8 }
0x1739   :  { %6205 = vmatprep.subr.bf16.mxu1 %v6602_v8 }
0x173a   :  { %v6180_v61 = vpop.f32.mrf.mxu0 }
0x173c   :  { %v7518_v15 = vpop.f32.mrf.mxu0 }
0x173e   :  { %v7520_v23 = vpop.f32.mrf.mxu0 }
0x173f   :  { %6196 = vmatmul.mubr.msk.bf16.vlgmr.msra.gmra.mxu1 %vm233_vm2, %v3698_v58 }
0x1740   :  { %6206 = vmatpush3.bf16.xpose.msra.mxu1 %v3805_v24  ;;  %v7524_v25 = vpop.f32.mrf.mxu0  ;;  %6207 = vmatprep.mubr.msk.bf16.mxu1 %vm6603_vm1, %v6602_v8 }
0x1741   :  { %6217 = vmatprep.subr.bf16.mxu1 %v6602_v8 }
0x1742   :  { %v7529_v62 = vpop.f32.mrf.mxu0 }
0x1744   :  { %v3791_v63 = vpop.f32.mrf.mxu0 }
0x1745   :  { %v3792_v0 = vadd.f32 %v3791_v63, %v6841_v44 }
0x1746   :  { %v6203_v2 = vpop.f32.mrf.mxu0 }
0x1747   :  { %6208 = vmatmul.mubr.msk.bf16.vlgmr.msra.gmra.mxu1 %vm233_vm2, %v3798_v1  ;;  %v3900_v21 = vsel %vm233_vm2, %v3792_v0, -inf }
0x1748   :  { %3901 = vmax.xlane.f32.xlu1 %v3900_v21  ;;  %v3794_v3 = vpop.f32.mrf.mxu0  ;;  %6219 = vmatprep.mubr.msk.bf16.mxu1 %vm6603_vm1, %v6602_v8 }
0x174a   :  { %v6204_v5 = vpop.f32.mrf.mxu0 }
0x174c   :  { %v3891_v6 = vpop.f32.mrf.mxu0 }
0x174d   :  { %v3892_v41 = vadd.f32 %v3891_v6, %v6851_v59 }
0x174e   :  { %v6215_v9 = vpop.f32.mrf.mxu0 }
0x174f   :  { %v3906_v19 = vsel %vm233_vm2, %v3892_v41, -inf }
0x1750   :  { %v3894_v30 = vpop.f32.mrf.mxu0 }
0x1752   :  { %v6216_v53 = vpop.f32.mrf.mxu0 }
0x1759   :  { %3945 = vrot.lane.b32.xlu1 %v7302_v16, %s7937_s9 }
0x175d   :  { %4041 = vrot.lane.b32.xlu1 %v7306_v48, %s7937_s9 }
0x17d1   :  { %v3902_v17 = vpop.xlane.xlu1 %3901 }
0x17d2   :  { %v3910_v33 = vsub.f32 %v3792_v0, %v3902_v17 }
0x17d4   :  { %v3915_v42 = vmul.f32 1.442695, %v3910_v33 }
0x17d5   :  { %v3946_v31 = vpop.permute.xlu1 %3945 }
0x17d6   :  { %v3951_v54 = vsel %vm480_vm3, %v3946_v31, 0  ;;  %6524 = vpow2.f32 %v3915_v42 }
0x17d7   :  { %6218 = vmatpush3.bf16.msra.mxu1 %v3951_v54 }
0x17d8   :  { %6229 = vmatprep.subr.bf16.mxu1 %v6602_v8 }
0x17d9   :  { %v4042_v3 = vpop.permute.xlu1 %4041 }
0x17e3   :  { %v6525_v49 = vpop.eup %6524 }
0x17e4   :  { %v3924_v52 = vsel %vm233_vm2, %v6525_v49, 0.0 }
0x17f7   :  { %v7542_v18 = vpop.f32.mrf.mxu1 }
0x17f9   :  { %v7544_v20 = vpop.f32.mrf.mxu1 }
0x17fb   :  { %v7546_v56 = vpop.f32.mrf.mxu1 }
0x17fd   :  { %v7548_v32 = vpop.f32.mrf.mxu1 }
0x17ff   :  { %v3741_v43 = vpop.f32.mrf.mxu1 }
0x1800   :  { %v3742_v13 = vadd.f32 %v3741_v43, %v6837_v40 }
0x1801   :  { %v6197_v60 = vpop.f32.mrf.mxu1 }
0x1802   :  { %v3897_v10 = vsel %vm233_vm2, %v3742_v13, -inf  ;;  %v4047_v60 = vsel %vm480_vm3, %v4042_v3, 0 }
0x1803   :  { %3898 = vmax.xlane.f32.xlu0 %v3897_v10  ;;  %v3744_v22 = vpop.f32.mrf.mxu1 }
0x1805   :  { %v6198_v26 = vpop.f32.mrf.mxu1 }
0x1807   :  { %v3841_v29 = vpop.f32.mrf.mxu1 }
0x1808   :  { %v3842_v35 = vadd.f32 %v3841_v29, %v6846_v51 }
0x1809   :  { %v6209_v39 = vpop.f32.mrf.mxu1 }
0x180a   :  { %v3903_v45 = vsel %vm233_vm2, %v3842_v35, -inf }
0x180b   :  { %3904 = vmax.xlane.f32.xlu0 %v3903_v45  ;;  %v3844_v46 = vpop.f32.mrf.mxu1 }
0x180d   :  { %v6210_v47 = vpop.f32.mrf.mxu1 }
0x180f   :  { %3907 = vmax.xlane.f32.xlu0 %v3906_v19 }
0x1813   :  { %3925 = vadd.xlane.f32.xlu0 %v3924_v52 }
0x188c   :  { %v3899_v55 = vpop.xlane.xlu0 %3898 }
0x188d   :  { %v3909_v58 = vsub.f32 %v3742_v13, %v3899_v55 }
0x188f   :  { %v3913_v34 = vmul.f32 1.442695, %v3909_v58  ;;  %v5518_v58 = vld [vmem:[%s7921_s3 + $0x18] sm:$0xf] }
0x1891   :  { %6526 = vpow2.f32 %v3913_v34  ;;  %v4146_v34 = vsel %vm480_vm3, %v5518_v58, 0 }
0x1894   :  { %v3905_v57 = vpop.xlane.xlu0 %3904 }
0x1895   :  { %v3911_v7 = vsub.f32 %v3842_v35, %v3905_v57 }
0x1897   :  { %v3917_v11 = vmul.f32 1.442695, %v3911_v7 }
0x1898   :  { %v3908_v12 = vpop.xlane.xlu0 %3907 }
0x1899   :  { %6528 = vpow2.f32 %v3917_v11  ;;  %v3912_v61 = vsub.f32 %v3892_v41, %v3908_v12 }
0x189b   :  { %v3919_v14 = vmul.f32 1.442695, %v3912_v61 }
0x189c   :  { %v3926_v5 = vpop.xlane.xlu0 %3925 }
0x189d   :  { %6530 = vpow2.f32 %v3919_v14 }
0x189e   :  { %v6527_v24 = vpop.eup %6526  ;;  %6532 = vrcp.f32 %v3926_v5 }
0x189f   :  { %v3921_v63 = vsel %vm233_vm2, %v6527_v24, 0.0 }
0x18a0   :  { %3922 = vadd.xlane.f32.xlu1 %v3921_v63 }
0x18a6   :  { %v6529_v0 = vpop.eup %6528 }
0x18a7   :  { %v3927_v1 = vsel %vm233_vm2, %v6529_v0, 0.0 }
0x18a8   :  { %3928 = vadd.xlane.f32.xlu1 %v3927_v1 }
0x18aa   :  { %v6531_v2 = vpop.eup %6530 }
0x18ab   :  { %v3930_v21 = vsel %vm233_vm2, %v6531_v2, 0.0  ;;  %v6533_v30 = vpop.eup %6532 }
0x18ac   :  { %3931 = vadd.xlane.f32.xlu0 %v3930_v21  ;;  %v3938_v31 = vmul.f32 %v6533_v30, %v6525_v49 }
0x18ae   :  { %v3942_v10 = vpack.c.bf16 %v3938_v31, %v3938_v31 }
0x18b9   :  { %4089 = vrot.lane.b32.xlu1 %v7314_v4, %s7937_s9 }
0x18bd   :  { %4253 = vrot.lane.b32.xlu1 %v7308_v50, %s7938_s29 }
0x18c1   :  { %4251 = vrot.lane.b32.xlu1 %v7308_v50, %s7939_s5 }
0x18c2   :  { %3993 = vrot.lane.b32.xlu0 %v7308_v50, %s7937_s9 }
0x18c5   :  { %4353 = vrot.lane.b32.xlu1 %v7314_v4, %s7938_s29 }
0x18c6   :  { %4203 = vrot.lane.b32.xlu0 %v7302_v16, %s7938_s29 }
0x18c9   :  { %4351 = vrot.lane.b32.xlu1 %v7314_v4, %s7939_s5 }
0x18ca   :  { %4201 = vrot.lane.b32.xlu0 %v7302_v16, %s7939_s5 }
0x18ce   :  { %4303 = vrot.lane.b32.xlu0 %v7306_v48, %s7938_s29 }
0x18d2   :  { %4301 = vrot.lane.b32.xlu0 %v7306_v48, %s7939_s5 }
0x1929   :  { %v3923_v6 = vpop.xlane.xlu1 %3922 }
0x192a   :  { %6534 = vrcp.f32 %v3923_v6 }
0x1931   :  { %v3929_v9 = vpop.xlane.xlu1 %3928 }
0x1932   :  { %6536 = vrcp.f32 %v3929_v9 }
0x1935   :  { %v3932_v53 = vpop.xlane.xlu0 %3931  ;;  %v4090_v13 = vpop.permute.xlu1 %4089 }
0x1936   :  { %6538 = vrcp.f32 %v3932_v53  ;;  %v4095_v22 = vsel %vm480_vm3, %v4090_v13, 0 }
0x1937   :  { %v6535_v17 = vpop.eup %6534 }
0x1938   :  { %v3937_v54 = vmul.f32 %v6535_v17, %v6527_v24 }
0x1939   :  { %v3994_v33 = vpop.permute.xlu0 %3993 }
0x193a   :  { %v3941_v42 = vpack.c.bf16 %v3937_v54, %v3937_v54  ;;  %v3999_v43 = vsel %vm480_vm3, %v3994_v33, 0 }
0x193b   :  { %6224 = vmatpush3.bf16.msra.mxu0 %v3999_v43 }
0x193c   :  { %6220 = vmatmul.mubr.msk.bf16.vlgmr.msra.gmra.mxu1 %vm233_vm2, %v3941_v42  ;;  %6235 = vmatprep.subr.bf16.mxu0 %v6602_v8 }
0x193d   :  { %6230 = vmatpush3.bf16.msra.mxu1 %v4047_v60  ;;  %6231 = vmatprep.mubr.msk.bf16.mxu1 %vm6603_vm1, %v6602_v8  ;;  %v4204_v35 = vpop.permute.xlu0 %4203 }
0x193e   :  { %6226 = vmatmul.mubr.msk.bf16.vlgmr.msra.gmra.mxu0 %vm233_vm2, %v3942_v10  ;;  %v4209_v19 = vsel %vm233_vm2, %v4204_v35, 0  ;;  %6363 = vmatprep.subr.msk.bf16.mxu1 %vm480_vm3, %v5518_v58 }
0x193f   :  { %v6537_v26 = vpop.eup %6536  ;;  %6236 = vmatpush3.bf16.msra.mxu0 %v4095_v22  ;;  %6237 = vmatprep.mubr.msk.bf16.mxu0 %vm6603_vm1, %v6602_v8 }
0x1940   :  { %v3939_v29 = vmul.f32 %v6537_v26, %v6529_v0  ;;  %6247 = vmatprep.subr.bf16.mxu0 %v6602_v8  ;;  %v4254_v0 = vpop.permute.xlu1 %4253 }
0x1941   :  { %v4202_v47 = vpop.permute.xlu0 %4201  ;;  %v4259_v17 = vsel %vm233_vm2, %v4254_v0, 0 }
0x1942   :  { %v3943_v39 = vpack.c.bf16 %v3939_v29, %v3939_v29 }
0x1943   :  { %v6539_v41 = vpop.eup %6538 }
0x1944   :  { %v3940_v45 = vmul.f32 %v6539_v41, %v6531_v2  ;;  %6232 = vmatmul.mubr.msk.bf16.vlgmr.msra.gmra.mxu1 %vm233_vm2, %v3943_v39  ;;  %v4252_v6 = vpop.permute.xlu1 %4251 }
0x1945   :  { %v4304_v49 = vpop.permute.xlu0 %4303  ;;  %6242 = vmatpush3.bf16.msra.mxu1 %v4146_v34 }
0x1946   :  { %v3944_v46 = vpack.c.bf16 %v3940_v45, %v3940_v45  ;;  %v4309_v52 = vsel %vm233_vm2, %v4304_v49, 0  ;;  %6253 = vmatprep.subr.bf16.mxu1 %v6602_v8 }
0x1948   :  { %6238 = vmatmul.mubr.msk.bf16.vlgmr.msra.gmra.mxu0 %vm233_vm2, %v3944_v46  ;;  %v4354_v33 = vpop.permute.xlu1 %4353 }
0x1949   :  { %6248 = vmatpush3.bf16.xpose.msra.mxu0 %v4209_v19  ;;  %6249 = vmatprep.mubr.msk.bf16.mxu0 %vm6603_vm1, %v6602_v8  ;;  %v4302_v55 = vpop.permute.xlu0 %4301  ;;  %v4359_v60 = vsel %vm233_vm2, %v4354_v33, 0 }
0x194a   :  { %6259 = vmatprep.subr.bf16.mxu0 %v6602_v8 }
0x1950   :  { %6250 = vmatmul.mubr.msk.bf16.vlgmr.msra.gmra.mxu0 %vm233_vm2, %v4202_v47 }
0x1951   :  { %6260 = vmatpush3.bf16.xpose.msra.mxu0 %v4309_v52  ;;  %6261 = vmatprep.mubr.msk.bf16.mxu0 %vm6603_vm1, %v6602_v8 }
0x1952   :  { %6271 = vmatprep.subr.bf16.mxu0 %v6602_v8 }
0x1958   :  { %6262 = vmatmul.mubr.msk.bf16.vlgmr.msra.gmra.mxu0 %vm233_vm2, %v4302_v55 }
0x1959   :  { %6273 = vmatprep.mubr.msk.bf16.mxu0 %vm6603_vm1, %v6602_v8 }
0x19fc   :  { %v3987_v57 = vpop.f32.mrf.mxu1 }
0x19fe   :  { %v6221_v7 = vpop.f32.mrf.mxu1  ;;  %v4035_v11 = vpop.f32.mrf.mxu0 }
0x19ff   :  { %v4137_v12 = vpack.c.bf16 %v4035_v11, %v3987_v57  ;;  %v3683_v57 = vadd.f32 %v7520_v23, %v7544_v20 }
0x1a00   :  { %v3990_v61 = vpop.f32.mrf.mxu1  ;;  %v6227_v14 = vpop.f32.mrf.mxu0 }
0x1a01   :  { %6243 = vmatprep.mubr.msk.bf16.mxu1 %vm233_vm2, %v4137_v12  ;;  %v3694_v12 = vadd.f32 %v7524_v25, %v7546_v56 }
0x1a02   :  { %v6222_v24 = vpop.f32.mrf.mxu1  ;;  %v4038_v63 = vpop.f32.mrf.mxu0 }
0x1a03   :  { %v3686_v24 = vadd.f32 %v7529_v62, %v7548_v32 }
0x1a04   :  { %v6228_v1 = vpop.f32.mrf.mxu0  ;;  %v4083_v2 = vpop.f32.mrf.mxu1 }
0x1a06   :  { %v6233_v21 = vpop.f32.mrf.mxu1 }
0x1a08   :  { %v4086_v3 = vpop.f32.mrf.mxu1  ;;  %v4131_v5 = vpop.f32.mrf.mxu0 }
0x1a09   :  { %v4138_v9 = vpack.c.bf16 %v4131_v5, %v4083_v2 }
0x1a0a   :  { %v6234_v30 = vpop.f32.mrf.mxu1  ;;  %v6239_v53 = vpop.f32.mrf.mxu0 }
0x1a0b   :  { %6244 = vmatmul.mubr.msk.bf16.vlgmr.msra.gmra.mxu1 %vm233_vm2, %v4138_v9 }
0x1a0c   :  { %6254 = vmatpush3.bf16.xpose.msra.mxu1 %v4259_v17  ;;  %v4134_v31 = vpop.f32.mrf.mxu0  ;;  %6255 = vmatprep.mubr.msk.bf16.mxu1 %vm6603_vm1, %v6602_v8 }
0x1a0d   :  { %6265 = vmatprep.subr.bf16.mxu1 %v6602_v8 }
0x1a0e   :  { %v6240_v54 = vpop.f32.mrf.mxu0 }
0x1a10   :  { %v4245_v42 = vpop.f32.mrf.mxu0 }
0x1a11   :  { %v4246_v43 = vadd.f32 %v4245_v42, %v6837_v40  ;;  %v4352_v40 = vpop.permute.xlu1 %4351 }
0x1a12   :  { %v6251_v13 = vpop.f32.mrf.mxu0 }
0x1a13   :  { %6256 = vmatmul.mubr.msk.bf16.vlgmr.msra.gmra.mxu1 %vm233_vm2, %v4252_v6  ;;  %v4401_v10 = vsel %vm233_vm2, %v4246_v43, -inf }
0x1a14   :  { %6266 = vmatpush3.bf16.xpose.msra.mxu1 %v4359_v60  ;;  %4402 = vmax.xlane.f32.xlu0 %v4401_v10  ;;  %v4248_v22 = vpop.f32.mrf.mxu0 }
0x1a15   :  { %6267 = vmatprep.mubr.msk.bf16.mxu1 %vm6603_vm1, %v6602_v8  ;;  %6277 = vmatprep.subr.bf16.mxu1 %v6602_v8 }
0x1a16   :  { %v6252_v26 = vpop.f32.mrf.mxu0 }
0x1a18   :  { %v4345_v29 = vpop.f32.mrf.mxu0 }
0x1a19   :  { %v4346_v35 = vadd.f32 %v4345_v29, %v6846_v51  ;;  %v3691_v51 = vadd.f32 %v7518_v15, %v7542_v18 }
0x1a1a   :  { %v6263_v39 = vpop.f32.mrf.mxu0 }
0x1a1b   :  { %6268 = vmatmul.mubr.msk.bf16.vlgmr.msra.gmra.mxu1 %vm233_vm2, %v4352_v40  ;;  %v4407_v41 = vsel %vm233_vm2, %v4346_v35, -inf }
0x1a1c   :  { %4408 = vmax.xlane.f32.xlu0 %v4407_v41  ;;  %v4348_v45 = vpop.f32.mrf.mxu0  ;;  %6279 = vmatprep.mubr.msk.bf16.mxu1 %vm6603_vm1, %v6602_v8 }
0x1a1e   :  { %v6264_v46 = vpop.f32.mrf.mxu0 }
0x1a9d   :  { %v4403_v47 = vpop.xlane.xlu0 %4402 }
0x1a9e   :  { %v4413_v19 = vsub.f32 %v4246_v43, %v4403_v47 }
0x1aa0   :  { %v4417_v52 = vmul.f32 1.442695, %v4413_v19 }
0x1aa2   :  { %6540 = vpow2.f32 %v4417_v52 }
0x1aa5   :  { %v4409_v49 = vpop.xlane.xlu0 %4408 }
0x1aa6   :  { %v4415_v55 = vsub.f32 %v4346_v35, %v4409_v49 }
0x1aa8   :  { %v4421_v58 = vmul.f32 1.442695, %v4415_v55 }
0x1aaa   :  { %6542 = vpow2.f32 %v4421_v58 }
0x1aaf   :  { %v6541_v2 = vpop.eup %6540 }
0x1ab0   :  { %v4425_v21 = vsel %vm233_vm2, %v6541_v2, 0.0 }
0x1ab7   :  { %v6543_v3 = vpop.eup %6542 }
0x1ab8   :  { %v4431_v6 = vsel %vm233_vm2, %v6543_v3, 0.0 }
0x1acb   :  { %v6245_v34 = vpop.f32.mrf.mxu1 }
0x1acc   :  { %v7633_v7 = vadd.f32 %v6245_v34, %v3691_v51 }
0x1acd   :  { %v4182_v11 = vpop.f32.mrf.mxu1 }
0x1ace   :  { %v7637_v61 = vadd.f32 %v4182_v11, %v3683_v57 }
0x1acf   :  { %v6246_v14 = vpop.f32.mrf.mxu1 }
0x1ad0   :  { %v7641_v15 = vadd.f32 %v6246_v14, %v3694_v12 }
0x1ad1   :  { %v4185_v18 = vpop.f32.mrf.mxu1 }
0x1ad2   :  { %v7643_v63 = vadd.f32 %v4185_v18, %v3686_v24 }
0x1ad3   :  { %v4295_v0 = vpop.f32.mrf.mxu1 }
0x1ad4   :  { %v4296_v23 = vadd.f32 %v4295_v0, %v6841_v44 }
0x1ad5   :  { %v6257_v20 = vpop.f32.mrf.mxu1 }
0x1ad6   :  { %v4404_v1 = vsel %vm233_vm2, %v4296_v23, -inf }
0x1ad7   :  { %4405 = vmax.xlane.f32.xlu1 %v4404_v1  ;;  %v4298_v25 = vpop.f32.mrf.mxu1 }
0x1ad9   :  { %v6258_v56 = vpop.f32.mrf.mxu1 }
0x1adb   :  { %4426 = vadd.xlane.f32.xlu1 %v4425_v21  ;;  %v4395_v62 = vpop.f32.mrf.mxu1 }
0x1adc   :  { %v4396_v32 = vadd.f32 %v4395_v62, %v6851_v59 }
0x1add   :  { %v6269_v5 = vpop.f32.mrf.mxu1 }
0x1ade   :  { %v4410_v9 = vsel %vm233_vm2, %v4396_v32, -inf }
0x1adf   :  { %4432 = vadd.xlane.f32.xlu1 %v4431_v6  ;;  %4411 = vmax.xlane.f32.xlu0 %v4410_v9  ;;  %v4398_v44 = vpop.f32.mrf.mxu1 }
0x1ae1   :  { %v6270_v30 = vpop.f32.mrf.mxu1 }
0x1af0   :  { %4449 = vrot.lane.b32.xlu1 %v7302_v16, %s7940_s11 }
0x1af4   :  { %4545 = vrot.lane.b32.xlu1 %v7306_v48, %s7940_s11 }
0x1af8   :  { %4593 = vrot.lane.b32.xlu1 %v7314_v4, %s7940_s11 }
0x1b60   :  { %v4406_v53 = vpop.xlane.xlu1 %4405 }
0x1b61   :  { %v4414_v59 = vsub.f32 %v4296_v23, %v4406_v53 }
0x1b63   :  { %v4419_v17 = vmul.f32 1.442695, %v4414_v59 }
0x1b64   :  { %v4427_v31 = vpop.xlane.xlu1 %4426 }
0x1b65   :  { %6544 = vpow2.f32 %v4419_v17  ;;  %v5561_v17 = vld [vmem:[%s7922_s8 + $0x1] ss:$0 sm:$0xff] }
0x1b66   :  { %6546 = vrcp.f32 %v4427_v31 }
0x1b68   :  { %v4412_v54 = vpop.xlane.xlu0 %4411  ;;  %v4433_v33 = vpop.xlane.xlu1 %4432 }
0x1b69   :  { %v4416_v42 = vsub.f32 %v4396_v32, %v4412_v54  ;;  %6548 = vrcp.f32 %v4433_v33 }
0x1b6b   :  { %v4423_v43 = vmul.f32 1.442695, %v4416_v42 }
0x1b6c   :  { %v4450_v13 = vpop.permute.xlu1 %4449 }
0x1b6d   :  { %6550 = vpow2.f32 %v4423_v43  ;;  %v4455_v16 = vsel %vm480_vm3, %v4450_v13, 0 }
0x1b6e   :  { %6272 = vmatpush3.bf16.msra.mxu0 %v4455_v16 }
0x1b6f   :  { %6283 = vmatprep.subr.bf16.mxu0 %v6602_v8 }
0x1b70   :  { %v4546_v22 = vpop.permute.xlu1 %4545 }
0x1b71   :  { %v4551_v35 = vsel %vm480_vm3, %v4546_v22, 0 }
0x1b72   :  { %v6545_v48 = vpop.eup %6544 }
0x1b73   :  { %v6547_v4 = vpop.eup %6546  ;;  %v4428_v60 = vsel %vm233_vm2, %v6545_v48, 0.0 }
0x1b74   :  { %v4441_v10 = vmul.f32 %v6547_v4, %v6541_v2  ;;  %4429 = vadd.xlane.f32.xlu0 %v4428_v60  ;;  %v4594_v51 = vpop.permute.xlu1 %4593  ;;  %v5519_v2 = vld [vmem:[%s7921_s3 + $0x1c] sm:$0xf] }
0x1b75   :  { %v4599_v34 = vsel %vm480_vm3, %v4594_v51, 0  ;;  %v4650_v25 = vsel %vm480_vm3, %v5519_v2, 0 }
0x1b76   :  { %v4445_v26 = vpack.c.bf16 %v4441_v10, %v4441_v10  ;;  %v6549_v29 = vpop.eup %6548 }
0x1b77   :  { %v4443_v39 = vmul.f32 %v6549_v29, %v6543_v3 }
0x1b78   :  { %6274 = vmatmul.mubr.msk.bf16.vlgmr.msra.gmra.mxu0 %vm233_vm2, %v4445_v26 }
0x1b79   :  { %6284 = vmatpush3.bf16.msra.mxu0 %v4551_v35  ;;  %6285 = vmatprep.mubr.msk.bf16.mxu0 %vm6603_vm1, %v6602_v8  ;;  %v4447_v45 = vpack.c.bf16 %v4443_v39, %v4443_v39 }
0x1b7a   :  { %v6551_v40 = vpop.eup %6550  ;;  %6364 = vmatprep.subr.msk.bf16.mxu0 %vm480_vm3, %v5519_v2 }
0x1b7b   :  { %v4434_v41 = vsel %vm233_vm2, %v6551_v40, 0.0 }
0x1b7c   :  { %4435 = vadd.xlane.f32.xlu0 %v4434_v41 }
0x1b80   :  { %6286 = vmatmul.mubr.msk.bf16.vlgmr.msra.gmra.mxu0 %vm233_vm2, %v4447_v45 }
0x1b81   :  { %6296 = vmatpush3.bf16.msra.mxu0 %v4650_v25 }
0x1b92   :  { %4497 = vrot.lane.b32.xlu0 %v7308_v50, %s7940_s11 }
0x1bfd   :  { %v4430_v46 = vpop.xlane.xlu0 %4429 }
0x1bfe   :  { %6552 = vrcp.f32 %v4430_v46 }
0x1c05   :  { %v4436_v47 = vpop.xlane.xlu0 %4435 }
0x1c06   :  { %6554 = vrcp.f32 %v4436_v47 }
0x1c09   :  { %v4498_v19 = vpop.permute.xlu0 %4497 }
0x1c0a   :  { %v4503_v49 = vsel %vm480_vm3, %v4498_v19, 0 }
0x1c0b   :  { %v6553_v52 = vpop.eup %6552  ;;  %6278 = vmatpush3.bf16.msra.mxu1 %v4503_v49 }
0x1c0c   :  { %v4442_v55 = vmul.f32 %v6553_v52, %v6545_v48  ;;  %6289 = vmatprep.subr.bf16.mxu1 %v6602_v8 }
0x1c0e   :  { %v4446_v58 = vpack.c.bf16 %v4442_v55, %v4442_v55 }
0x1c10   :  { %6280 = vmatmul.mubr.msk.bf16.vlgmr.msra.gmra.mxu1 %vm233_vm2, %v4446_v58 }
0x1c11   :  { %6290 = vmatpush3.bf16.msra.mxu1 %v4599_v34  ;;  %6291 = vmatprep.mubr.msk.bf16.mxu1 %vm6603_vm1, %v6602_v8 }
0x1c13   :  { %v6555_v50 = vpop.eup %6554 }
0x1c14   :  { %v4444_v57 = vmul.f32 %v6555_v50, %v6551_v40 }
0x1c16   :  { %v4448_v11 = vpack.c.bf16 %v4444_v57, %v4444_v57 }
0x1c18   :  { %6292 = vmatmul.mubr.msk.bf16.vlgmr.msra.gmra.mxu1 %vm233_vm2, %v4448_v11  ;;  %v6394_v11 = vld [vmem:[%s7923_s12 + $0x18] sm:$0xff]  }
0x1c19   :  { %6301 = vmatprep.subr.bf16.mxu1 %v6394_v11 }
0x1c1a   :  { %6302 = vmatpush3.bf16.msra.mxu1 %v6394_v11 }
0x1c38   :  { %v4491_v12 = vpop.f32.mrf.mxu0 }
0x1c3a   :  { %v6275_v14 = vpop.f32.mrf.mxu0 }
0x1c3b   :  { %v6396_v14 = vld [vmem:[%s7924_s2 + $0x78] sm:$0xff]  }
0x1c3c   :  { %v4494_v24 = vpop.f32.mrf.mxu0  ;;  %6309 = vmatprep.subr.bf16.mxu0 %v6396_v14 }
0x1c3d   :  { %v6397_v24 = vld [vmem:[%s7924_s2 + $0x70] sm:$0xff]  }
0x1c3e   :  { %v6276_v18 = vpop.f32.mrf.mxu0 }
0x1c3f   :  { %v6398_v18 = vld [vmem:[%s7924_s2 + $0x68] sm:$0xff]  }
0x1c40   :  { %v4587_v0 = vpop.f32.mrf.mxu0 }
0x1c42   :  { %v6287_v23 = vpop.f32.mrf.mxu0 }
0x1c43   :  { %v6400_v23 = vld [vmem:[%s7924_s2 + $0x58] sm:$0xff]  }
0x1c44   :  { %v4590_v20 = vpop.f32.mrf.mxu0 }
0x1c46   :  { %v6288_v1 = vpop.f32.mrf.mxu0 }
0x1cd0   :  { %v4539_v56 = vpop.f32.mrf.mxu1 }
0x1cd1   :  { %v4641_v21 = vpack.c.bf16 %v4539_v56, %v4491_v12  ;;  %v6395_v12 = vld [vmem:[%s7923_s12 + $0x10] sm:$0xff]  }
0x1cd2   :  { %v6281_v3 = vpop.f32.mrf.mxu1  ;;  %6303 = vmatprep.subr.bf16.mxu1 %v6395_v12 }
0x1cd3   :  { %6297 = vmatprep.mubr.msk.bf16.mxu0 %vm233_vm2, %v4641_v21  ;;  %6304 = vmatpush3.bf16.msra.mxu1 %v6395_v12 }
0x1cd4   :  { %v4542_v62 = vpop.f32.mrf.mxu1  ;;  %6329 = vmatprep.subr.bf16.mxu1 %v6602_v8 }
0x1cd6   :  { %v6282_v32 = vpop.f32.mrf.mxu1 }
0x1cd8   :  { %v4635_v5 = vpop.f32.mrf.mxu1 }
0x1cd9   :  { %v4642_v6 = vpack.c.bf16 %v4635_v5, %v4587_v0  ;;  %v6399_v0 = vld [vmem:[%s7924_s2 + $0x60] sm:$0xff]  }
0x1cda   :  { %v6293_v9 = vpop.f32.mrf.mxu1 }
0x1cdb   :  { %6298 = vmatmul.mubr.msk.bf16.vlgmr.msra.gmra.mxu0 %vm233_vm2, %v4642_v6 }
0x1cdc   :  { %v4638_v44 = vpop.f32.mrf.mxu1  ;;  %6310 = vmatpush3.bf16.msra.mxu0 %v6396_v14 }
0x1cdd   :  { %6311 = vmatprep.subr.bf16.mxu0 %v6397_v24 }
0x1cde   :  { %v6294_v30 = vpop.f32.mrf.mxu1 }
0x1ce0   :  { %6312 = vmatpush3.bf16.msra.mxu0 %v6397_v24 }
0x1ce1   :  { %6313 = vmatprep.subr.bf16.mxu0 %v6398_v18 }
0x1ce4   :  { %6314 = vmatpush3.bf16.msra.mxu0 %v6398_v18 }
0x1ce5   :  { %6315 = vmatprep.subr.bf16.mxu0 %v6399_v0 }
0x1ce8   :  { %6316 = vmatpush3.bf16.msra.mxu0 %v6399_v0 }
0x1ce9   :  { %6317 = vmatprep.subr.bf16.mxu0 %v6400_v23 }
0x1cec   :  { %6318 = vmatpush3.bf16.msra.mxu0 %v6400_v23 }
0x1d9b   :  { %v6299_v53 = vpop.f32.mrf.mxu0 }
0x1d9c   :  { %v4703_v59 = vadd.f32 %v6299_v53, %v7633_v7  ;;  %v5564_v53 = vld [vmem:[%s7925_s0 + $0x1] ss:$0 sm:$0xff] }
0x1d9d   :  { %v4686_v31 = vpop.f32.mrf.mxu0 }
0x1d9e   :  { %v4701_v54 = vadd.f32 %v4686_v31, %v7637_v61  ;;  %v4715_v42 = vadd.f32 %v5561_v17, %v4703_v59 }
0x1d9f   :  { %v6300_v33 = vpop.f32.mrf.mxu0 }
0x1da0   :  { %v4713_v43 = vadd.f32 %v5561_v17, %v4701_v54  ;;  %v4704_v13 = vadd.f32 %v6300_v33, %v7641_v15  ;;  %v4719_v22 = vadd.f32 %v4715_v42, %v7290_v36  ;;  %v5565_v42 = vld [vmem:[%s7926_s10 + $0x1] ss:$0 sm:$0xff] }
0x1da1   :  { %v4689_v16 = vpop.f32.mrf.mxu0 }
0x1da2   :  { %v4702_v48 = vadd.f32 %v4689_v16, %v7643_v63  ;;  %v4717_v4 = vadd.f32 %v4713_v43, %v7283_v27  ;;  %v4716_v60 = vadd.f32 %v5561_v17, %v4704_v13  ;;  %v4731_v61 = vsel %vm166_vm0, %v4719_v22, 0.0 }
0x1da4   :  { %v4714_v10 = vadd.f32 %v5561_v17, %v4702_v48  ;;  %v4725_v7 = vsel %vm166_vm0, %v4717_v4, 0.0  ;;  %v4720_v15 = vadd.f32 %v4716_v60, %v7292_v37 }
0x1da5   :  { %4726 = vadd.xlane.f32.xlu0 %v4725_v7 }
0x1da6   :  { %v4718_v26 = vadd.f32 %v4714_v10, %v7285_v28  ;;  %v4734_v63 = vsel %vm166_vm0, %v4720_v15, 0.0 }
0x1da8   :  { %v4728_v29 = vsel %vm166_vm0, %v4718_v26, 0.0 }
0x1da9   :  { %4732 = vadd.xlane.f32.xlu0 %v4731_v61  ;;  %4729 = vadd.xlane.f32.xlu1 %v4728_v29  ;;  %v6401_v29 = vld [vmem:[%s7924_s2 + $0x50] sm:$0xff]  }
0x1daa   :  { %6319 = vmatprep.subr.bf16.mxu0 %v6401_v29 }
0x1dab   :  { %6320 = vmatpush3.bf16.msra.mxu0 %v6401_v29 }
0x1dad   :  { %4735 = vadd.xlane.f32.xlu0 %v4734_v63  ;;  %v6403_v63 = vld [vmem:[%s7924_s2 + $0x40] sm:$0xff]  }
0x1e2e   :  { %v4727_v27 = vpop.xlane.xlu0 %4726 }
0x1e2f   :  { %v4737_v35 = vmul.f32 0.03125, %v4727_v27 }
0x1e31   :  { %v4741_v40 = vsub.f32 %v4717_v4, %v4737_v35 }
0x1e32   :  { %v4733_v39 = vpop.xlane.xlu0 %4732  ;;  %v4730_v41 = vpop.xlane.xlu1 %4729 }
0x1e33   :  { %v4739_v36 = vmul.f32 0.03125, %v4733_v39  ;;  %v4738_v45 = vmul.f32 0.03125, %v4730_v41  ;;  %v4745_v46 = vmul.f32 %v4741_v40, %v4741_v40 }
0x1e35   :  { %v4743_v28 = vsub.f32 %v4719_v22, %v4739_v36  ;;  %v4742_v47 = vsub.f32 %v4718_v26, %v4738_v45  ;;  %v4749_v19 = vsel %vm166_vm0, %v4745_v46, 0.0 }
0x1e36   :  { %v4736_v49 = vpop.xlane.xlu0 %4735  ;;  %4750 = vadd.xlane.f32.xlu1 %v4749_v19 }
0x1e37   :  { %v4740_v37 = vmul.f32 0.03125, %v4736_v49  ;;  %v4747_v52 = vmul.f32 %v4743_v28, %v4743_v28  ;;  %v4746_v55 = vmul.f32 %v4742_v47, %v4742_v47 }
0x1e39   :  { %v4744_v51 = vsub.f32 %v4720_v15, %v4740_v37  ;;  %v4755_v58 = vsel %vm166_vm0, %v4747_v52, 0.0  ;;  %v4752_v34 = vsel %vm166_vm0, %v4746_v55, 0.0  ;;  %v6402_v15 = vld [vmem:[%s7924_s2 + $0x48] sm:$0xff]   ;;  %s6616_s2 = smov [#allocation2]  }
0x1e3a   :  { %4756 = vadd.xlane.f32.xlu1 %v4755_v58  ;;  %4753 = vadd.xlane.f32.xlu0 %v4752_v34  ;;  %v5593_v58 = vld [vmem:[%s7928_s7 + $0x1] ss:$0 sm:$0xff]  ;;  %s5433_s3 = sshll.u32 %s6616_s2, 4  ;;  %s5434_s3 = int_to_ptr.vmem [resolvable:$true] %s5433_s3 }
0x1e3b   :  { %v4748_v50 = vmul.f32 %v4744_v51, %v4744_v51  ;;  %6321 = vmatprep.subr.bf16.mxu0 %v6402_v15  ;;  %p6585_p1 = scmp.lt.s32.totalorder %s5434_s3, %s5434_s3 }
0x1e3c   :  { %6322 = vmatpush3.bf16.msra.mxu0 %v6402_v15 }
0x1e3d   :  { %v4758_v57 = vsel %vm166_vm0, %v4748_v50, 0.0  ;;  %6323 = vmatprep.subr.bf16.mxu0 %v6403_v63 }
0x1e3e   :  { %4759 = vadd.xlane.f32.xlu0 %v4758_v57 }
0x1e40   :  { %6324 = vmatpush3.bf16.msra.mxu0 %v6403_v63 }
0x1ebf   :  { %v4751_v20 = vpop.xlane.xlu1 %4750 }
0x1ec0   :  { %v4761_v1 = vmul.f32 0.03125, %v4751_v20 }
0x1ec2   :  { %v4765_v2 = vadd.f32 1e-05, %v4761_v1 }
0x1ec3   :  { %v4754_v25 = vpop.xlane.xlu0 %4753  ;;  %v4757_v56 = vpop.xlane.xlu1 %4756 }
0x1ec4   :  { %6556 = vrsqrt.f32 %v4765_v2  ;;  %v4762_v21 = vmul.f32 0.03125, %v4754_v25  ;;  %v4763_v3 = vmul.f32 0.03125, %v4757_v56 }
0x1ec6   :  { %v4766_v62 = vadd.f32 1e-05, %v4762_v21  ;;  %v4767_v32 = vadd.f32 1e-05, %v4763_v3 }
0x1ec7   :  { %v4760_v5 = vpop.xlane.xlu0 %4759 }
0x1ec8   :  { %6558 = vrsqrt.f32 %v4766_v62  ;;  %v4764_v6 = vmul.f32 0.03125, %v4760_v5 }
0x1ec9   :  { %6560 = vrsqrt.f32 %v4767_v32 }
0x1eca   :  { %v4768_v9 = vadd.f32 1e-05, %v4764_v6 }
0x1ecc   :  { %6562 = vrsqrt.f32 %v4768_v9 }
0x1ed1   :  { %v6557_v44 = vpop.eup %6556 }
0x1ed2   :  { %v4773_v30 = vmul.f32 %v6557_v44, %v4741_v40  ;;  %v5571_v40 = vld [vmem:[%s7927_s30 + $0x1] ss:$0 sm:$0xff] }
0x1ed4   :  { %v4783_v54 = vmul.f32 %v5564_v53, %v4773_v30 }
0x1ed5   :  { %v6559_v59 = vpop.eup %6558 }
0x1ed6   :  { %v6561_v17 = vpop.eup %6560  ;;  %v4774_v31 = vmul.f32 %v6559_v59, %v4742_v47  ;;  %v4793_v4 = vadd.f32 %v5565_v42, %v4783_v54 }
0x1ed7   :  { %v4775_v33 = vmul.f32 %v6561_v17, %v4743_v28 }
0x1ed8   :  { %v4784_v43 = vmul.f32 %v5564_v53, %v4774_v31 }
0x1ed9   :  { %v6563_v13 = vpop.eup %6562  ;;  %v4785_v48 = vmul.f32 %v5564_v53, %v4775_v33 }
0x1eda   :  { %v4776_v16 = vmul.f32 %v6563_v13, %v4744_v51  ;;  %v4794_v60 = vadd.f32 %v5565_v42, %v4784_v43 }
0x1edb   :  { %v4795_v22 = vadd.f32 %v5565_v42, %v4785_v48 }
0x1edc   :  { %v4786_v10 = vmul.f32 %v5564_v53, %v4776_v16  ;;  %v4802_v7 = vpack.c.bf16 %v4794_v60, %v4793_v4 }
0x1ede   :  { %v4796_v26 = vadd.f32 %v5565_v42, %v4786_v10  ;;  %6305 = vmatprep.mubr.msk.bf16.mxu1 %vm166_vm0, %v4802_v7 }
0x1ee0   :  { %v4803_v61 = vpack.c.bf16 %v4796_v26, %v4795_v22 }
0x1ee2   :  { %6306 = vmatmul.mubr.msk.bf16.vlgmr.msra.gmra.mxu1 %vm166_vm0, %v4803_v61 }
0x1ee3   :  { %6333 = vmatprep.mubr.msk.bf16.mxu1 %vm6603_vm1, %v6602_v8 }
0x1fa2   :  { %v6307_v27 = vpop.f32.mrf.mxu1 }
0x1fa3   :  { %v4873_v45 = vadd.f32 %v6307_v27, %v5571_v40 }
0x1fa4   :  { %v4864_v35 = vpop.f32.mrf.mxu1 }
0x1fa5   :  { %v4865_v41 = vadd.f32 %v5571_v40, %v4864_v35  ;;  %v4881_v37 = vmax.f32 %v4873_v45, 0.0 }
0x1fa6   :  { %v6308_v39 = vpop.f32.mrf.mxu1 }
0x1fa7   :  { %v4876_v36 = vadd.f32 %v6308_v39, %v5571_v40  ;;  %v4879_v19 = vmax.f32 %v4865_v41, 0.0 }
0x1fa8   :  { %v4867_v46 = vpop.f32.mrf.mxu1 }
0x1fa9   :  { %v4868_v28 = vadd.f32 %v5571_v40, %v4867_v46  ;;  %v4882_v47 = vmax.f32 %v4876_v36, 0.0  ;;  %v5604_v36 = vld [vmem:[%s7929_s6 + $0x1] ss:$0 sm:$0xff] }
0x1faa   :  { %v5605_v46 = vld [vmem:[%s7854_s13 + $0x1] ss:$0 sm:$0xff] }
0x1fab   :  { %v4880_v49 = vmax.f32 %v4868_v28, 0.0  ;;  %v4901_v55 = vpack.c.bf16 %v4882_v47, %v4881_v37 }
0x1fad   :  { %v4900_v52 = vpack.c.bf16 %v4880_v49, %v4879_v19 }
0x1faf   :  { %6325 = vmatprep.mubr.bf16.mxu0 %v4900_v52 }
0x1fb0   :  { %6326 = vmatmul.mubr.bf16.vlgmr.msra.gmra.mxu0 %v4901_v55 }
0x2070   :  { %v6327_v51 = vpop.f32.mrf.mxu0 }
0x2071   :  { %v5001_v50 = vadd.f32 %v6327_v51, %v5593_v58 }
0x2072   :  { %v4992_v34 = vpop.f32.mrf.mxu0 }
0x2073   :  { %v4993_v57 = vadd.f32 %v5593_v58, %v4992_v34  ;;  %v5009_v24 = vadd.f32 %v5001_v50, %v4795_v22 }
0x2074   :  { %v6328_v11 = vpop.f32.mrf.mxu0 }
0x2075   :  { %v5007_v12 = vadd.f32 %v4993_v57, %v4793_v4  ;;  %v5004_v18 = vadd.f32 %v6328_v11, %v5593_v58  ;;  %v5021_v25 = vsel %vm166_vm0, %v5009_v24, 0.0  ;;  %v6404_v4 = vld [vmem:[%s7855_s14 + $0x8] sm:$0xff]  }
0x2076   :  { %v4995_v14 = vpop.f32.mrf.mxu0  ;;  %6330 = vmatpush3.bf16.msra.mxu1 %v6404_v4 }
0x2077   :  { %v4996_v0 = vadd.f32 %v5593_v58, %v4995_v14  ;;  %v5015_v23 = vsel %vm166_vm0, %v5007_v12, 0.0  ;;  %v5010_v1 = vadd.f32 %v5004_v18, %v4796_v26  ;;  %6331 = vmatprep.subr.bf16.mxu1 %v6602_v8 }
0x2078   :  { %5016 = vadd.xlane.f32.xlu1 %v5015_v23 }
0x2079   :  { %v5008_v20 = vadd.f32 %v4996_v0, %v4794_v60  ;;  %v5024_v56 = vsel %vm166_vm0, %v5010_v1, 0.0  ;;  %v6405_v60 = vld [vmem:[%s7855_s14] sm:$0xff]  }
0x207a   :  { %6332 = vmatpush3.bf16.msra.mxu1 %v6405_v60 }
0x207b   :  { %v5018_v2 = vsel %vm166_vm0, %v5008_v20, 0.0  ;;  %6337 = vmatprep.subr.bf16.mxu1 %v6602_v8 }
0x207c   :  { %5019 = vadd.xlane.f32.xlu0 %v5018_v2  ;;  %5022 = vadd.xlane.f32.xlu1 %v5021_v25 }
0x2080   :  { %5025 = vadd.xlane.f32.xlu0 %v5024_v56 }
0x2101   :  { %v5017_v21 = vpop.xlane.xlu1 %5016 }
0x2102   :  { %v5027_v3 = vmul.f32 0.03125, %v5017_v21 }
0x2104   :  { %v5031_v62 = vsub.f32 %v5007_v12, %v5027_v3 }
0x2105   :  { %v5020_v32 = vpop.xlane.xlu0 %5019  ;;  %v5023_v5 = vpop.xlane.xlu1 %5022 }
0x2106   :  { %v5028_v6 = vmul.f32 0.03125, %v5020_v32  ;;  %v5029_v9 = vmul.f32 0.03125, %v5023_v5  ;;  %v5035_v44 = vmul.f32 %v5031_v62, %v5031_v62 }
0x2108   :  { %v5032_v30 = vsub.f32 %v5008_v20, %v5028_v6  ;;  %v5033_v53 = vsub.f32 %v5009_v24, %v5029_v9  ;;  %v5039_v59 = vsel %vm166_vm0, %v5035_v44, 0.0 }
0x2109   :  { %v5026_v17 = vpop.xlane.xlu0 %5025  ;;  %5040 = vadd.xlane.f32.xlu1 %v5039_v59 }
0x210a   :  { %v5030_v31 = vmul.f32 0.03125, %v5026_v17  ;;  %v5036_v54 = vmul.f32 %v5032_v30, %v5032_v30  ;;  %v5037_v33 = vmul.f32 %v5033_v53, %v5033_v53 }
0x210c   :  { %v5034_v42 = vsub.f32 %v5010_v1, %v5030_v31  ;;  %v5042_v43 = vsel %vm166_vm0, %v5036_v54, 0.0  ;;  %v5045_v13 = vsel %vm166_vm0, %v5037_v33, 0.0 }
0x210d   :  { %5043 = vadd.xlane.f32.xlu0 %v5042_v43  ;;  %5046 = vadd.xlane.f32.xlu1 %v5045_v13 }
0x210e   :  { %v5038_v16 = vmul.f32 %v5034_v42, %v5034_v42 }
0x2110   :  { %v5048_v48 = vsel %vm166_vm0, %v5038_v16, 0.0 }
0x2111   :  { %5049 = vadd.xlane.f32.xlu0 %v5048_v48 }
0x2192   :  { %v5041_v10 = vpop.xlane.xlu1 %5040 }
0x2193   :  { %v5051_v7 = vmul.f32 0.03125, %v5041_v10 }
0x2195   :  { %v5055_v22 = vadd.f32 1e-05, %v5051_v7 }
0x2196   :  { %v5044_v26 = vpop.xlane.xlu0 %5043  ;;  %v5047_v61 = vpop.xlane.xlu1 %5046 }
0x2197   :  { %6564 = vrsqrt.f32 %v5055_v22  ;;  %v5052_v29 = vmul.f32 0.03125, %v5044_v26  ;;  %v5053_v15 = vmul.f32 0.03125, %v5047_v61 }
0x2199   :  { %v5056_v63 = vadd.f32 1e-05, %v5052_v29  ;;  %v5057_v27 = vadd.f32 1e-05, %v5053_v15 }
0x219a   :  { %v5050_v35 = vpop.xlane.xlu0 %5049 }
0x219b   :  { %6566 = vrsqrt.f32 %v5056_v63  ;;  %v5054_v40 = vmul.f32 0.03125, %v5050_v35 }
0x219c   :  { %6568 = vrsqrt.f32 %v5057_v27 }
0x219d   :  { %v5058_v39 = vadd.f32 1e-05, %v5054_v40 }
0x219f   :  { %6570 = vrsqrt.f32 %v5058_v39 }
0x21a4   :  { %v6565_v41 = vpop.eup %6564 }
0x21a5   :  { %v5063_v45 = vmul.f32 %v6565_v41, %v5031_v62  ;;  %v6406_v41 = vld [vmem:[%s7861_s20 + $0x18] sm:$0xff]  }
0x21a7   :  { %v5073_v28 = vmul.f32 %v5604_v36, %v5063_v45  ;;  %v6408_v45 = vld [vmem:[%s7861_s20 + $0x8] sm:$0xff]  }
0x21a8   :  { %v6567_v47 = vpop.eup %6566 }
0x21a9   :  { %v6569_v19 = vpop.eup %6568  ;;  %v5083_v49 = vadd.f32 %v5605_v46, %v5073_v28  ;;  %v5064_v37 = vmul.f32 %v6567_v47, %v5032_v30  ;;  %v5208_v28 = vld [vmem:[%s7860_s19] sm:$0x1] }
0x21aa   :  { %v5065_v52 = vmul.f32 %v6569_v19, %v5033_v53  ;;  %v5216_v47 = vadd.f32 1e-05, %v5208_v28 }
0x21ab   :  { %v5087_v55 = vsel %vm166_vm0, %v5083_v49, 0.0  ;;  %v5074_v51 = vmul.f32 %v5604_v36, %v5064_v37  ;;  %v5606_v49 = vld [vmem:[%s7856_s15] ss:$0 sm:$0xff] }
0x21ac   :  { %v6571_v58 = vpop.eup %6570  ;;  %v5088_v34 = vrot.slane %v5087_v55, 4  ;;  %v5075_v50 = vmul.f32 %v5604_v36, %v5065_v52  ;;  %6572 = vrsqrt.f32 %v5216_v47  ;;  %v5610_v52 = vld [vmem:[%s7859_s18] ss:$0 sm:$0xff] }
0x21ad   :  { %v5084_v57 = vadd.f32 %v5605_v46, %v5074_v51  ;;  %v5066_v11 = vmul.f32 %v6571_v58, %v5034_v42 }
0x21ae   :  { %v5089_v12 = vadd.f32 %v5088_v34, %v5087_v55  ;;  %v5085_v14 = vadd.f32 %v5605_v46, %v5075_v50  ;;  %v5611_v50 = vld [vmem:[%s7857_s16] ss:$0 sm:$0xff] }
0x21af   :  { %v5094_v24 = vsel %vm166_vm0, %v5084_v57, 0.0  ;;  %v5076_v18 = vmul.f32 %v5604_v36, %v5066_v11  ;;  %v6407_v36 = vld [vmem:[%s7861_s20 + $0x10] sm:$0xff]  }
0x21b0   :  { %v5090_v0 = vrot.slane %v5089_v12, 2  ;;  %v5095_v23 = vrot.slane %v5094_v24, 4  ;;  %v5101_v20 = vsel %vm166_vm0, %v5085_v14, 0.0 }
0x21b1   :  { %v5102_v1 = vrot.slane %v5101_v20, 4  ;;  %v5086_v2 = vadd.f32 %v5605_v46, %v5076_v18  ;;  %v6409_v46 = vld [vmem:[%s7861_s20] sm:$0xff]  }
0x21b2   :  { %v5091_v25 = vadd.f32 %v5090_v0, %v5089_v12  ;;  %v5096_v56 = vadd.f32 %v5095_v23, %v5094_v24  ;;  %v5612_v12 = vld [vmem:[%s7858_s17] ss:$0 sm:$0xff] }
0x21b3   :  { %v5103_v21 = vadd.f32 %v5102_v1, %v5101_v20  ;;  %v5108_v3 = vsel %vm166_vm0, %v5086_v2, 0.0  ;;  %v6410_v20 = vld [vmem:[%s7867_s26 + $0x8] sm:$0xff]   ;;  %v6411_v1 = vld [vmem:[%s7867_s26] sm:$0xff]  }
0x21b4   :  { %v5092_v62 = vrot.slane %v5091_v25, 1  ;;  %v5097_v32 = vrot.slane %v5096_v56, 2  ;;  %v5109_v5 = vrot.slane %v5108_v3, 4  ;;  %v5327_v2 = vld [vmem:[%s7866_s25] sm:$0x1] }
0x21b5   :  { %v5104_v6 = vrot.slane %v5103_v21, 2 }
0x21b6   :  { %v5093_v9 = vadd.f32 %v5092_v62, %v5091_v25  ;;  %v5098_v44 = vadd.f32 %v5097_v32, %v5096_v56  ;;  %v5110_v30 = vadd.f32 %v5109_v5, %v5108_v3  ;;  %v5335_v25 = vadd.f32 1e-05, %v5327_v2 }
0x21b7   :  { %v5105_v53 = vadd.f32 %v5104_v6, %v5103_v21  ;;  %v5613_v21 = vld [vmem:[%s7862_s21] ss:$0 sm:$0xff] }
0x21b8   :  { %v5116_v59 = vmul.f32 0.125, %v5093_v9  ;;  %v5099_v17 = vrot.slane %v5098_v44, 1  ;;  %v5111_v31 = vrot.slane %v5110_v30, 2  ;;  %6574 = vrsqrt.f32 %v5335_v25  ;;  %v5620_v9 = vld [vmem:[%s7863_s22] ss:$0 sm:$0xff]  ;;  %s6580_s22 = scalar_lea.vmem %s5434_s3, 64 }
0x21b9   :  { %v5106_v54 = vrot.slane %v5105_v53, 1  ;;  %v6573_v19 = vpop.eup %6572  ;;  %p6581_p0 = scmp.ne.s32.totalorder %s5434_s3, %s6580_s22  ;;  %p6586_p2 = scmp.lt.s32.totalorder %s6580_s22, %s6580_s22 }
0x21ba   :  { %v5100_v33 = vadd.f32 %v5099_v17, %v5098_v44  ;;  %v5112_v42 = vadd.f32 %v5111_v31, %v5110_v30  ;;  %v5124_v48 = vpack.c.bf16 %v5116_v59, %v5116_v59  ;;  %v5222_v51 = vrot.slane %v6573_v19, %v6834_v38 }
0x21bb   :  { %v5107_v43 = vadd.f32 %v5106_v54, %v5105_v53  ;;  %v5621_v53 = vld [vmem:[%s7864_s23] ss:$0 sm:$0xff]  ;;  %p6587_p3 = por %p6586_p2, %p6585_p1 }
0x21bc   :  { %v5117_v13 = vmul.f32 0.125, %v5100_v33  ;;  %v5113_v16 = vrot.slane %v5112_v42, 1  ;;  %v5139_v26 = vunpack.c.l.b16 %v5124_v48 }
0x21bd   :  { %v5118_v4 = vmul.f32 0.125, %v5107_v43  ;;  %p6588_p4 = pnand %p6587_p3, %p6581_p0 }
0x21be   :  { %v5114_v60 = vadd.f32 %v5113_v16, %v5112_v42  ;;  %v5125_v10 = vpack.c.bf16 %v5117_v13, %v5117_v13 }
0x21bf   :  { %v5126_v7 = vpack.c.bf16 %v5118_v4, %v5118_v4 }
0x21c0   :  { %v5119_v22 = vmul.f32 0.125, %v5114_v60  ;;  %v5140_v61 = vunpack.c.l.b16 %v5125_v10 }
0x21c1   :  { %v5141_v29 = vunpack.c.l.b16 %v5126_v7 }
0x21c2   :  { %v5127_v15 = vpack.c.bf16 %v5119_v22, %v5119_v22  ;;  %v5144_v63 = vsel %vm5143_vm4, %v5140_v61, %v5139_v26 }
0x21c3   :  { %v5146_v35 = vsel %vm5145_vm5, %v5141_v29, %v5144_v63 }
0x21c4   :  { %v5142_v27 = vunpack.c.l.b16 %v5127_v15 }
0x21c5   :  { %v6575_v56 = vpop.eup %6574 }
0x21c6   :  { %v5148_v40 = vsel %vm5147_vm6, %v5142_v27, %v5146_v35  ;;  %v5341_v32 = vrot.slane %v6575_v56, %v6834_v38  ;;  %v5622_v38 = vld [vmem:[%s7868_s27] ss:$0 sm:$0xff] }
0x21c7   :  { %v5149_v39 = vpack.c.b16 %v5148_v40, %v5148_v40 }
0x21c9   :  { %6334 = vmatmul.mubr.msk.bf16.vlgmr.msra.gmra.mxu1 %vm166_vm0, %v5149_v39 }
0x21ca   :  { %6345 = vmatprep.mubr.msk.bf16.mxu1 %vm6603_vm1, %v6602_v8  ;;  %6338 = vmatpush3.bf16.msra.mxu1 %v6406_v41 }
0x21cb   :  { %6339 = vmatprep.subr.bf16.mxu1 %v6602_v8 }
0x21ce   :  { %6340 = vmatpush3.bf16.msra.mxu1 %v6407_v36 }
0x21cf   :  { %6341 = vmatprep.subr.bf16.mxu1 %v6602_v8 }
0x21d2   :  { %6342 = vmatpush3.bf16.msra.mxu1 %v6408_v45 }
0x21d3   :  { %6343 = vmatprep.subr.bf16.mxu1 %v6602_v8 }
0x21d6   :  { %6344 = vmatpush3.bf16.msra.mxu1 %v6409_v46 }
0x21d7   :  { %6349 = vmatprep.subr.bf16.mxu1 %v6602_v8 }
0x2289   :  { %v5199_v37 = vpop.f32.mrf.mxu1 }
0x228a   :  { %v5200_v55 = vadd.f32 %v5606_v49, %v5199_v37 }
0x228b   :  { %v6335_v58 = vpop.f32.mrf.mxu1 }
0x228c   :  { %v5215_v34 = vsub.f32 %v5200_v55, %v5610_v52 }
0x228d   :  { %v5202_v57 = vpop.f32.mrf.mxu1 }
0x228e   :  { %v5224_v11 = vmul.f32 %v5222_v51, %v5215_v34 }
0x228f   :  { %v6336_v14 = vpop.f32.mrf.mxu1 }
0x2290   :  { %v5231_v24 = vmul.f32 %v5611_v50, %v5224_v11 }
0x2292   :  { %v5238_v18 = vadd.f32 %v5612_v12, %v5231_v24 }
0x2294   :  { %v5239_v0 = vmax.f32 %v5238_v18, 0.0 }
0x2296   :  { %v5248_v23 = vpack.c.bf16 %v5239_v0, %v5239_v0 }
0x2298   :  { %6346 = vmatmul.mubr.msk.bf16.vlgmr.msra.gmra.mxu1 %vm5280_vm7, %v5248_v23 }
0x2299   :  { %6353 = vmatprep.mubr.msk.bf16.mxu1 %vm6603_vm1, %v6602_v8  ;;  %6350 = vmatpush3.bf16.msra.mxu1 %v6410_v20 }
0x229a   :  { %6351 = vmatprep.subr.bf16.mxu1 %v6602_v8  ;;  %v5619_v8 = vld [vmem:[%s7865_s24] ss:$0 sm:$0xff] }
0x229d   :  { %6352 = vmatpush3.bf16.msra.mxu1 %v6411_v1 }
0x2358   :  { %v5318_v3 = vpop.f32.mrf.mxu1 }
0x2359   :  { %v5319_v62 = vadd.f32 %v5613_v21, %v5318_v3 }
0x235a   :  { %v6347_v5 = vpop.f32.mrf.mxu1 }
0x235b   :  { %v5334_v6 = vsub.f32 %v5319_v62, %v5619_v8 }
0x235c   :  { %v5321_v44 = vpop.f32.mrf.mxu1 }
0x235d   :  { %v5343_v30 = vmul.f32 %v5341_v32, %v5334_v6 }
0x235e   :  { %v6348_v59 = vpop.f32.mrf.mxu1 }
0x235f   :  { %v5350_v17 = vmul.f32 %v5620_v9, %v5343_v30 }
0x2361   :  { %v5357_v31 = vadd.f32 %v5621_v53, %v5350_v17 }
0x2363   :  { %v5358_v54 = vmax.f32 %v5357_v31, 0.0 }
0x2365   :  { %v5363_v33 = vpack.c.bf16 %v5358_v54, %v5358_v54 }
0x2367   :  { %6354 = vmatmul.mubr.msk.bf16.vlgmr.msra.gmra.mxu1 %vm166_vm0, %v5363_v33 }
0x2427   :  { %v5420_v42 = vpop.f32.mrf.mxu1 }
0x2428   :  { %v5421_v43 = vadd.f32 %v5622_v38, %v5420_v42 }
0x2429   :  { %v6355_v13 = vpop.f32.mrf.mxu1 }
0x242a   :  { %5426 = vst [vmem:[#allocation2] sm:$0xf] %v5421_v43 }
0x242b   :  { %v5423_v16 = vpop.f32.mrf.mxu1 }
0x242c   :  { %6591 = shalt.err (!%p6588_p4)
}
0x242d   :  { %5436 = dma.vmem_to_hbm [thread:$0]  %s5434_s3, 64, %s7869_s28, [#allocation3]   ;;  %v6356_v48 = vpop.f32.mrf.mxu1 }
0x242e   :  { %6600 = dma.done.wait [#allocation3], 64  }
0x242f   :  { %6601 = vsyncadd [#allocation3], 4294967232 }
0x2430   :  { %5440 = vsyncpa [#allocation3], 1 }

</bundles_post_ra>
